<compile_context>
chip_gen: v5e
topology: v5e:2x2
jax: 0.10.0
libtpu: 0.0.40
codegen_flags: <defaults>
</compile_context>

<pallas_src>
import functools

import jax
import jax.numpy as jnp
import numpy as np
from jax.experimental import pallas as pl
from jax.experimental.pallas import tpu as pltpu

_LANE = 128  # TPU lane width; interior of the scratch starts lane-aligned.


# ------------------------------ fused kernel --------------------------------
def _gen_enc_kernel(x_ref, w1_ref, b1_ref, w2_ref, b2_ref, w3_ref, b3_ref,
                    xmid_ref, pool_ref, buf_ref, *, C, H, W, PAD):
    """One batch element; activations laid out lane-dense as (C, H*W)."""
    HW = H * W
    HO, WO = H // 2, W // 2

    # In-kernel zero padding: only the two pad slices are zeroed each step
    # (the interior is fully overwritten before every conv).  Both stores are
    # lane-aligned and tiny.
    buf_ref[:, :PAD] = jnp.zeros((C, PAD), jnp.float32)
    buf_ref[:, PAD + HW:] = jnp.zeros((C, PAD), jnp.float32)

    # Hoist all weights/biases into vregs once; slice columns from the values
    # (no per-(tap, channel) sub-lane VMEM loads).
    w1 = w1_ref[...].astype(jnp.float32)        # (C, 9*C) -- one vreg at C=4
    w2 = w2_ref[...].astype(jnp.float32)
    w3 = w3_ref[...].astype(jnp.float32)
    b1 = b1_ref[...].astype(jnp.float32)        # (C, 1)
    b2 = b2_ref[...].astype(jnp.float32)
    b3 = b3_ref[...].astype(jnp.float32)

    x = x_ref[0].astype(jnp.float32)            # (C, HW)

    # x-boundary masks (y boundaries are handled by the zero pad slices).
    px = jax.lax.broadcasted_iota(jnp.int32, (1, HW), 1) % W
    not_left = px >= 1                          # valid destinations of dx == -1
    not_right = px <= W - 2                     # valid destinations of dx == +1

    def conv3x3(act, w, bias):
        """3x3 'same' conv of the (C, HW) value `act` via the padded scratch.

        Channel mixing = VPU broadcast-MACs on values (no tiny MXU matmuls);
        spatial shifts = ONE static-offset (C, HW) read per tap from the
        row-padded scratch, whose interior store is 128-lane aligned.
        """
        buf_ref[:, PAD:PAD + HW] = act                     # aligned vst
        acc = None
        for dy in (-1, 0, 1):
            for dx in (-1, 0, 1):
                tap = (dy + 1) * 3 + (dx + 1)
                start = PAD + dy * W + dx                  # static offset >= 0
                shifted = buf_ref[:, start:start + HW]     # (C, HW), 1 read/tap
                contrib = None
                for ci in range(C):
                    col = tap * C + ci
                    term = w[:, col:col + 1] * shifted[ci:ci + 1, :]   # (C, HW)
                    contrib = term if contrib is None else contrib + term
                if dx == -1:
                    contrib = jnp.where(not_left, contrib, 0.0)
                elif dx == 1:
                    contrib = jnp.where(not_right, contrib, 0.0)
                acc = contrib if acc is None else acc + contrib
        return acc + bias                                  # bias (C,1) broadcast
    # TODO(synk): for production-scale C (>=32), switch channel mixing to
    # per-tap MXU matmuls (Cout,Cin)x(Cin,HW) in bf16 with f32 accumulation
    # (v6e/v7x), and stack >=2 batch elements per grid step so the sublane dim
    # is fully occupied; keep this VPU path only for tiny C.

    # ResBlock: r = relu(x + conv2(relu(conv1(x))))
    h = jnp.maximum(conv3x3(x, w1, b1), 0.0)
    r = jnp.maximum(conv3x3(h, w2, b2) + x, 0.0)
    # middle_layer (dropout = -1 path): conv -> relu
    m = jnp.maximum(conv3x3(r, w3, b3), 0.0)
    xmid_ref[...] = m[None].astype(xmid_ref.dtype)

    # Fused MaxPool2d(2,2): per output row, four contiguous window reads from
    # the scratch + elementwise max, then a tiny (W, WO) even-column one-hot
    # matmul compacts W lanes to WO.  The selector is O(W*WO), built in-kernel
    # (the old O(HW^2/4) HBM selection matrix is gone); odd columns of the
    # shifted reads are garbage but are multiplied by zero.
    buf_ref[:, PAD:PAD + HW] = m                           # aligned vst
    rows_i = jax.lax.broadcasted_iota(jnp.int32, (W, WO), 0)
    cols_i = jax.lax.broadcasted_iota(jnp.int32, (W, WO), 1)
    sel_even = (rows_i == 2 * cols_i).astype(jnp.float32)  # (W, WO) one-hot
    for yo in range(HO):
        base = PAD + (2 * yo) * W
        t00 = buf_ref[:, base:base + W]                    # m[2yo  , x    ]
        t01 = buf_ref[:, base + 1:base + 1 + W]            # m[2yo  , x + 1]
        t10 = buf_ref[:, base + W:base + 2 * W]            # m[2yo+1, x    ]
        t11 = buf_ref[:, base + W + 1:base + 2 * W + 1]    # m[2yo+1, x + 1]
        wrow = jnp.maximum(jnp.maximum(t00, t01), jnp.maximum(t10, t11))
        prow = jnp.dot(wrow, sel_even, preferred_element_type=jnp.float32)
        pool_ref[0, :, yo * WO:(yo + 1) * WO] = prow.astype(pool_ref.dtype)
    # TODO(synk): at small H, W the pooled minor dim (HO*WO < 128) still ends
    # in masked partial stores; production HO*WO >= 128 is lane-dense already.


# ----------------------------- module forward -------------------------------
def generator_encoder_forward(x_nchw, params):
    """Semantics of GeneratorEncoder(in_channel, dropout=-1).forward(x).

    Accepts and returns NCHW tensors; returns (x_mid, y_pooled).
    """
    N, C, H, W = x_nchw.shape
    assert H % 2 == 0 and W % 2 == 0, "MaxPool2d(2,2) path assumes even H, W"
    HW, HO, WO = H * W, H // 2, W // 2
    PAD = max(_LANE, ((W + 1 + _LANE - 1) // _LANE) * _LANE)  # lane-aligned pad

    x3 = x_nchw.reshape(N, C, HW)                 # pure reshape, no transpose

    def prep_w(w):                                # (Cout,Cin,3,3) -> (Cout,9*Cin)
        return jnp.transpose(w, (0, 2, 3, 1)).reshape(C, 9 * C)

    w1, w2, w3 = prep_w(params["w1"]), prep_w(params["w2"]), prep_w(params["w3"])
    b1, b2, b3 = (params[k].reshape(C, 1) for k in ("b1", "b2", "b3"))

    kernel = functools.partial(_gen_enc_kernel, C=C, H=H, W=W, PAD=PAD)
    per_n = lambda n: (n, 0, 0)
    whole = lambda n: (0, 0)

    xmid, pooled = pl.pallas_call(
        kernel,
        out_shape=(jax.ShapeDtypeStruct((N, C, HW), x_nchw.dtype),
                   jax.ShapeDtypeStruct((N, C, HO * WO), x_nchw.dtype)),
        grid=(N,),
        in_specs=[
            pl.BlockSpec((1, C, HW), per_n),                               # x
            pl.BlockSpec((C, 9 * C), whole), pl.BlockSpec((C, 1), whole),  # conv1
            pl.BlockSpec((C, 9 * C), whole), pl.BlockSpec((C, 1), whole),  # conv2
            pl.BlockSpec((C, 9 * C), whole), pl.BlockSpec((C, 1), whole),  # conv3
        ],
        out_specs=(pl.BlockSpec((1, C, HW), per_n),
                   pl.BlockSpec((1, C, HO * WO), per_n)),
        scratch_shapes=[pltpu.VMEM((C, HW + 2 * PAD), jnp.float32)],
        compiler_params=pltpu.CompilerParams(dimension_semantics=("parallel",)),
        # TODO(synk): for production-scale C/H/W, row-tile H into halo'd strips
        # (per-generation strip size) and set vmem_limit_bytes so the
        # double-buffered blocks fit v7x's 64 MiB VMEM (128 MiB on v5e/v6e).
    )(x3, w1, b1, w2, b2, w3, b3)

    return xmid.reshape(N, C, H, W), pooled.reshape(N, C, HO, WO)


# ---------------------------- pure-JAX reference -----------------------------
def _conv_ref(x_nhwc, w_oihw, b):
    return jax.lax.conv_general_dilated(
        x_nhwc, jnp.transpose(w_oihw, (2, 3, 1, 0)),
        window_strides=(1, 1), padding="SAME",
        dimension_numbers=("NHWC", "HWIO", "NHWC")) + b[None, None, None, :]


def _reference(x_nchw, params):
    x = jnp.transpose(x_nchw, (0, 2, 3, 1))
    h = jnp.maximum(_conv_ref(x, params["w1"], params["b1"]), 0.0)
    y = _conv_ref(h, params["w2"], params["b2"])
    r = jnp.maximum(x + y, 0.0)
    m = jnp.maximum(_conv_ref(r, params["w3"], params["b3"]), 0.0)
    N, H, W, C = m.shape
    p = m.reshape(N, H // 2, 2, W // 2, 2, C).max(axis=(2, 4))
    return jnp.transpose(m, (0, 3, 1, 2)), jnp.transpose(p, (0, 3, 1, 2))


# ----------------------------------- main ------------------------------------
if __name__ == "__main__":
    N, C, H, W = 2, 4, 16, 16

    key = jax.random.PRNGKey(0)
    kx, k1, k2, k3, k4, k5, k6 = jax.random.split(key, 7)
    x = jax.random.normal(kx, (N, C, H, W), jnp.float32)
    params = {
        "w1": 0.1 * jax.random.normal(k1, (C, C, 3, 3), jnp.float32),
        "b1": 0.1 * jax.random.normal(k2, (C,), jnp.float32),
        "w2": 0.1 * jax.random.normal(k3, (C, C, 3, 3), jnp.float32),
        "b2": 0.1 * jax.random.normal(k4, (C,), jnp.float32),
        "w3": 0.1 * jax.random.normal(k5, (C, C, 3, 3), jnp.float32),
        "b3": 0.1 * jax.random.normal(k6, (C,), jnp.float32),
    }

    fwd = jax.jit(generator_encoder_forward)
    x_mid, y_pool = fwd(x, params)
    jax.block_until_ready((x_mid, y_pool))

    x_ref, y_ref = _reference(x, params)
    assert x_mid.shape == (N, C, H, W) and y_pool.shape == (N, C, H // 2, W // 2)
    np.testing.assert_allclose(np.asarray(x_mid), np.asarray(x_ref), atol=1e-4, rtol=1e-4)
    np.testing.assert_allclose(np.asarray(y_pool), np.asarray(y_ref), atol=1e-4, rtol=1e-4)

    print("KERNEL_OK")
</pallas_src>

<mosaic_0001>
module attributes {stable_mosaic.version = 11 : i64} {
  func.func @_gen_enc_kernel(%arg0: i32, %arg1: memref<1x4x256xf32, #tpu.memory_space<vmem>>, %arg2: memref<4x36xf32, #tpu.memory_space<vmem>>, %arg3: memref<4x1xf32, #tpu.memory_space<vmem>>, %arg4: memref<4x36xf32, #tpu.memory_space<vmem>>, %arg5: memref<4x1xf32, #tpu.memory_space<vmem>>, %arg6: memref<4x36xf32, #tpu.memory_space<vmem>>, %arg7: memref<4x1xf32, #tpu.memory_space<vmem>>, %arg8: memref<1x4x256xf32, #tpu.memory_space<vmem>>, %arg9: memref<1x4x64xf32, #tpu.memory_space<vmem>>, %arg10: memref<4x512xf32, #tpu.memory_space<vmem>>) attributes {dimension_semantics = [#tpu.dimension_semantics<parallel>], iteration_bounds = array<i64: 2>, scalar_prefetch = 0 : i64, scratch_operands = 1 : i64, tpu.core_type = #tpu.core_type<tc>, window_params = [{transform_indices = @transform_0, window_bounds = array<i64: 1, 4, 256>}, {pipeline_mode = #tpu.pipeline_mode<synchronous>, transform_indices = @transform_1, window_bounds = array<i64: 4, 36>}, {pipeline_mode = #tpu.pipeline_mode<synchronous>, transform_indices = @transform_2, window_bounds = array<i64: 4, 1>}, {pipeline_mode = #tpu.pipeline_mode<synchronous>, transform_indices = @transform_3, window_bounds = array<i64: 4, 36>}, {pipeline_mode = #tpu.pipeline_mode<synchronous>, transform_indices = @transform_4, window_bounds = array<i64: 4, 1>}, {pipeline_mode = #tpu.pipeline_mode<synchronous>, transform_indices = @transform_5, window_bounds = array<i64: 4, 36>}, {pipeline_mode = #tpu.pipeline_mode<synchronous>, transform_indices = @transform_6, window_bounds = array<i64: 4, 1>}, {transform_indices = @transform_7, window_bounds = array<i64: 1, 4, 256>}, {transform_indices = @transform_8, window_bounds = array<i64: 1, 4, 64>}]} {
    %cst = arith.constant 0.000000e+00 : f32
    %0 = vector.broadcast %cst : f32 to vector<4x128xf32>
    %c0 = arith.constant 0 : index
    %c0_0 = arith.constant 0 : index
    %1 = vector.load %arg10[%c0, %c0_0] : memref<4x512xf32, #tpu.memory_space<vmem>>, vector<4x128xf32>
    tpu.vector_store %arg10[%c0, %c0_0], %0 {strides = array<i32>} : memref<4x512xf32, #tpu.memory_space<vmem>>, vector<4x128xf32>,
    %cst_1 = arith.constant 0.000000e+00 : f32
    %2 = vector.broadcast %cst_1 : f32 to vector<4x128xf32>
    %c0_2 = arith.constant 0 : index
    %c384 = arith.constant 384 : index
    %3 = vector.load %arg10[%c0_2, %c384] : memref<4x512xf32, #tpu.memory_space<vmem>>, vector<4x128xf32>
    tpu.vector_store %arg10[%c0_2, %c384], %2 {strides = array<i32>} : memref<4x512xf32, #tpu.memory_space<vmem>>, vector<4x128xf32>,
    %c0_3 = arith.constant 0 : index
    %c0_4 = arith.constant 0 : index
    %4 = vector.load %arg2[%c0_3, %c0_4] : memref<4x36xf32, #tpu.memory_space<vmem>>, vector<4x36xf32>
    %c0_5 = arith.constant 0 : index
    %c0_6 = arith.constant 0 : index
    %5 = vector.load %arg4[%c0_5, %c0_6] : memref<4x36xf32, #tpu.memory_space<vmem>>, vector<4x36xf32>
    %c0_7 = arith.constant 0 : index
    %c0_8 = arith.constant 0 : index
    %6 = vector.load %arg6[%c0_7, %c0_8] : memref<4x36xf32, #tpu.memory_space<vmem>>, vector<4x36xf32>
    %c0_9 = arith.constant 0 : index
    %c0_10 = arith.constant 0 : index
    %7 = vector.load %arg3[%c0_9, %c0_10] : memref<4x1xf32, #tpu.memory_space<vmem>>, vector<4x1xf32>
    %c0_11 = arith.constant 0 : index
    %c0_12 = arith.constant 0 : index
    %8 = vector.load %arg5[%c0_11, %c0_12] : memref<4x1xf32, #tpu.memory_space<vmem>>, vector<4x1xf32>
    %c0_13 = arith.constant 0 : index
    %c0_14 = arith.constant 0 : index
    %9 = vector.load %arg7[%c0_13, %c0_14] : memref<4x1xf32, #tpu.memory_space<vmem>>, vector<4x1xf32>
    %c0_15 = arith.constant 0 : index
    %c0_16 = arith.constant 0 : index
    %c0_17 = arith.constant 0 : index
    %10 = vector.load %arg1[%c0_15, %c0_16, %c0_17] : memref<1x4x256xf32, #tpu.memory_space<vmem>>, vector<1x4x256xf32>
    %11 = vector.shape_cast %10 : vector<1x4x256xf32> to vector<4x256xf32>
    %12 = tpu.iota {dimensions = array<i32: 1>} : vector<1x256xi32>
    %c16_i32 = arith.constant 16 : i32
    %c0_i32 = arith.constant 0 : i32
    %13 = arith.cmpi eq, %c16_i32, %c0_i32 : i32
    %c1_i32 = arith.constant 1 : i32
    %14 = arith.select %13, %c1_i32, %c16_i32 : i32
    %15 = vector.broadcast %14 : i32 to vector<1x256xi32>
    %16 = arith.remsi %12, %15 : vector<1x256xi32>
    %c0_i32_18 = arith.constant 0 : i32
    %17 = vector.broadcast %c0_i32_18 : i32 to vector<1x256xi32>
    %18 = arith.cmpi ne, %16, %17 : vector<1x256xi32>
    %c0_i32_19 = arith.constant 0 : i32
    %19 = vector.broadcast %c0_i32_19 : i32 to vector<1x256xi32>
    %20 = arith.cmpi slt, %16, %19 : vector<1x256xi32>
    %c0_i32_20 = arith.constant 0 : i32
    %21 = arith.cmpi slt, %14, %c0_i32_20 : i32
    %22 = vector.broadcast %21 : i1 to vector<1x256xi1>
    %23 = vector.broadcast %22 : vector<1x256xi1> to vector<1x256xi1>
    %24 = arith.xori %20, %23 : vector<1x256xi1>
    %25 = arith.andi %24, %18 : vector<1x256xi1>
    %26 = vector.broadcast %14 : i32 to vector<1x256xi32>
    %27 = arith.addi %16, %26 : vector<1x256xi32>
    %28 = arith.select %25, %27, %16 : vector<1x256xi1>, vector<1x256xi32>
    %c1_i32_21 = arith.constant 1 : i32
    %29 = vector.broadcast %c1_i32_21 : i32 to vector<1x256xi32>
    %30 = arith.cmpi sge, %28, %29 : vector<1x256xi32>
    %c14_i32 = arith.constant 14 : i32
    %31 = vector.broadcast %c14_i32 : i32 to vector<1x256xi32>
    %32 = arith.cmpi sle, %28, %31 : vector<1x256xi32>
    %c0_22 = arith.constant 0 : index
    %c128 = arith.constant 128 : index
    %33 = vector.load %arg10[%c0_22, %c128] : memref<4x512xf32, #tpu.memory_space<vmem>>, vector<4x256xf32>
    tpu.vector_store %arg10[%c0_22, %c128], %11 {strides = array<i32>} : memref<4x512xf32, #tpu.memory_space<vmem>>, vector<4x256xf32>,
    %c0_23 = arith.constant 0 : index
    %c111 = arith.constant 111 : index
    %34 = vector.load %arg10[%c0_23, %c111] : memref<4x512xf32, #tpu.memory_space<vmem>>, vector<4x256xf32>
    %35 = vector.extract_strided_slice %4 {offsets = [0, 0], sizes = [4, 1], strides = [1, 1]} : vector<4x36xf32> to vector<4x1xf32>
    %36 = vector.extract_strided_slice %34 {offsets = [0, 0], sizes = [1, 256], strides = [1, 1]} : vector<4x256xf32> to vector<1x256xf32>
    %37 = vector.broadcast %35 : vector<4x1xf32> to vector<4x256xf32>
    %38 = vector.broadcast %36 : vector<1x256xf32> to vector<4x256xf32>
    %39 = arith.mulf %37, %38 : vector<4x256xf32>
    %40 = vector.extract_strided_slice %4 {offsets = [0, 1], sizes = [4, 1], strides = [1, 1]} : vector<4x36xf32> to vector<4x1xf32>
    %41 = vector.extract_strided_slice %34 {offsets = [1, 0], sizes = [1, 256], strides = [1, 1]} : vector<4x256xf32> to vector<1x256xf32>
    %42 = vector.broadcast %40 : vector<4x1xf32> to vector<4x256xf32>
    %43 = vector.broadcast %41 : vector<1x256xf32> to vector<4x256xf32>
    %44 = arith.mulf %42, %43 : vector<4x256xf32>
    %45 = arith.addf %39, %44 : vector<4x256xf32>
    %46 = vector.extract_strided_slice %4 {offsets = [0, 2], sizes = [4, 1], strides = [1, 1]} : vector<4x36xf32> to vector<4x1xf32>
    %47 = vector.extract_strided_slice %34 {offsets = [2, 0], sizes = [1, 256], strides = [1, 1]} : vector<4x256xf32> to vector<1x256xf32>
    %48 = vector.broadcast %46 : vector<4x1xf32> to vector<4x256xf32>
    %49 = vector.broadcast %47 : vector<1x256xf32> to vector<4x256xf32>
    %50 = arith.mulf %48, %49 : vector<4x256xf32>
    %51 = arith.addf %45, %50 : vector<4x256xf32>
    %52 = vector.extract_strided_slice %4 {offsets = [0, 3], sizes = [4, 1], strides = [1, 1]} : vector<4x36xf32> to vector<4x1xf32>
    %53 = vector.extract_strided_slice %34 {offsets = [3, 0], sizes = [1, 256], strides = [1, 1]} : vector<4x256xf32> to vector<1x256xf32>
    %54 = vector.broadcast %52 : vector<4x1xf32> to vector<4x256xf32>
    %55 = vector.broadcast %53 : vector<1x256xf32> to vector<4x256xf32>
    %56 = arith.mulf %54, %55 : vector<4x256xf32>
    %57 = arith.addf %51, %56 : vector<4x256xf32>
    %cst_24 = arith.constant 0.000000e+00 : f32
    %58 = vector.shape_cast %30 : vector<1x256xi1> to vector<1x256xi1>
    %59 = vector.broadcast %58 : vector<1x256xi1> to vector<4x256xi1>
    %60 = vector.broadcast %cst_24 : f32 to vector<4x256xf32>
    %61 = arith.select %59, %57, %60 : vector<4x256xi1>, vector<4x256xf32>
    %c0_25 = arith.constant 0 : index
    %c112 = arith.constant 112 : index
    %62 = vector.load %arg10[%c0_25, %c112] : memref<4x512xf32, #tpu.memory_space<vmem>>, vector<4x256xf32>
    %63 = vector.extract_strided_slice %4 {offsets = [0, 4], sizes = [4, 1], strides = [1, 1]} : vector<4x36xf32> to vector<4x1xf32>
    %64 = vector.extract_strided_slice %62 {offsets = [0, 0], sizes = [1, 256], strides = [1, 1]} : vector<4x256xf32> to vector<1x256xf32>
    %65 = vector.broadcast %63 : vector<4x1xf32> to vector<4x256xf32>
    %66 = vector.broadcast %64 : vector<1x256xf32> to vector<4x256xf32>
    %67 = arith.mulf %65, %66 : vector<4x256xf32>
    %68 = vector.extract_strided_slice %4 {offsets = [0, 5], sizes = [4, 1], strides = [1, 1]} : vector<4x36xf32> to vector<4x1xf32>
    %69 = vector.extract_strided_slice %62 {offsets = [1, 0], sizes = [1, 256], strides = [1, 1]} : vector<4x256xf32> to vector<1x256xf32>
    %70 = vector.broadcast %68 : vector<4x1xf32> to vector<4x256xf32>
    %71 = vector.broadcast %69 : vector<1x256xf32> to vector<4x256xf32>
    %72 = arith.mulf %70, %71 : vector<4x256xf32>
    %73 = arith.addf %67, %72 : vector<4x256xf32>
    %74 = vector.extract_strided_slice %4 {offsets = [0, 6], sizes = [4, 1], strides = [1, 1]} : vector<4x36xf32> to vector<4x1xf32>
    %75 = vector.extract_strided_slice %62 {offsets = [2, 0], sizes = [1, 256], strides = [1, 1]} : vector<4x256xf32> to vector<1x256xf32>
    %76 = vector.broadcast %74 : vector<4x1xf32> to vector<4x256xf32>
    %77 = vector.broadcast %75 : vector<1x256xf32> to vector<4x256xf32>
    %78 = arith.mulf %76, %77 : vector<4x256xf32>
    %79 = arith.addf %73, %78 : vector<4x256xf32>
    %80 = vector.extract_strided_slice %4 {offsets = [0, 7], sizes = [4, 1], strides = [1, 1]} : vector<4x36xf32> to vector<4x1xf32>
    %81 = vector.extract_strided_slice %62 {offsets = [3, 0], sizes = [1, 256], strides = [1, 1]} : vector<4x256xf32> to vector<1x256xf32>
    %82 = vector.broadcast %80 : vector<4x1xf32> to vector<4x256xf32>
    %83 = vector.broadcast %81 : vector<1x256xf32> to vector<4x256xf32>
    %84 = arith.mulf %82, %83 : vector<4x256xf32>
    %85 = arith.addf %79, %84 : vector<4x256xf32>
    %86 = arith.addf %61, %85 : vector<4x256xf32>
    %c0_26 = arith.constant 0 : index
    %c113 = arith.constant 113 : index
    %87 = vector.load %arg10[%c0_26, %c113] : memref<4x512xf32, #tpu.memory_space<vmem>>, vector<4x256xf32>
    %88 = vector.extract_strided_slice %4 {offsets = [0, 8], sizes = [4, 1], strides = [1, 1]} : vector<4x36xf32> to vector<4x1xf32>
    %89 = vector.extract_strided_slice %87 {offsets = [0, 0], sizes = [1, 256], strides = [1, 1]} : vector<4x256xf32> to vector<1x256xf32>
    %90 = vector.broadcast %88 : vector<4x1xf32> to vector<4x256xf32>
    %91 = vector.broadcast %89 : vector<1x256xf32> to vector<4x256xf32>
    %92 = arith.mulf %90, %91 : vector<4x256xf32>
    %93 = vector.extract_strided_slice %4 {offsets = [0, 9], sizes = [4, 1], strides = [1, 1]} : vector<4x36xf32> to vector<4x1xf32>
    %94 = vector.extract_strided_slice %87 {offsets = [1, 0], sizes = [1, 256], strides = [1, 1]} : vector<4x256xf32> to vector<1x256xf32>
    %95 = vector.broadcast %93 : vector<4x1xf32> to vector<4x256xf32>
    %96 = vector.broadcast %94 : vector<1x256xf32> to vector<4x256xf32>
    %97 = arith.mulf %95, %96 : vector<4x256xf32>
    %98 = arith.addf %92, %97 : vector<4x256xf32>
    %99 = vector.extract_strided_slice %4 {offsets = [0, 10], sizes = [4, 1], strides = [1, 1]} : vector<4x36xf32> to vector<4x1xf32>
    %100 = vector.extract_strided_slice %87 {offsets = [2, 0], sizes = [1, 256], strides = [1, 1]} : vector<4x256xf32> to vector<1x256xf32>
    %101 = vector.broadcast %99 : vector<4x1xf32> to vector<4x256xf32>
    %102 = vector.broadcast %100 : vector<1x256xf32> to vector<4x256xf32>
    %103 = arith.mulf %101, %102 : vector<4x256xf32>
    %104 = arith.addf %98, %103 : vector<4x256xf32>
    %105 = vector.extract_strided_slice %4 {offsets = [0, 11], sizes = [4, 1], strides = [1, 1]} : vector<4x36xf32> to vector<4x1xf32>
    %106 = vector.extract_strided_slice %87 {offsets = [3, 0], sizes = [1, 256], strides = [1, 1]} : vector<4x256xf32> to vector<1x256xf32>
    %107 = vector.broadcast %105 : vector<4x1xf32> to vector<4x256xf32>
    %108 = vector.broadcast %106 : vector<1x256xf32> to vector<4x256xf32>
    %109 = arith.mulf %107, %108 : vector<4x256xf32>
    %110 = arith.addf %104, %109 : vector<4x256xf32>
    %cst_27 = arith.constant 0.000000e+00 : f32
    %111 = vector.shape_cast %32 : vector<1x256xi1> to vector<1x256xi1>
    %112 = vector.broadcast %111 : vector<1x256xi1> to vector<4x256xi1>
    %113 = vector.broadcast %cst_27 : f32 to vector<4x256xf32>
    %114 = arith.select %112, %110, %113 : vector<4x256xi1>, vector<4x256xf32>
    %115 = arith.addf %86, %114 : vector<4x256xf32>
    %c0_28 = arith.constant 0 : index
    %c127 = arith.constant 127 : index
    %116 = vector.load %arg10[%c0_28, %c127] : memref<4x512xf32, #tpu.memory_space<vmem>>, vector<4x256xf32>
    %117 = vector.extract_strided_slice %4 {offsets = [0, 12], sizes = [4, 1], strides = [1, 1]} : vector<4x36xf32> to vector<4x1xf32>
    %118 = vector.extract_strided_slice %116 {offsets = [0, 0], sizes = [1, 256], strides = [1, 1]} : vector<4x256xf32> to vector<1x256xf32>
    %119 = vector.broadcast %117 : vector<4x1xf32> to vector<4x256xf32>
    %120 = vector.broadcast %118 : vector<1x256xf32> to vector<4x256xf32>
    %121 = arith.mulf %119, %120 : vector<4x256xf32>
    %122 = vector.extract_strided_slice %4 {offsets = [0, 13], sizes = [4, 1], strides = [1, 1]} : vector<4x36xf32> to vector<4x1xf32>
    %123 = vector.extract_strided_slice %116 {offsets = [1, 0], sizes = [1, 256], strides = [1, 1]} : vector<4x256xf32> to vector<1x256xf32>
    %124 = vector.broadcast %122 : vector<4x1xf32> to vector<4x256xf32>
    %125 = vector.broadcast %123 : vector<1x256xf32> to vector<4x256xf32>
    %126 = arith.mulf %124, %125 : vector<4x256xf32>
    %127 = arith.addf %121, %126 : vector<4x256xf32>
    %128 = vector.extract_strided_slice %4 {offsets = [0, 14], sizes = [4, 1], strides = [1, 1]} : vector<4x36xf32> to vector<4x1xf32>
    %129 = vector.extract_strided_slice %116 {offsets = [2, 0], sizes = [1, 256], strides = [1, 1]} : vector<4x256xf32> to vector<1x256xf32>
    %130 = vector.broadcast %128 : vector<4x1xf32> to vector<4x256xf32>
    %131 = vector.broadcast %129 : vector<1x256xf32> to vector<4x256xf32>
    %132 = arith.mulf %130, %131 : vector<4x256xf32>
    %133 = arith.addf %127, %132 : vector<4x256xf32>
    %134 = vector.extract_strided_slice %4 {offsets = [0, 15], sizes = [4, 1], strides = [1, 1]} : vector<4x36xf32> to vector<4x1xf32>
    %135 = vector.extract_strided_slice %116 {offsets = [3, 0], sizes = [1, 256], strides = [1, 1]} : vector<4x256xf32> to vector<1x256xf32>
    %136 = vector.broadcast %134 : vector<4x1xf32> to vector<4x256xf32>
    %137 = vector.broadcast %135 : vector<1x256xf32> to vector<4x256xf32>
    %138 = arith.mulf %136, %137 : vector<4x256xf32>
    %139 = arith.addf %133, %138 : vector<4x256xf32>
    %cst_29 = arith.constant 0.000000e+00 : f32
    %140 = vector.shape_cast %30 : vector<1x256xi1> to vector<1x256xi1>
    %141 = vector.broadcast %140 : vector<1x256xi1> to vector<4x256xi1>
    %142 = vector.broadcast %cst_29 : f32 to vector<4x256xf32>
    %143 = arith.select %141, %139, %142 : vector<4x256xi1>, vector<4x256xf32>
    %144 = arith.addf %115, %143 : vector<4x256xf32>
    %c0_30 = arith.constant 0 : index
    %c128_31 = arith.constant 128 : index
    %145 = vector.load %arg10[%c0_30, %c128_31] : memref<4x512xf32, #tpu.memory_space<vmem>>, vector<4x256xf32>
    %146 = vector.extract_strided_slice %4 {offsets = [0, 16], sizes = [4, 1], strides = [1, 1]} : vector<4x36xf32> to vector<4x1xf32>
    %147 = vector.extract_strided_slice %145 {offsets = [0, 0], sizes = [1, 256], strides = [1, 1]} : vector<4x256xf32> to vector<1x256xf32>
    %148 = vector.broadcast %146 : vector<4x1xf32> to vector<4x256xf32>
    %149 = vector.broadcast %147 : vector<1x256xf32> to vector<4x256xf32>
    %150 = arith.mulf %148, %149 : vector<4x256xf32>
    %151 = vector.extract_strided_slice %4 {offsets = [0, 17], sizes = [4, 1], strides = [1, 1]} : vector<4x36xf32> to vector<4x1xf32>
    %152 = vector.extract_strided_slice %145 {offsets = [1, 0], sizes = [1, 256], strides = [1, 1]} : vector<4x256xf32> to vector<1x256xf32>
    %153 = vector.broadcast %151 : vector<4x1xf32> to vector<4x256xf32>
    %154 = vector.broadcast %152 : vector<1x256xf32> to vector<4x256xf32>
    %155 = arith.mulf %153, %154 : vector<4x256xf32>
    %156 = arith.addf %150, %155 : vector<4x256xf32>
    %157 = vector.extract_strided_slice %4 {offsets = [0, 18], sizes = [4, 1], strides = [1, 1]} : vector<4x36xf32> to vector<4x1xf32>
    %158 = vector.extract_strided_slice %145 {offsets = [2, 0], sizes = [1, 256], strides = [1, 1]} : vector<4x256xf32> to vector<1x256xf32>
    %159 = vector.broadcast %157 : vector<4x1xf32> to vector<4x256xf32>
    %160 = vector.broadcast %158 : vector<1x256xf32> to vector<4x256xf32>
    %161 = arith.mulf %159, %160 : vector<4x256xf32>
    %162 = arith.addf %156, %161 : vector<4x256xf32>
    %163 = vector.extract_strided_slice %4 {offsets = [0, 19], sizes = [4, 1], strides = [1, 1]} : vector<4x36xf32> to vector<4x1xf32>
    %164 = vector.extract_strided_slice %145 {offsets = [3, 0], sizes = [1, 256], strides = [1, 1]} : vector<4x256xf32> to vector<1x256xf32>
    %165 = vector.broadcast %163 : vector<4x1xf32> to vector<4x256xf32>
    %166 = vector.broadcast %164 : vector<1x256xf32> to vector<4x256xf32>
    %167 = arith.mulf %165, %166 : vector<4x256xf32>
    %168 = arith.addf %162, %167 : vector<4x256xf32>
    %169 = arith.addf %144, %168 : vector<4x256xf32>
    %c0_32 = arith.constant 0 : index
    %c129 = arith.constant 129 : index
    %170 = vector.load %arg10[%c0_32, %c129] : memref<4x512xf32, #tpu.memory_space<vmem>>, vector<4x256xf32>
    %171 = vector.extract_strided_slice %4 {offsets = [0, 20], sizes = [4, 1], strides = [1, 1]} : vector<4x36xf32> to vector<4x1xf32>
    %172 = vector.extract_strided_slice %170 {offsets = [0, 0], sizes = [1, 256], strides = [1, 1]} : vector<4x256xf32> to vector<1x256xf32>
    %173 = vector.broadcast %171 : vector<4x1xf32> to vector<4x256xf32>
    %174 = vector.broadcast %172 : vector<1x256xf32> to vector<4x256xf32>
    %175 = arith.mulf %173, %174 : vector<4x256xf32>
    %176 = vector.extract_strided_slice %4 {offsets = [0, 21], sizes = [4, 1], strides = [1, 1]} : vector<4x36xf32> to vector<4x1xf32>
    %177 = vector.extract_strided_slice %170 {offsets = [1, 0], sizes = [1, 256], strides = [1, 1]} : vector<4x256xf32> to vector<1x256xf32>
    %178 = vector.broadcast %176 : vector<4x1xf32> to vector<4x256xf32>
    %179 = vector.broadcast %177 : vector<1x256xf32> to vector<4x256xf32>
    %180 = arith.mulf %178, %179 : vector<4x256xf32>
    %181 = arith.addf %175, %180 : vector<4x256xf32>
    %182 = vector.extract_strided_slice %4 {offsets = [0, 22], sizes = [4, 1], strides = [1, 1]} : vector<4x36xf32> to vector<4x1xf32>
    %183 = vector.extract_strided_slice %170 {offsets = [2, 0], sizes = [1, 256], strides = [1, 1]} : vector<4x256xf32> to vector<1x256xf32>
    %184 = vector.broadcast %182 : vector<4x1xf32> to vector<4x256xf32>
    %185 = vector.broadcast %183 : vector<1x256xf32> to vector<4x256xf32>
    %186 = arith.mulf %184, %185 : vector<4x256xf32>
    %187 = arith.addf %181, %186 : vector<4x256xf32>
    %188 = vector.extract_strided_slice %4 {offsets = [0, 23], sizes = [4, 1], strides = [1, 1]} : vector<4x36xf32> to vector<4x1xf32>
    %189 = vector.extract_strided_slice %170 {offsets = [3, 0], sizes = [1, 256], strides = [1, 1]} : vector<4x256xf32> to vector<1x256xf32>
    %190 = vector.broadcast %188 : vector<4x1xf32> to vector<4x256xf32>
    %191 = vector.broadcast %189 : vector<1x256xf32> to vector<4x256xf32>
    %192 = arith.mulf %190, %191 : vector<4x256xf32>
    %193 = arith.addf %187, %192 : vector<4x256xf32>
    %cst_33 = arith.constant 0.000000e+00 : f32
    %194 = vector.shape_cast %32 : vector<1x256xi1> to vector<1x256xi1>
    %195 = vector.broadcast %194 : vector<1x256xi1> to vector<4x256xi1>
    %196 = vector.broadcast %cst_33 : f32 to vector<4x256xf32>
    %197 = arith.select %195, %193, %196 : vector<4x256xi1>, vector<4x256xf32>
    %198 = arith.addf %169, %197 : vector<4x256xf32>
    %c0_34 = arith.constant 0 : index
    %c143 = arith.constant 143 : index
    %199 = vector.load %arg10[%c0_34, %c143] : memref<4x512xf32, #tpu.memory_space<vmem>>, vector<4x256xf32>
    %200 = vector.extract_strided_slice %4 {offsets = [0, 24], sizes = [4, 1], strides = [1, 1]} : vector<4x36xf32> to vector<4x1xf32>
    %201 = vector.extract_strided_slice %199 {offsets = [0, 0], sizes = [1, 256], strides = [1, 1]} : vector<4x256xf32> to vector<1x256xf32>
    %202 = vector.broadcast %200 : vector<4x1xf32> to vector<4x256xf32>
    %203 = vector.broadcast %201 : vector<1x256xf32> to vector<4x256xf32>
    %204 = arith.mulf %202, %203 : vector<4x256xf32>
    %205 = vector.extract_strided_slice %4 {offsets = [0, 25], sizes = [4, 1], strides = [1, 1]} : vector<4x36xf32> to vector<4x1xf32>
    %206 = vector.extract_strided_slice %199 {offsets = [1, 0], sizes = [1, 256], strides = [1, 1]} : vector<4x256xf32> to vector<1x256xf32>
    %207 = vector.broadcast %205 : vector<4x1xf32> to vector<4x256xf32>
    %208 = vector.broadcast %206 : vector<1x256xf32> to vector<4x256xf32>
    %209 = arith.mulf %207, %208 : vector<4x256xf32>
    %210 = arith.addf %204, %209 : vector<4x256xf32>
    %211 = vector.extract_strided_slice %4 {offsets = [0, 26], sizes = [4, 1], strides = [1, 1]} : vector<4x36xf32> to vector<4x1xf32>
    %212 = vector.extract_strided_slice %199 {offsets = [2, 0], sizes = [1, 256], strides = [1, 1]} : vector<4x256xf32> to vector<1x256xf32>
    %213 = vector.broadcast %211 : vector<4x1xf32> to vector<4x256xf32>
    %214 = vector.broadcast %212 : vector<1x256xf32> to vector<4x256xf32>
    %215 = arith.mulf %213, %214 : vector<4x256xf32>
    %216 = arith.addf %210, %215 : vector<4x256xf32>
    %217 = vector.extract_strided_slice %4 {offsets = [0, 27], sizes = [4, 1], strides = [1, 1]} : vector<4x36xf32> to vector<4x1xf32>
    %218 = vector.extract_strided_slice %199 {offsets = [3, 0], sizes = [1, 256], strides = [1, 1]} : vector<4x256xf32> to vector<1x256xf32>
    %219 = vector.broadcast %217 : vector<4x1xf32> to vector<4x256xf32>
    %220 = vector.broadcast %218 : vector<1x256xf32> to vector<4x256xf32>
    %221 = arith.mulf %219, %220 : vector<4x256xf32>
    %222 = arith.addf %216, %221 : vector<4x256xf32>
    %cst_35 = arith.constant 0.000000e+00 : f32
    %223 = vector.shape_cast %30 : vector<1x256xi1> to vector<1x256xi1>
    %224 = vector.broadcast %223 : vector<1x256xi1> to vector<4x256xi1>
    %225 = vector.broadcast %cst_35 : f32 to vector<4x256xf32>
    %226 = arith.select %224, %222, %225 : vector<4x256xi1>, vector<4x256xf32>
    %227 = arith.addf %198, %226 : vector<4x256xf32>
    %c0_36 = arith.constant 0 : index
    %c144 = arith.constant 144 : index
    %228 = vector.load %arg10[%c0_36, %c144] : memref<4x512xf32, #tpu.memory_space<vmem>>, vector<4x256xf32>
    %229 = vector.extract_strided_slice %4 {offsets = [0, 28], sizes = [4, 1], strides = [1, 1]} : vector<4x36xf32> to vector<4x1xf32>
    %230 = vector.extract_strided_slice %228 {offsets = [0, 0], sizes = [1, 256], strides = [1, 1]} : vector<4x256xf32> to vector<1x256xf32>
    %231 = vector.broadcast %229 : vector<4x1xf32> to vector<4x256xf32>
    %232 = vector.broadcast %230 : vector<1x256xf32> to vector<4x256xf32>
    %233 = arith.mulf %231, %232 : vector<4x256xf32>
    %234 = vector.extract_strided_slice %4 {offsets = [0, 29], sizes = [4, 1], strides = [1, 1]} : vector<4x36xf32> to vector<4x1xf32>
    %235 = vector.extract_strided_slice %228 {offsets = [1, 0], sizes = [1, 256], strides = [1, 1]} : vector<4x256xf32> to vector<1x256xf32>
    %236 = vector.broadcast %234 : vector<4x1xf32> to vector<4x256xf32>
    %237 = vector.broadcast %235 : vector<1x256xf32> to vector<4x256xf32>
    %238 = arith.mulf %236, %237 : vector<4x256xf32>
    %239 = arith.addf %233, %238 : vector<4x256xf32>
    %240 = vector.extract_strided_slice %4 {offsets = [0, 30], sizes = [4, 1], strides = [1, 1]} : vector<4x36xf32> to vector<4x1xf32>
    %241 = vector.extract_strided_slice %228 {offsets = [2, 0], sizes = [1, 256], strides = [1, 1]} : vector<4x256xf32> to vector<1x256xf32>
    %242 = vector.broadcast %240 : vector<4x1xf32> to vector<4x256xf32>
    %243 = vector.broadcast %241 : vector<1x256xf32> to vector<4x256xf32>
    %244 = arith.mulf %242, %243 : vector<4x256xf32>
    %245 = arith.addf %239, %244 : vector<4x256xf32>
    %246 = vector.extract_strided_slice %4 {offsets = [0, 31], sizes = [4, 1], strides = [1, 1]} : vector<4x36xf32> to vector<4x1xf32>
    %247 = vector.extract_strided_slice %228 {offsets = [3, 0], sizes = [1, 256], strides = [1, 1]} : vector<4x256xf32> to vector<1x256xf32>
    %248 = vector.broadcast %246 : vector<4x1xf32> to vector<4x256xf32>
    %249 = vector.broadcast %247 : vector<1x256xf32> to vector<4x256xf32>
    %250 = arith.mulf %248, %249 : vector<4x256xf32>
    %251 = arith.addf %245, %250 : vector<4x256xf32>
    %252 = arith.addf %227, %251 : vector<4x256xf32>
    %c0_37 = arith.constant 0 : index
    %c145 = arith.constant 145 : index
    %253 = vector.load %arg10[%c0_37, %c145] : memref<4x512xf32, #tpu.memory_space<vmem>>, vector<4x256xf32>
    %254 = vector.extract_strided_slice %4 {offsets = [0, 32], sizes = [4, 1], strides = [1, 1]} : vector<4x36xf32> to vector<4x1xf32>
    %255 = vector.extract_strided_slice %253 {offsets = [0, 0], sizes = [1, 256], strides = [1, 1]} : vector<4x256xf32> to vector<1x256xf32>
    %256 = vector.broadcast %254 : vector<4x1xf32> to vector<4x256xf32>
    %257 = vector.broadcast %255 : vector<1x256xf32> to vector<4x256xf32>
    %258 = arith.mulf %256, %257 : vector<4x256xf32>
    %259 = vector.extract_strided_slice %4 {offsets = [0, 33], sizes = [4, 1], strides = [1, 1]} : vector<4x36xf32> to vector<4x1xf32>
    %260 = vector.extract_strided_slice %253 {offsets = [1, 0], sizes = [1, 256], strides = [1, 1]} : vector<4x256xf32> to vector<1x256xf32>
    %261 = vector.broadcast %259 : vector<4x1xf32> to vector<4x256xf32>
    %262 = vector.broadcast %260 : vector<1x256xf32> to vector<4x256xf32>
    %263 = arith.mulf %261, %262 : vector<4x256xf32>
    %264 = arith.addf %258, %263 : vector<4x256xf32>
    %265 = vector.extract_strided_slice %4 {offsets = [0, 34], sizes = [4, 1], strides = [1, 1]} : vector<4x36xf32> to vector<4x1xf32>
    %266 = vector.extract_strided_slice %253 {offsets = [2, 0], sizes = [1, 256], strides = [1, 1]} : vector<4x256xf32> to vector<1x256xf32>
    %267 = vector.broadcast %265 : vector<4x1xf32> to vector<4x256xf32>
    %268 = vector.broadcast %266 : vector<1x256xf32> to vector<4x256xf32>
    %269 = arith.mulf %267, %268 : vector<4x256xf32>
    %270 = arith.addf %264, %269 : vector<4x256xf32>
    %271 = vector.extract_strided_slice %4 {offsets = [0, 35], sizes = [4, 1], strides = [1, 1]} : vector<4x36xf32> to vector<4x1xf32>
    %272 = vector.extract_strided_slice %253 {offsets = [3, 0], sizes = [1, 256], strides = [1, 1]} : vector<4x256xf32> to vector<1x256xf32>
    %273 = vector.broadcast %271 : vector<4x1xf32> to vector<4x256xf32>
    %274 = vector.broadcast %272 : vector<1x256xf32> to vector<4x256xf32>
    %275 = arith.mulf %273, %274 : vector<4x256xf32>
    %276 = arith.addf %270, %275 : vector<4x256xf32>
    %cst_38 = arith.constant 0.000000e+00 : f32
    %277 = vector.shape_cast %32 : vector<1x256xi1> to vector<1x256xi1>
    %278 = vector.broadcast %277 : vector<1x256xi1> to vector<4x256xi1>
    %279 = vector.broadcast %cst_38 : f32 to vector<4x256xf32>
    %280 = arith.select %278, %276, %279 : vector<4x256xi1>, vector<4x256xf32>
    %281 = arith.addf %252, %280 : vector<4x256xf32>
    %282 = vector.broadcast %7 : vector<4x1xf32> to vector<4x256xf32>
    %283 = arith.addf %281, %282 : vector<4x256xf32>
    %cst_39 = arith.constant 0.000000e+00 : f32
    %284 = vector.broadcast %cst_39 : f32 to vector<4x256xf32>
    %285 = arith.maximumf %283, %284 : vector<4x256xf32>
    %c0_40 = arith.constant 0 : index
    %c128_41 = arith.constant 128 : index
    %286 = vector.load %arg10[%c0_40, %c128_41] : memref<4x512xf32, #tpu.memory_space<vmem>>, vector<4x256xf32>
    tpu.vector_store %arg10[%c0_40, %c128_41], %285 {strides = array<i32>} : memref<4x512xf32, #tpu.memory_space<vmem>>, vector<4x256xf32>,
    %c0_42 = arith.constant 0 : index
    %c111_43 = arith.constant 111 : index
    %287 = vector.load %arg10[%c0_42, %c111_43] : memref<4x512xf32, #tpu.memory_space<vmem>>, vector<4x256xf32>
    %288 = vector.extract_strided_slice %5 {offsets = [0, 0], sizes = [4, 1], strides = [1, 1]} : vector<4x36xf32> to vector<4x1xf32>
    %289 = vector.extract_strided_slice %287 {offsets = [0, 0], sizes = [1, 256], strides = [1, 1]} : vector<4x256xf32> to vector<1x256xf32>
    %290 = vector.broadcast %288 : vector<4x1xf32> to vector<4x256xf32>
    %291 = vector.broadcast %289 : vector<1x256xf32> to vector<4x256xf32>
    %292 = arith.mulf %290, %291 : vector<4x256xf32>
    %293 = vector.extract_strided_slice %5 {offsets = [0, 1], sizes = [4, 1], strides = [1, 1]} : vector<4x36xf32> to vector<4x1xf32>
    %294 = vector.extract_strided_slice %287 {offsets = [1, 0], sizes = [1, 256], strides = [1, 1]} : vector<4x256xf32> to vector<1x256xf32>
    %295 = vector.broadcast %293 : vector<4x1xf32> to vector<4x256xf32>
    %296 = vector.broadcast %294 : vector<1x256xf32> to vector<4x256xf32>
    %297 = arith.mulf %295, %296 : vector<4x256xf32>
    %298 = arith.addf %292, %297 : vector<4x256xf32>
    %299 = vector.extract_strided_slice %5 {offsets = [0, 2], sizes = [4, 1], strides = [1, 1]} : vector<4x36xf32> to vector<4x1xf32>
    %300 = vector.extract_strided_slice %287 {offsets = [2, 0], sizes = [1, 256], strides = [1, 1]} : vector<4x256xf32> to vector<1x256xf32>
    %301 = vector.broadcast %299 : vector<4x1xf32> to vector<4x256xf32>
    %302 = vector.broadcast %300 : vector<1x256xf32> to vector<4x256xf32>
    %303 = arith.mulf %301, %302 : vector<4x256xf32>
    %304 = arith.addf %298, %303 : vector<4x256xf32>
    %305 = vector.extract_strided_slice %5 {offsets = [0, 3], sizes = [4, 1], strides = [1, 1]} : vector<4x36xf32> to vector<4x1xf32>
    %306 = vector.extract_strided_slice %287 {offsets = [3, 0], sizes = [1, 256], strides = [1, 1]} : vector<4x256xf32> to vector<1x256xf32>
    %307 = vector.broadcast %305 : vector<4x1xf32> to vector<4x256xf32>
    %308 = vector.broadcast %306 : vector<1x256xf32> to vector<4x256xf32>
    %309 = arith.mulf %307, %308 : vector<4x256xf32>
    %310 = arith.addf %304, %309 : vector<4x256xf32>
    %cst_44 = arith.constant 0.000000e+00 : f32
    %311 = vector.shape_cast %30 : vector<1x256xi1> to vector<1x256xi1>
    %312 = vector.broadcast %311 : vector<1x256xi1> to vector<4x256xi1>
    %313 = vector.broadcast %cst_44 : f32 to vector<4x256xf32>
    %314 = arith.select %312, %310, %313 : vector<4x256xi1>, vector<4x256xf32>
    %c0_45 = arith.constant 0 : index
    %c112_46 = arith.constant 112 : index
    %315 = vector.load %arg10[%c0_45, %c112_46] : memref<4x512xf32, #tpu.memory_space<vmem>>, vector<4x256xf32>
    %316 = vector.extract_strided_slice %5 {offsets = [0, 4], sizes = [4, 1], strides = [1, 1]} : vector<4x36xf32> to vector<4x1xf32>
    %317 = vector.extract_strided_slice %315 {offsets = [0, 0], sizes = [1, 256], strides = [1, 1]} : vector<4x256xf32> to vector<1x256xf32>
    %318 = vector.broadcast %316 : vector<4x1xf32> to vector<4x256xf32>
    %319 = vector.broadcast %317 : vector<1x256xf32> to vector<4x256xf32>
    %320 = arith.mulf %318, %319 : vector<4x256xf32>
    %321 = vector.extract_strided_slice %5 {offsets = [0, 5], sizes = [4, 1], strides = [1, 1]} : vector<4x36xf32> to vector<4x1xf32>
    %322 = vector.extract_strided_slice %315 {offsets = [1, 0], sizes = [1, 256], strides = [1, 1]} : vector<4x256xf32> to vector<1x256xf32>
    %323 = vector.broadcast %321 : vector<4x1xf32> to vector<4x256xf32>
    %324 = vector.broadcast %322 : vector<1x256xf32> to vector<4x256xf32>
    %325 = arith.mulf %323, %324 : vector<4x256xf32>
    %326 = arith.addf %320, %325 : vector<4x256xf32>
    %327 = vector.extract_strided_slice %5 {offsets = [0, 6], sizes = [4, 1], strides = [1, 1]} : vector<4x36xf32> to vector<4x1xf32>
    %328 = vector.extract_strided_slice %315 {offsets = [2, 0], sizes = [1, 256], strides = [1, 1]} : vector<4x256xf32> to vector<1x256xf32>
    %329 = vector.broadcast %327 : vector<4x1xf32> to vector<4x256xf32>
    %330 = vector.broadcast %328 : vector<1x256xf32> to vector<4x256xf32>
    %331 = arith.mulf %329, %330 : vector<4x256xf32>
    %332 = arith.addf %326, %331 : vector<4x256xf32>
    %333 = vector.extract_strided_slice %5 {offsets = [0, 7], sizes = [4, 1], strides = [1, 1]} : vector<4x36xf32> to vector<4x1xf32>
    %334 = vector.extract_strided_slice %315 {offsets = [3, 0], sizes = [1, 256], strides = [1, 1]} : vector<4x256xf32> to vector<1x256xf32>
    %335 = vector.broadcast %333 : vector<4x1xf32> to vector<4x256xf32>
    %336 = vector.broadcast %334 : vector<1x256xf32> to vector<4x256xf32>
    %337 = arith.mulf %335, %336 : vector<4x256xf32>
    %338 = arith.addf %332, %337 : vector<4x256xf32>
    %339 = arith.addf %314, %338 : vector<4x256xf32>
    %c0_47 = arith.constant 0 : index
    %c113_48 = arith.constant 113 : index
    %340 = vector.load %arg10[%c0_47, %c113_48] : memref<4x512xf32, #tpu.memory_space<vmem>>, vector<4x256xf32>
    %341 = vector.extract_strided_slice %5 {offsets = [0, 8], sizes = [4, 1], strides = [1, 1]} : vector<4x36xf32> to vector<4x1xf32>
    %342 = vector.extract_strided_slice %340 {offsets = [0, 0], sizes = [1, 256], strides = [1, 1]} : vector<4x256xf32> to vector<1x256xf32>
    %343 = vector.broadcast %341 : vector<4x1xf32> to vector<4x256xf32>
    %344 = vector.broadcast %342 : vector<1x256xf32> to vector<4x256xf32>
    %345 = arith.mulf %343, %344 : vector<4x256xf32>
    %346 = vector.extract_strided_slice %5 {offsets = [0, 9], sizes = [4, 1], strides = [1, 1]} : vector<4x36xf32> to vector<4x1xf32>
    %347 = vector.extract_strided_slice %340 {offsets = [1, 0], sizes = [1, 256], strides = [1, 1]} : vector<4x256xf32> to vector<1x256xf32>
    %348 = vector.broadcast %346 : vector<4x1xf32> to vector<4x256xf32>
    %349 = vector.broadcast %347 : vector<1x256xf32> to vector<4x256xf32>
    %350 = arith.mulf %348, %349 : vector<4x256xf32>
    %351 = arith.addf %345, %350 : vector<4x256xf32>
    %352 = vector.extract_strided_slice %5 {offsets = [0, 10], sizes = [4, 1], strides = [1, 1]} : vector<4x36xf32> to vector<4x1xf32>
    %353 = vector.extract_strided_slice %340 {offsets = [2, 0], sizes = [1, 256], strides = [1, 1]} : vector<4x256xf32> to vector<1x256xf32>
    %354 = vector.broadcast %352 : vector<4x1xf32> to vector<4x256xf32>
    %355 = vector.broadcast %353 : vector<1x256xf32> to vector<4x256xf32>
    %356 = arith.mulf %354, %355 : vector<4x256xf32>
    %357 = arith.addf %351, %356 : vector<4x256xf32>
    %358 = vector.extract_strided_slice %5 {offsets = [0, 11], sizes = [4, 1], strides = [1, 1]} : vector<4x36xf32> to vector<4x1xf32>
    %359 = vector.extract_strided_slice %340 {offsets = [3, 0], sizes = [1, 256], strides = [1, 1]} : vector<4x256xf32> to vector<1x256xf32>
    %360 = vector.broadcast %358 : vector<4x1xf32> to vector<4x256xf32>
    %361 = vector.broadcast %359 : vector<1x256xf32> to vector<4x256xf32>
    %362 = arith.mulf %360, %361 : vector<4x256xf32>
    %363 = arith.addf %357, %362 : vector<4x256xf32>
    %cst_49 = arith.constant 0.000000e+00 : f32
    %364 = vector.shape_cast %32 : vector<1x256xi1> to vector<1x256xi1>
    %365 = vector.broadcast %364 : vector<1x256xi1> to vector<4x256xi1>
    %366 = vector.broadcast %cst_49 : f32 to vector<4x256xf32>
    %367 = arith.select %365, %363, %366 : vector<4x256xi1>, vector<4x256xf32>
    %368 = arith.addf %339, %367 : vector<4x256xf32>
    %c0_50 = arith.constant 0 : index
    %c127_51 = arith.constant 127 : index
    %369 = vector.load %arg10[%c0_50, %c127_51] : memref<4x512xf32, #tpu.memory_space<vmem>>, vector<4x256xf32>
    %370 = vector.extract_strided_slice %5 {offsets = [0, 12], sizes = [4, 1], strides = [1, 1]} : vector<4x36xf32> to vector<4x1xf32>
    %371 = vector.extract_strided_slice %369 {offsets = [0, 0], sizes = [1, 256], strides = [1, 1]} : vector<4x256xf32> to vector<1x256xf32>
    %372 = vector.broadcast %370 : vector<4x1xf32> to vector<4x256xf32>
    %373 = vector.broadcast %371 : vector<1x256xf32> to vector<4x256xf32>
    %374 = arith.mulf %372, %373 : vector<4x256xf32>
    %375 = vector.extract_strided_slice %5 {offsets = [0, 13], sizes = [4, 1], strides = [1, 1]} : vector<4x36xf32> to vector<4x1xf32>
    %376 = vector.extract_strided_slice %369 {offsets = [1, 0], sizes = [1, 256], strides = [1, 1]} : vector<4x256xf32> to vector<1x256xf32>
    %377 = vector.broadcast %375 : vector<4x1xf32> to vector<4x256xf32>
    %378 = vector.broadcast %376 : vector<1x256xf32> to vector<4x256xf32>
    %379 = arith.mulf %377, %378 : vector<4x256xf32>
    %380 = arith.addf %374, %379 : vector<4x256xf32>
    %381 = vector.extract_strided_slice %5 {offsets = [0, 14], sizes = [4, 1], strides = [1, 1]} : vector<4x36xf32> to vector<4x1xf32>
    %382 = vector.extract_strided_slice %369 {offsets = [2, 0], sizes = [1, 256], strides = [1, 1]} : vector<4x256xf32> to vector<1x256xf32>
    %383 = vector.broadcast %381 : vector<4x1xf32> to vector<4x256xf32>
    %384 = vector.broadcast %382 : vector<1x256xf32> to vector<4x256xf32>
    %385 = arith.mulf %383, %384 : vector<4x256xf32>
    %386 = arith.addf %380, %385 : vector<4x256xf32>
    %387 = vector.extract_strided_slice %5 {offsets = [0, 15], sizes = [4, 1], strides = [1, 1]} : vector<4x36xf32> to vector<4x1xf32>
    %388 = vector.extract_strided_slice %369 {offsets = [3, 0], sizes = [1, 256], strides = [1, 1]} : vector<4x256xf32> to vector<1x256xf32>
    %389 = vector.broadcast %387 : vector<4x1xf32> to vector<4x256xf32>
    %390 = vector.broadcast %388 : vector<1x256xf32> to vector<4x256xf32>
    %391 = arith.mulf %389, %390 : vector<4x256xf32>
    %392 = arith.addf %386, %391 : vector<4x256xf32>
    %cst_52 = arith.constant 0.000000e+00 : f32
    %393 = vector.shape_cast %30 : vector<1x256xi1> to vector<1x256xi1>
    %394 = vector.broadcast %393 : vector<1x256xi1> to vector<4x256xi1>
    %395 = vector.broadcast %cst_52 : f32 to vector<4x256xf32>
    %396 = arith.select %394, %392, %395 : vector<4x256xi1>, vector<4x256xf32>
    %397 = arith.addf %368, %396 : vector<4x256xf32>
    %c0_53 = arith.constant 0 : index
    %c128_54 = arith.constant 128 : index
    %398 = vector.load %arg10[%c0_53, %c128_54] : memref<4x512xf32, #tpu.memory_space<vmem>>, vector<4x256xf32>
    %399 = vector.extract_strided_slice %5 {offsets = [0, 16], sizes = [4, 1], strides = [1, 1]} : vector<4x36xf32> to vector<4x1xf32>
    %400 = vector.extract_strided_slice %398 {offsets = [0, 0], sizes = [1, 256], strides = [1, 1]} : vector<4x256xf32> to vector<1x256xf32>
    %401 = vector.broadcast %399 : vector<4x1xf32> to vector<4x256xf32>
    %402 = vector.broadcast %400 : vector<1x256xf32> to vector<4x256xf32>
    %403 = arith.mulf %401, %402 : vector<4x256xf32>
    %404 = vector.extract_strided_slice %5 {offsets = [0, 17], sizes = [4, 1], strides = [1, 1]} : vector<4x36xf32> to vector<4x1xf32>
    %405 = vector.extract_strided_slice %398 {offsets = [1, 0], sizes = [1, 256], strides = [1, 1]} : vector<4x256xf32> to vector<1x256xf32>
    %406 = vector.broadcast %404 : vector<4x1xf32> to vector<4x256xf32>
    %407 = vector.broadcast %405 : vector<1x256xf32> to vector<4x256xf32>
    %408 = arith.mulf %406, %407 : vector<4x256xf32>
    %409 = arith.addf %403, %408 : vector<4x256xf32>
    %410 = vector.extract_strided_slice %5 {offsets = [0, 18], sizes = [4, 1], strides = [1, 1]} : vector<4x36xf32> to vector<4x1xf32>
    %411 = vector.extract_strided_slice %398 {offsets = [2, 0], sizes = [1, 256], strides = [1, 1]} : vector<4x256xf32> to vector<1x256xf32>
    %412 = vector.broadcast %410 : vector<4x1xf32> to vector<4x256xf32>
    %413 = vector.broadcast %411 : vector<1x256xf32> to vector<4x256xf32>
    %414 = arith.mulf %412, %413 : vector<4x256xf32>
    %415 = arith.addf %409, %414 : vector<4x256xf32>
    %416 = vector.extract_strided_slice %5 {offsets = [0, 19], sizes = [4, 1], strides = [1, 1]} : vector<4x36xf32> to vector<4x1xf32>
    %417 = vector.extract_strided_slice %398 {offsets = [3, 0], sizes = [1, 256], strides = [1, 1]} : vector<4x256xf32> to vector<1x256xf32>
    %418 = vector.broadcast %416 : vector<4x1xf32> to vector<4x256xf32>
    %419 = vector.broadcast %417 : vector<1x256xf32> to vector<4x256xf32>
    %420 = arith.mulf %418, %419 : vector<4x256xf32>
    %421 = arith.addf %415, %420 : vector<4x256xf32>
    %422 = arith.addf %397, %421 : vector<4x256xf32>
    %c0_55 = arith.constant 0 : index
    %c129_56 = arith.constant 129 : index
    %423 = vector.load %arg10[%c0_55, %c129_56] : memref<4x512xf32, #tpu.memory_space<vmem>>, vector<4x256xf32>
    %424 = vector.extract_strided_slice %5 {offsets = [0, 20], sizes = [4, 1], strides = [1, 1]} : vector<4x36xf32> to vector<4x1xf32>
    %425 = vector.extract_strided_slice %423 {offsets = [0, 0], sizes = [1, 256], strides = [1, 1]} : vector<4x256xf32> to vector<1x256xf32>
    %426 = vector.broadcast %424 : vector<4x1xf32> to vector<4x256xf32>
    %427 = vector.broadcast %425 : vector<1x256xf32> to vector<4x256xf32>
    %428 = arith.mulf %426, %427 : vector<4x256xf32>
    %429 = vector.extract_strided_slice %5 {offsets = [0, 21], sizes = [4, 1], strides = [1, 1]} : vector<4x36xf32> to vector<4x1xf32>
    %430 = vector.extract_strided_slice %423 {offsets = [1, 0], sizes = [1, 256], strides = [1, 1]} : vector<4x256xf32> to vector<1x256xf32>
    %431 = vector.broadcast %429 : vector<4x1xf32> to vector<4x256xf32>
    %432 = vector.broadcast %430 : vector<1x256xf32> to vector<4x256xf32>
    %433 = arith.mulf %431, %432 : vector<4x256xf32>
    %434 = arith.addf %428, %433 : vector<4x256xf32>
    %435 = vector.extract_strided_slice %5 {offsets = [0, 22], sizes = [4, 1], strides = [1, 1]} : vector<4x36xf32> to vector<4x1xf32>
    %436 = vector.extract_strided_slice %423 {offsets = [2, 0], sizes = [1, 256], strides = [1, 1]} : vector<4x256xf32> to vector<1x256xf32>
    %437 = vector.broadcast %435 : vector<4x1xf32> to vector<4x256xf32>
    %438 = vector.broadcast %436 : vector<1x256xf32> to vector<4x256xf32>
    %439 = arith.mulf %437, %438 : vector<4x256xf32>
    %440 = arith.addf %434, %439 : vector<4x256xf32>
    %441 = vector.extract_strided_slice %5 {offsets = [0, 23], sizes = [4, 1], strides = [1, 1]} : vector<4x36xf32> to vector<4x1xf32>
    %442 = vector.extract_strided_slice %423 {offsets = [3, 0], sizes = [1, 256], strides = [1, 1]} : vector<4x256xf32> to vector<1x256xf32>
    %443 = vector.broadcast %441 : vector<4x1xf32> to vector<4x256xf32>
    %444 = vector.broadcast %442 : vector<1x256xf32> to vector<4x256xf32>
    %445 = arith.mulf %443, %444 : vector<4x256xf32>
    %446 = arith.addf %440, %445 : vector<4x256xf32>
    %cst_57 = arith.constant 0.000000e+00 : f32
    %447 = vector.shape_cast %32 : vector<1x256xi1> to vector<1x256xi1>
    %448 = vector.broadcast %447 : vector<1x256xi1> to vector<4x256xi1>
    %449 = vector.broadcast %cst_57 : f32 to vector<4x256xf32>
    %450 = arith.select %448, %446, %449 : vector<4x256xi1>, vector<4x256xf32>
    %451 = arith.addf %422, %450 : vector<4x256xf32>
    %c0_58 = arith.constant 0 : index
    %c143_59 = arith.constant 143 : index
    %452 = vector.load %arg10[%c0_58, %c143_59] : memref<4x512xf32, #tpu.memory_space<vmem>>, vector<4x256xf32>
    %453 = vector.extract_strided_slice %5 {offsets = [0, 24], sizes = [4, 1], strides = [1, 1]} : vector<4x36xf32> to vector<4x1xf32>
    %454 = vector.extract_strided_slice %452 {offsets = [0, 0], sizes = [1, 256], strides = [1, 1]} : vector<4x256xf32> to vector<1x256xf32>
    %455 = vector.broadcast %453 : vector<4x1xf32> to vector<4x256xf32>
    %456 = vector.broadcast %454 : vector<1x256xf32> to vector<4x256xf32>
    %457 = arith.mulf %455, %456 : vector<4x256xf32>
    %458 = vector.extract_strided_slice %5 {offsets = [0, 25], sizes = [4, 1], strides = [1, 1]} : vector<4x36xf32> to vector<4x1xf32>
    %459 = vector.extract_strided_slice %452 {offsets = [1, 0], sizes = [1, 256], strides = [1, 1]} : vector<4x256xf32> to vector<1x256xf32>
    %460 = vector.broadcast %458 : vector<4x1xf32> to vector<4x256xf32>
    %461 = vector.broadcast %459 : vector<1x256xf32> to vector<4x256xf32>
    %462 = arith.mulf %460, %461 : vector<4x256xf32>
    %463 = arith.addf %457, %462 : vector<4x256xf32>
    %464 = vector.extract_strided_slice %5 {offsets = [0, 26], sizes = [4, 1], strides = [1, 1]} : vector<4x36xf32> to vector<4x1xf32>
    %465 = vector.extract_strided_slice %452 {offsets = [2, 0], sizes = [1, 256], strides = [1, 1]} : vector<4x256xf32> to vector<1x256xf32>
    %466 = vector.broadcast %464 : vector<4x1xf32> to vector<4x256xf32>
    %467 = vector.broadcast %465 : vector<1x256xf32> to vector<4x256xf32>
    %468 = arith.mulf %466, %467 : vector<4x256xf32>
    %469 = arith.addf %463, %468 : vector<4x256xf32>
    %470 = vector.extract_strided_slice %5 {offsets = [0, 27], sizes = [4, 1], strides = [1, 1]} : vector<4x36xf32> to vector<4x1xf32>
    %471 = vector.extract_strided_slice %452 {offsets = [3, 0], sizes = [1, 256], strides = [1, 1]} : vector<4x256xf32> to vector<1x256xf32>
    %472 = vector.broadcast %470 : vector<4x1xf32> to vector<4x256xf32>
    %473 = vector.broadcast %471 : vector<1x256xf32> to vector<4x256xf32>
    %474 = arith.mulf %472, %473 : vector<4x256xf32>
    %475 = arith.addf %469, %474 : vector<4x256xf32>
    %cst_60 = arith.constant 0.000000e+00 : f32
    %476 = vector.shape_cast %30 : vector<1x256xi1> to vector<1x256xi1>
    %477 = vector.broadcast %476 : vector<1x256xi1> to vector<4x256xi1>
    %478 = vector.broadcast %cst_60 : f32 to vector<4x256xf32>
    %479 = arith.select %477, %475, %478 : vector<4x256xi1>, vector<4x256xf32>
    %480 = arith.addf %451, %479 : vector<4x256xf32>
    %c0_61 = arith.constant 0 : index
    %c144_62 = arith.constant 144 : index
    %481 = vector.load %arg10[%c0_61, %c144_62] : memref<4x512xf32, #tpu.memory_space<vmem>>, vector<4x256xf32>
    %482 = vector.extract_strided_slice %5 {offsets = [0, 28], sizes = [4, 1], strides = [1, 1]} : vector<4x36xf32> to vector<4x1xf32>
    %483 = vector.extract_strided_slice %481 {offsets = [0, 0], sizes = [1, 256], strides = [1, 1]} : vector<4x256xf32> to vector<1x256xf32>
    %484 = vector.broadcast %482 : vector<4x1xf32> to vector<4x256xf32>
    %485 = vector.broadcast %483 : vector<1x256xf32> to vector<4x256xf32>
    %486 = arith.mulf %484, %485 : vector<4x256xf32>
    %487 = vector.extract_strided_slice %5 {offsets = [0, 29], sizes = [4, 1], strides = [1, 1]} : vector<4x36xf32> to vector<4x1xf32>
    %488 = vector.extract_strided_slice %481 {offsets = [1, 0], sizes = [1, 256], strides = [1, 1]} : vector<4x256xf32> to vector<1x256xf32>
    %489 = vector.broadcast %487 : vector<4x1xf32> to vector<4x256xf32>
    %490 = vector.broadcast %488 : vector<1x256xf32> to vector<4x256xf32>
    %491 = arith.mulf %489, %490 : vector<4x256xf32>
    %492 = arith.addf %486, %491 : vector<4x256xf32>
    %493 = vector.extract_strided_slice %5 {offsets = [0, 30], sizes = [4, 1], strides = [1, 1]} : vector<4x36xf32> to vector<4x1xf32>
    %494 = vector.extract_strided_slice %481 {offsets = [2, 0], sizes = [1, 256], strides = [1, 1]} : vector<4x256xf32> to vector<1x256xf32>
    %495 = vector.broadcast %493 : vector<4x1xf32> to vector<4x256xf32>
    %496 = vector.broadcast %494 : vector<1x256xf32> to vector<4x256xf32>
    %497 = arith.mulf %495, %496 : vector<4x256xf32>
    %498 = arith.addf %492, %497 : vector<4x256xf32>
    %499 = vector.extract_strided_slice %5 {offsets = [0, 31], sizes = [4, 1], strides = [1, 1]} : vector<4x36xf32> to vector<4x1xf32>
    %500 = vector.extract_strided_slice %481 {offsets = [3, 0], sizes = [1, 256], strides = [1, 1]} : vector<4x256xf32> to vector<1x256xf32>
    %501 = vector.broadcast %499 : vector<4x1xf32> to vector<4x256xf32>
    %502 = vector.broadcast %500 : vector<1x256xf32> to vector<4x256xf32>
    %503 = arith.mulf %501, %502 : vector<4x256xf32>
    %504 = arith.addf %498, %503 : vector<4x256xf32>
    %505 = arith.addf %480, %504 : vector<4x256xf32>
    %c0_63 = arith.constant 0 : index
    %c145_64 = arith.constant 145 : index
    %506 = vector.load %arg10[%c0_63, %c145_64] : memref<4x512xf32, #tpu.memory_space<vmem>>, vector<4x256xf32>
    %507 = vector.extract_strided_slice %5 {offsets = [0, 32], sizes = [4, 1], strides = [1, 1]} : vector<4x36xf32> to vector<4x1xf32>
    %508 = vector.extract_strided_slice %506 {offsets = [0, 0], sizes = [1, 256], strides = [1, 1]} : vector<4x256xf32> to vector<1x256xf32>
    %509 = vector.broadcast %507 : vector<4x1xf32> to vector<4x256xf32>
    %510 = vector.broadcast %508 : vector<1x256xf32> to vector<4x256xf32>
    %511 = arith.mulf %509, %510 : vector<4x256xf32>
    %512 = vector.extract_strided_slice %5 {offsets = [0, 33], sizes = [4, 1], strides = [1, 1]} : vector<4x36xf32> to vector<4x1xf32>
    %513 = vector.extract_strided_slice %506 {offsets = [1, 0], sizes = [1, 256], strides = [1, 1]} : vector<4x256xf32> to vector<1x256xf32>
    %514 = vector.broadcast %512 : vector<4x1xf32> to vector<4x256xf32>
    %515 = vector.broadcast %513 : vector<1x256xf32> to vector<4x256xf32>
    %516 = arith.mulf %514, %515 : vector<4x256xf32>
    %517 = arith.addf %511, %516 : vector<4x256xf32>
    %518 = vector.extract_strided_slice %5 {offsets = [0, 34], sizes = [4, 1], strides = [1, 1]} : vector<4x36xf32> to vector<4x1xf32>
    %519 = vector.extract_strided_slice %506 {offsets = [2, 0], sizes = [1, 256], strides = [1, 1]} : vector<4x256xf32> to vector<1x256xf32>
    %520 = vector.broadcast %518 : vector<4x1xf32> to vector<4x256xf32>
    %521 = vector.broadcast %519 : vector<1x256xf32> to vector<4x256xf32>
    %522 = arith.mulf %520, %521 : vector<4x256xf32>
    %523 = arith.addf %517, %522 : vector<4x256xf32>
    %524 = vector.extract_strided_slice %5 {offsets = [0, 35], sizes = [4, 1], strides = [1, 1]} : vector<4x36xf32> to vector<4x1xf32>
    %525 = vector.extract_strided_slice %506 {offsets = [3, 0], sizes = [1, 256], strides = [1, 1]} : vector<4x256xf32> to vector<1x256xf32>
    %526 = vector.broadcast %524 : vector<4x1xf32> to vector<4x256xf32>
    %527 = vector.broadcast %525 : vector<1x256xf32> to vector<4x256xf32>
    %528 = arith.mulf %526, %527 : vector<4x256xf32>
    %529 = arith.addf %523, %528 : vector<4x256xf32>
    %cst_65 = arith.constant 0.000000e+00 : f32
    %530 = vector.shape_cast %32 : vector<1x256xi1> to vector<1x256xi1>
    %531 = vector.broadcast %530 : vector<1x256xi1> to vector<4x256xi1>
    %532 = vector.broadcast %cst_65 : f32 to vector<4x256xf32>
    %533 = arith.select %531, %529, %532 : vector<4x256xi1>, vector<4x256xf32>
    %534 = arith.addf %505, %533 : vector<4x256xf32>
    %535 = vector.broadcast %8 : vector<4x1xf32> to vector<4x256xf32>
    %536 = arith.addf %534, %535 : vector<4x256xf32>
    %537 = arith.addf %536, %11 : vector<4x256xf32>
    %cst_66 = arith.constant 0.000000e+00 : f32
    %538 = vector.broadcast %cst_66 : f32 to vector<4x256xf32>
    %539 = arith.maximumf %537, %538 : vector<4x256xf32>
    %c0_67 = arith.constant 0 : index
    %c128_68 = arith.constant 128 : index
    %540 = vector.load %arg10[%c0_67, %c128_68] : memref<4x512xf32, #tpu.memory_space<vmem>>, vector<4x256xf32>
    tpu.vector_store %arg10[%c0_67, %c128_68], %539 {strides = array<i32>} : memref<4x512xf32, #tpu.memory_space<vmem>>, vector<4x256xf32>,
    %c0_69 = arith.constant 0 : index
    %c111_70 = arith.constant 111 : index
    %541 = vector.load %arg10[%c0_69, %c111_70] : memref<4x512xf32, #tpu.memory_space<vmem>>, vector<4x256xf32>
    %542 = vector.extract_strided_slice %6 {offsets = [0, 0], sizes = [4, 1], strides = [1, 1]} : vector<4x36xf32> to vector<4x1xf32>
    %543 = vector.extract_strided_slice %541 {offsets = [0, 0], sizes = [1, 256], strides = [1, 1]} : vector<4x256xf32> to vector<1x256xf32>
    %544 = vector.broadcast %542 : vector<4x1xf32> to vector<4x256xf32>
    %545 = vector.broadcast %543 : vector<1x256xf32> to vector<4x256xf32>
    %546 = arith.mulf %544, %545 : vector<4x256xf32>
    %547 = vector.extract_strided_slice %6 {offsets = [0, 1], sizes = [4, 1], strides = [1, 1]} : vector<4x36xf32> to vector<4x1xf32>
    %548 = vector.extract_strided_slice %541 {offsets = [1, 0], sizes = [1, 256], strides = [1, 1]} : vector<4x256xf32> to vector<1x256xf32>
    %549 = vector.broadcast %547 : vector<4x1xf32> to vector<4x256xf32>
    %550 = vector.broadcast %548 : vector<1x256xf32> to vector<4x256xf32>
    %551 = arith.mulf %549, %550 : vector<4x256xf32>
    %552 = arith.addf %546, %551 : vector<4x256xf32>
    %553 = vector.extract_strided_slice %6 {offsets = [0, 2], sizes = [4, 1], strides = [1, 1]} : vector<4x36xf32> to vector<4x1xf32>
    %554 = vector.extract_strided_slice %541 {offsets = [2, 0], sizes = [1, 256], strides = [1, 1]} : vector<4x256xf32> to vector<1x256xf32>
    %555 = vector.broadcast %553 : vector<4x1xf32> to vector<4x256xf32>
    %556 = vector.broadcast %554 : vector<1x256xf32> to vector<4x256xf32>
    %557 = arith.mulf %555, %556 : vector<4x256xf32>
    %558 = arith.addf %552, %557 : vector<4x256xf32>
    %559 = vector.extract_strided_slice %6 {offsets = [0, 3], sizes = [4, 1], strides = [1, 1]} : vector<4x36xf32> to vector<4x1xf32>
    %560 = vector.extract_strided_slice %541 {offsets = [3, 0], sizes = [1, 256], strides = [1, 1]} : vector<4x256xf32> to vector<1x256xf32>
    %561 = vector.broadcast %559 : vector<4x1xf32> to vector<4x256xf32>
    %562 = vector.broadcast %560 : vector<1x256xf32> to vector<4x256xf32>
    %563 = arith.mulf %561, %562 : vector<4x256xf32>
    %564 = arith.addf %558, %563 : vector<4x256xf32>
    %cst_71 = arith.constant 0.000000e+00 : f32
    %565 = vector.shape_cast %30 : vector<1x256xi1> to vector<1x256xi1>
    %566 = vector.broadcast %565 : vector<1x256xi1> to vector<4x256xi1>
    %567 = vector.broadcast %cst_71 : f32 to vector<4x256xf32>
    %568 = arith.select %566, %564, %567 : vector<4x256xi1>, vector<4x256xf32>
    %c0_72 = arith.constant 0 : index
    %c112_73 = arith.constant 112 : index
    %569 = vector.load %arg10[%c0_72, %c112_73] : memref<4x512xf32, #tpu.memory_space<vmem>>, vector<4x256xf32>
    %570 = vector.extract_strided_slice %6 {offsets = [0, 4], sizes = [4, 1], strides = [1, 1]} : vector<4x36xf32> to vector<4x1xf32>
    %571 = vector.extract_strided_slice %569 {offsets = [0, 0], sizes = [1, 256], strides = [1, 1]} : vector<4x256xf32> to vector<1x256xf32>
    %572 = vector.broadcast %570 : vector<4x1xf32> to vector<4x256xf32>
    %573 = vector.broadcast %571 : vector<1x256xf32> to vector<4x256xf32>
    %574 = arith.mulf %572, %573 : vector<4x256xf32>
    %575 = vector.extract_strided_slice %6 {offsets = [0, 5], sizes = [4, 1], strides = [1, 1]} : vector<4x36xf32> to vector<4x1xf32>
    %576 = vector.extract_strided_slice %569 {offsets = [1, 0], sizes = [1, 256], strides = [1, 1]} : vector<4x256xf32> to vector<1x256xf32>
    %577 = vector.broadcast %575 : vector<4x1xf32> to vector<4x256xf32>
    %578 = vector.broadcast %576 : vector<1x256xf32> to vector<4x256xf32>
    %579 = arith.mulf %577, %578 : vector<4x256xf32>
    %580 = arith.addf %574, %579 : vector<4x256xf32>
    %581 = vector.extract_strided_slice %6 {offsets = [0, 6], sizes = [4, 1], strides = [1, 1]} : vector<4x36xf32> to vector<4x1xf32>
    %582 = vector.extract_strided_slice %569 {offsets = [2, 0], sizes = [1, 256], strides = [1, 1]} : vector<4x256xf32> to vector<1x256xf32>
    %583 = vector.broadcast %581 : vector<4x1xf32> to vector<4x256xf32>
    %584 = vector.broadcast %582 : vector<1x256xf32> to vector<4x256xf32>
    %585 = arith.mulf %583, %584 : vector<4x256xf32>
    %586 = arith.addf %580, %585 : vector<4x256xf32>
    %587 = vector.extract_strided_slice %6 {offsets = [0, 7], sizes = [4, 1], strides = [1, 1]} : vector<4x36xf32> to vector<4x1xf32>
    %588 = vector.extract_strided_slice %569 {offsets = [3, 0], sizes = [1, 256], strides = [1, 1]} : vector<4x256xf32> to vector<1x256xf32>
    %589 = vector.broadcast %587 : vector<4x1xf32> to vector<4x256xf32>
    %590 = vector.broadcast %588 : vector<1x256xf32> to vector<4x256xf32>
    %591 = arith.mulf %589, %590 : vector<4x256xf32>
    %592 = arith.addf %586, %591 : vector<4x256xf32>
    %593 = arith.addf %568, %592 : vector<4x256xf32>
    %c0_74 = arith.constant 0 : index
    %c113_75 = arith.constant 113 : index
    %594 = vector.load %arg10[%c0_74, %c113_75] : memref<4x512xf32, #tpu.memory_space<vmem>>, vector<4x256xf32>
    %595 = vector.extract_strided_slice %6 {offsets = [0, 8], sizes = [4, 1], strides = [1, 1]} : vector<4x36xf32> to vector<4x1xf32>
    %596 = vector.extract_strided_slice %594 {offsets = [0, 0], sizes = [1, 256], strides = [1, 1]} : vector<4x256xf32> to vector<1x256xf32>
    %597 = vector.broadcast %595 : vector<4x1xf32> to vector<4x256xf32>
    %598 = vector.broadcast %596 : vector<1x256xf32> to vector<4x256xf32>
    %599 = arith.mulf %597, %598 : vector<4x256xf32>
    %600 = vector.extract_strided_slice %6 {offsets = [0, 9], sizes = [4, 1], strides = [1, 1]} : vector<4x36xf32> to vector<4x1xf32>
    %601 = vector.extract_strided_slice %594 {offsets = [1, 0], sizes = [1, 256], strides = [1, 1]} : vector<4x256xf32> to vector<1x256xf32>
    %602 = vector.broadcast %600 : vector<4x1xf32> to vector<4x256xf32>
    %603 = vector.broadcast %601 : vector<1x256xf32> to vector<4x256xf32>
    %604 = arith.mulf %602, %603 : vector<4x256xf32>
    %605 = arith.addf %599, %604 : vector<4x256xf32>
    %606 = vector.extract_strided_slice %6 {offsets = [0, 10], sizes = [4, 1], strides = [1, 1]} : vector<4x36xf32> to vector<4x1xf32>
    %607 = vector.extract_strided_slice %594 {offsets = [2, 0], sizes = [1, 256], strides = [1, 1]} : vector<4x256xf32> to vector<1x256xf32>
    %608 = vector.broadcast %606 : vector<4x1xf32> to vector<4x256xf32>
    %609 = vector.broadcast %607 : vector<1x256xf32> to vector<4x256xf32>
    %610 = arith.mulf %608, %609 : vector<4x256xf32>
    %611 = arith.addf %605, %610 : vector<4x256xf32>
    %612 = vector.extract_strided_slice %6 {offsets = [0, 11], sizes = [4, 1], strides = [1, 1]} : vector<4x36xf32> to vector<4x1xf32>
    %613 = vector.extract_strided_slice %594 {offsets = [3, 0], sizes = [1, 256], strides = [1, 1]} : vector<4x256xf32> to vector<1x256xf32>
    %614 = vector.broadcast %612 : vector<4x1xf32> to vector<4x256xf32>
    %615 = vector.broadcast %613 : vector<1x256xf32> to vector<4x256xf32>
    %616 = arith.mulf %614, %615 : vector<4x256xf32>
    %617 = arith.addf %611, %616 : vector<4x256xf32>
    %cst_76 = arith.constant 0.000000e+00 : f32
    %618 = vector.shape_cast %32 : vector<1x256xi1> to vector<1x256xi1>
    %619 = vector.broadcast %618 : vector<1x256xi1> to vector<4x256xi1>
    %620 = vector.broadcast %cst_76 : f32 to vector<4x256xf32>
    %621 = arith.select %619, %617, %620 : vector<4x256xi1>, vector<4x256xf32>
    %622 = arith.addf %593, %621 : vector<4x256xf32>
    %c0_77 = arith.constant 0 : index
    %c127_78 = arith.constant 127 : index
    %623 = vector.load %arg10[%c0_77, %c127_78] : memref<4x512xf32, #tpu.memory_space<vmem>>, vector<4x256xf32>
    %624 = vector.extract_strided_slice %6 {offsets = [0, 12], sizes = [4, 1], strides = [1, 1]} : vector<4x36xf32> to vector<4x1xf32>
    %625 = vector.extract_strided_slice %623 {offsets = [0, 0], sizes = [1, 256], strides = [1, 1]} : vector<4x256xf32> to vector<1x256xf32>
    %626 = vector.broadcast %624 : vector<4x1xf32> to vector<4x256xf32>
    %627 = vector.broadcast %625 : vector<1x256xf32> to vector<4x256xf32>
    %628 = arith.mulf %626, %627 : vector<4x256xf32>
    %629 = vector.extract_strided_slice %6 {offsets = [0, 13], sizes = [4, 1], strides = [1, 1]} : vector<4x36xf32> to vector<4x1xf32>
    %630 = vector.extract_strided_slice %623 {offsets = [1, 0], sizes = [1, 256], strides = [1, 1]} : vector<4x256xf32> to vector<1x256xf32>
    %631 = vector.broadcast %629 : vector<4x1xf32> to vector<4x256xf32>
    %632 = vector.broadcast %630 : vector<1x256xf32> to vector<4x256xf32>
    %633 = arith.mulf %631, %632 : vector<4x256xf32>
    %634 = arith.addf %628, %633 : vector<4x256xf32>
    %635 = vector.extract_strided_slice %6 {offsets = [0, 14], sizes = [4, 1], strides = [1, 1]} : vector<4x36xf32> to vector<4x1xf32>
    %636 = vector.extract_strided_slice %623 {offsets = [2, 0], sizes = [1, 256], strides = [1, 1]} : vector<4x256xf32> to vector<1x256xf32>
    %637 = vector.broadcast %635 : vector<4x1xf32> to vector<4x256xf32>
    %638 = vector.broadcast %636 : vector<1x256xf32> to vector<4x256xf32>
    %639 = arith.mulf %637, %638 : vector<4x256xf32>
    %640 = arith.addf %634, %639 : vector<4x256xf32>
    %641 = vector.extract_strided_slice %6 {offsets = [0, 15], sizes = [4, 1], strides = [1, 1]} : vector<4x36xf32> to vector<4x1xf32>
    %642 = vector.extract_strided_slice %623 {offsets = [3, 0], sizes = [1, 256], strides = [1, 1]} : vector<4x256xf32> to vector<1x256xf32>
    %643 = vector.broadcast %641 : vector<4x1xf32> to vector<4x256xf32>
    %644 = vector.broadcast %642 : vector<1x256xf32> to vector<4x256xf32>
    %645 = arith.mulf %643, %644 : vector<4x256xf32>
    %646 = arith.addf %640, %645 : vector<4x256xf32>
    %cst_79 = arith.constant 0.000000e+00 : f32
    %647 = vector.shape_cast %30 : vector<1x256xi1> to vector<1x256xi1>
    %648 = vector.broadcast %647 : vector<1x256xi1> to vector<4x256xi1>
    %649 = vector.broadcast %cst_79 : f32 to vector<4x256xf32>
    %650 = arith.select %648, %646, %649 : vector<4x256xi1>, vector<4x256xf32>
    %651 = arith.addf %622, %650 : vector<4x256xf32>
    %c0_80 = arith.constant 0 : index
    %c128_81 = arith.constant 128 : index
    %652 = vector.load %arg10[%c0_80, %c128_81] : memref<4x512xf32, #tpu.memory_space<vmem>>, vector<4x256xf32>
    %653 = vector.extract_strided_slice %6 {offsets = [0, 16], sizes = [4, 1], strides = [1, 1]} : vector<4x36xf32> to vector<4x1xf32>
    %654 = vector.extract_strided_slice %652 {offsets = [0, 0], sizes = [1, 256], strides = [1, 1]} : vector<4x256xf32> to vector<1x256xf32>
    %655 = vector.broadcast %653 : vector<4x1xf32> to vector<4x256xf32>
    %656 = vector.broadcast %654 : vector<1x256xf32> to vector<4x256xf32>
    %657 = arith.mulf %655, %656 : vector<4x256xf32>
    %658 = vector.extract_strided_slice %6 {offsets = [0, 17], sizes = [4, 1], strides = [1, 1]} : vector<4x36xf32> to vector<4x1xf32>
    %659 = vector.extract_strided_slice %652 {offsets = [1, 0], sizes = [1, 256], strides = [1, 1]} : vector<4x256xf32> to vector<1x256xf32>
    %660 = vector.broadcast %658 : vector<4x1xf32> to vector<4x256xf32>
    %661 = vector.broadcast %659 : vector<1x256xf32> to vector<4x256xf32>
    %662 = arith.mulf %660, %661 : vector<4x256xf32>
    %663 = arith.addf %657, %662 : vector<4x256xf32>
    %664 = vector.extract_strided_slice %6 {offsets = [0, 18], sizes = [4, 1], strides = [1, 1]} : vector<4x36xf32> to vector<4x1xf32>
    %665 = vector.extract_strided_slice %652 {offsets = [2, 0], sizes = [1, 256], strides = [1, 1]} : vector<4x256xf32> to vector<1x256xf32>
    %666 = vector.broadcast %664 : vector<4x1xf32> to vector<4x256xf32>
    %667 = vector.broadcast %665 : vector<1x256xf32> to vector<4x256xf32>
    %668 = arith.mulf %666, %667 : vector<4x256xf32>
    %669 = arith.addf %663, %668 : vector<4x256xf32>
    %670 = vector.extract_strided_slice %6 {offsets = [0, 19], sizes = [4, 1], strides = [1, 1]} : vector<4x36xf32> to vector<4x1xf32>
    %671 = vector.extract_strided_slice %652 {offsets = [3, 0], sizes = [1, 256], strides = [1, 1]} : vector<4x256xf32> to vector<1x256xf32>
    %672 = vector.broadcast %670 : vector<4x1xf32> to vector<4x256xf32>
    %673 = vector.broadcast %671 : vector<1x256xf32> to vector<4x256xf32>
    %674 = arith.mulf %672, %673 : vector<4x256xf32>
    %675 = arith.addf %669, %674 : vector<4x256xf32>
    %676 = arith.addf %651, %675 : vector<4x256xf32>
    %c0_82 = arith.constant 0 : index
    %c129_83 = arith.constant 129 : index
    %677 = vector.load %arg10[%c0_82, %c129_83] : memref<4x512xf32, #tpu.memory_space<vmem>>, vector<4x256xf32>
    %678 = vector.extract_strided_slice %6 {offsets = [0, 20], sizes = [4, 1], strides = [1, 1]} : vector<4x36xf32> to vector<4x1xf32>
    %679 = vector.extract_strided_slice %677 {offsets = [0, 0], sizes = [1, 256], strides = [1, 1]} : vector<4x256xf32> to vector<1x256xf32>
    %680 = vector.broadcast %678 : vector<4x1xf32> to vector<4x256xf32>
    %681 = vector.broadcast %679 : vector<1x256xf32> to vector<4x256xf32>
    %682 = arith.mulf %680, %681 : vector<4x256xf32>
    %683 = vector.extract_strided_slice %6 {offsets = [0, 21], sizes = [4, 1], strides = [1, 1]} : vector<4x36xf32> to vector<4x1xf32>
    %684 = vector.extract_strided_slice %677 {offsets = [1, 0], sizes = [1, 256], strides = [1, 1]} : vector<4x256xf32> to vector<1x256xf32>
    %685 = vector.broadcast %683 : vector<4x1xf32> to vector<4x256xf32>
    %686 = vector.broadcast %684 : vector<1x256xf32> to vector<4x256xf32>
    %687 = arith.mulf %685, %686 : vector<4x256xf32>
    %688 = arith.addf %682, %687 : vector<4x256xf32>
    %689 = vector.extract_strided_slice %6 {offsets = [0, 22], sizes = [4, 1], strides = [1, 1]} : vector<4x36xf32> to vector<4x1xf32>
    %690 = vector.extract_strided_slice %677 {offsets = [2, 0], sizes = [1, 256], strides = [1, 1]} : vector<4x256xf32> to vector<1x256xf32>
    %691 = vector.broadcast %689 : vector<4x1xf32> to vector<4x256xf32>
    %692 = vector.broadcast %690 : vector<1x256xf32> to vector<4x256xf32>
    %693 = arith.mulf %691, %692 : vector<4x256xf32>
    %694 = arith.addf %688, %693 : vector<4x256xf32>
    %695 = vector.extract_strided_slice %6 {offsets = [0, 23], sizes = [4, 1], strides = [1, 1]} : vector<4x36xf32> to vector<4x1xf32>
    %696 = vector.extract_strided_slice %677 {offsets = [3, 0], sizes = [1, 256], strides = [1, 1]} : vector<4x256xf32> to vector<1x256xf32>
    %697 = vector.broadcast %695 : vector<4x1xf32> to vector<4x256xf32>
    %698 = vector.broadcast %696 : vector<1x256xf32> to vector<4x256xf32>
    %699 = arith.mulf %697, %698 : vector<4x256xf32>
    %700 = arith.addf %694, %699 : vector<4x256xf32>
    %cst_84 = arith.constant 0.000000e+00 : f32
    %701 = vector.shape_cast %32 : vector<1x256xi1> to vector<1x256xi1>
    %702 = vector.broadcast %701 : vector<1x256xi1> to vector<4x256xi1>
    %703 = vector.broadcast %cst_84 : f32 to vector<4x256xf32>
    %704 = arith.select %702, %700, %703 : vector<4x256xi1>, vector<4x256xf32>
    %705 = arith.addf %676, %704 : vector<4x256xf32>
    %c0_85 = arith.constant 0 : index
    %c143_86 = arith.constant 143 : index
    %706 = vector.load %arg10[%c0_85, %c143_86] : memref<4x512xf32, #tpu.memory_space<vmem>>, vector<4x256xf32>
    %707 = vector.extract_strided_slice %6 {offsets = [0, 24], sizes = [4, 1], strides = [1, 1]} : vector<4x36xf32> to vector<4x1xf32>
    %708 = vector.extract_strided_slice %706 {offsets = [0, 0], sizes = [1, 256], strides = [1, 1]} : vector<4x256xf32> to vector<1x256xf32>
    %709 = vector.broadcast %707 : vector<4x1xf32> to vector<4x256xf32>
    %710 = vector.broadcast %708 : vector<1x256xf32> to vector<4x256xf32>
    %711 = arith.mulf %709, %710 : vector<4x256xf32>
    %712 = vector.extract_strided_slice %6 {offsets = [0, 25], sizes = [4, 1], strides = [1, 1]} : vector<4x36xf32> to vector<4x1xf32>
    %713 = vector.extract_strided_slice %706 {offsets = [1, 0], sizes = [1, 256], strides = [1, 1]} : vector<4x256xf32> to vector<1x256xf32>
    %714 = vector.broadcast %712 : vector<4x1xf32> to vector<4x256xf32>
    %715 = vector.broadcast %713 : vector<1x256xf32> to vector<4x256xf32>
    %716 = arith.mulf %714, %715 : vector<4x256xf32>
    %717 = arith.addf %711, %716 : vector<4x256xf32>
    %718 = vector.extract_strided_slice %6 {offsets = [0, 26], sizes = [4, 1], strides = [1, 1]} : vector<4x36xf32> to vector<4x1xf32>
    %719 = vector.extract_strided_slice %706 {offsets = [2, 0], sizes = [1, 256], strides = [1, 1]} : vector<4x256xf32> to vector<1x256xf32>
    %720 = vector.broadcast %718 : vector<4x1xf32> to vector<4x256xf32>
    %721 = vector.broadcast %719 : vector<1x256xf32> to vector<4x256xf32>
    %722 = arith.mulf %720, %721 : vector<4x256xf32>
    %723 = arith.addf %717, %722 : vector<4x256xf32>
    %724 = vector.extract_strided_slice %6 {offsets = [0, 27], sizes = [4, 1], strides = [1, 1]} : vector<4x36xf32> to vector<4x1xf32>
    %725 = vector.extract_strided_slice %706 {offsets = [3, 0], sizes = [1, 256], strides = [1, 1]} : vector<4x256xf32> to vector<1x256xf32>
    %726 = vector.broadcast %724 : vector<4x1xf32> to vector<4x256xf32>
    %727 = vector.broadcast %725 : vector<1x256xf32> to vector<4x256xf32>
    %728 = arith.mulf %726, %727 : vector<4x256xf32>
    %729 = arith.addf %723, %728 : vector<4x256xf32>
    %cst_87 = arith.constant 0.000000e+00 : f32
    %730 = vector.shape_cast %30 : vector<1x256xi1> to vector<1x256xi1>
    %731 = vector.broadcast %730 : vector<1x256xi1> to vector<4x256xi1>
    %732 = vector.broadcast %cst_87 : f32 to vector<4x256xf32>
    %733 = arith.select %731, %729, %732 : vector<4x256xi1>, vector<4x256xf32>
    %734 = arith.addf %705, %733 : vector<4x256xf32>
    %c0_88 = arith.constant 0 : index
    %c144_89 = arith.constant 144 : index
    %735 = vector.load %arg10[%c0_88, %c144_89] : memref<4x512xf32, #tpu.memory_space<vmem>>, vector<4x256xf32>
    %736 = vector.extract_strided_slice %6 {offsets = [0, 28], sizes = [4, 1], strides = [1, 1]} : vector<4x36xf32> to vector<4x1xf32>
    %737 = vector.extract_strided_slice %735 {offsets = [0, 0], sizes = [1, 256], strides = [1, 1]} : vector<4x256xf32> to vector<1x256xf32>
    %738 = vector.broadcast %736 : vector<4x1xf32> to vector<4x256xf32>
    %739 = vector.broadcast %737 : vector<1x256xf32> to vector<4x256xf32>
    %740 = arith.mulf %738, %739 : vector<4x256xf32>
    %741 = vector.extract_strided_slice %6 {offsets = [0, 29], sizes = [4, 1], strides = [1, 1]} : vector<4x36xf32> to vector<4x1xf32>
    %742 = vector.extract_strided_slice %735 {offsets = [1, 0], sizes = [1, 256], strides = [1, 1]} : vector<4x256xf32> to vector<1x256xf32>
    %743 = vector.broadcast %741 : vector<4x1xf32> to vector<4x256xf32>
    %744 = vector.broadcast %742 : vector<1x256xf32> to vector<4x256xf32>
    %745 = arith.mulf %743, %744 : vector<4x256xf32>
    %746 = arith.addf %740, %745 : vector<4x256xf32>
    %747 = vector.extract_strided_slice %6 {offsets = [0, 30], sizes = [4, 1], strides = [1, 1]} : vector<4x36xf32> to vector<4x1xf32>
    %748 = vector.extract_strided_slice %735 {offsets = [2, 0], sizes = [1, 256], strides = [1, 1]} : vector<4x256xf32> to vector<1x256xf32>
    %749 = vector.broadcast %747 : vector<4x1xf32> to vector<4x256xf32>
    %750 = vector.broadcast %748 : vector<1x256xf32> to vector<4x256xf32>
    %751 = arith.mulf %749, %750 : vector<4x256xf32>
    %752 = arith.addf %746, %751 : vector<4x256xf32>
    %753 = vector.extract_strided_slice %6 {offsets = [0, 31], sizes = [4, 1], strides = [1, 1]} : vector<4x36xf32> to vector<4x1xf32>
    %754 = vector.extract_strided_slice %735 {offsets = [3, 0], sizes = [1, 256], strides = [1, 1]} : vector<4x256xf32> to vector<1x256xf32>
    %755 = vector.broadcast %753 : vector<4x1xf32> to vector<4x256xf32>
    %756 = vector.broadcast %754 : vector<1x256xf32> to vector<4x256xf32>
    %757 = arith.mulf %755, %756 : vector<4x256xf32>
    %758 = arith.addf %752, %757 : vector<4x256xf32>
    %759 = arith.addf %734, %758 : vector<4x256xf32>
    %c0_90 = arith.constant 0 : index
    %c145_91 = arith.constant 145 : index
    %760 = vector.load %arg10[%c0_90, %c145_91] : memref<4x512xf32, #tpu.memory_space<vmem>>, vector<4x256xf32>
    %761 = vector.extract_strided_slice %6 {offsets = [0, 32], sizes = [4, 1], strides = [1, 1]} : vector<4x36xf32> to vector<4x1xf32>
    %762 = vector.extract_strided_slice %760 {offsets = [0, 0], sizes = [1, 256], strides = [1, 1]} : vector<4x256xf32> to vector<1x256xf32>
    %763 = vector.broadcast %761 : vector<4x1xf32> to vector<4x256xf32>
    %764 = vector.broadcast %762 : vector<1x256xf32> to vector<4x256xf32>
    %765 = arith.mulf %763, %764 : vector<4x256xf32>
    %766 = vector.extract_strided_slice %6 {offsets = [0, 33], sizes = [4, 1], strides = [1, 1]} : vector<4x36xf32> to vector<4x1xf32>
    %767 = vector.extract_strided_slice %760 {offsets = [1, 0], sizes = [1, 256], strides = [1, 1]} : vector<4x256xf32> to vector<1x256xf32>
    %768 = vector.broadcast %766 : vector<4x1xf32> to vector<4x256xf32>
    %769 = vector.broadcast %767 : vector<1x256xf32> to vector<4x256xf32>
    %770 = arith.mulf %768, %769 : vector<4x256xf32>
    %771 = arith.addf %765, %770 : vector<4x256xf32>
    %772 = vector.extract_strided_slice %6 {offsets = [0, 34], sizes = [4, 1], strides = [1, 1]} : vector<4x36xf32> to vector<4x1xf32>
    %773 = vector.extract_strided_slice %760 {offsets = [2, 0], sizes = [1, 256], strides = [1, 1]} : vector<4x256xf32> to vector<1x256xf32>
    %774 = vector.broadcast %772 : vector<4x1xf32> to vector<4x256xf32>
    %775 = vector.broadcast %773 : vector<1x256xf32> to vector<4x256xf32>
    %776 = arith.mulf %774, %775 : vector<4x256xf32>
    %777 = arith.addf %771, %776 : vector<4x256xf32>
    %778 = vector.extract_strided_slice %6 {offsets = [0, 35], sizes = [4, 1], strides = [1, 1]} : vector<4x36xf32> to vector<4x1xf32>
    %779 = vector.extract_strided_slice %760 {offsets = [3, 0], sizes = [1, 256], strides = [1, 1]} : vector<4x256xf32> to vector<1x256xf32>
    %780 = vector.broadcast %778 : vector<4x1xf32> to vector<4x256xf32>
    %781 = vector.broadcast %779 : vector<1x256xf32> to vector<4x256xf32>
    %782 = arith.mulf %780, %781 : vector<4x256xf32>
    %783 = arith.addf %777, %782 : vector<4x256xf32>
    %cst_92 = arith.constant 0.000000e+00 : f32
    %784 = vector.shape_cast %32 : vector<1x256xi1> to vector<1x256xi1>
    %785 = vector.broadcast %784 : vector<1x256xi1> to vector<4x256xi1>
    %786 = vector.broadcast %cst_92 : f32 to vector<4x256xf32>
    %787 = arith.select %785, %783, %786 : vector<4x256xi1>, vector<4x256xf32>
    %788 = arith.addf %759, %787 : vector<4x256xf32>
    %789 = vector.broadcast %9 : vector<4x1xf32> to vector<4x256xf32>
    %790 = arith.addf %788, %789 : vector<4x256xf32>
    %cst_93 = arith.constant 0.000000e+00 : f32
    %791 = vector.broadcast %cst_93 : f32 to vector<4x256xf32>
    %792 = arith.maximumf %790, %791 : vector<4x256xf32>
    %793 = vector.shape_cast %792 : vector<4x256xf32> to vector<1x4x256xf32>
    %c0_94 = arith.constant 0 : index
    %c0_95 = arith.constant 0 : index
    %c0_96 = arith.constant 0 : index
    %794 = vector.load %arg8[%c0_94, %c0_95, %c0_96] : memref<1x4x256xf32, #tpu.memory_space<vmem>>, vector<1x4x256xf32>
    tpu.vector_store %arg8[%c0_94, %c0_95, %c0_96], %793 {strides = array<i32>} : memref<1x4x256xf32, #tpu.memory_space<vmem>>, vector<1x4x256xf32>,
    %c0_97 = arith.constant 0 : index
    %c128_98 = arith.constant 128 : index
    %795 = vector.load %arg10[%c0_97, %c128_98] : memref<4x512xf32, #tpu.memory_space<vmem>>, vector<4x256xf32>
    tpu.vector_store %arg10[%c0_97, %c128_98], %792 {strides = array<i32>} : memref<4x512xf32, #tpu.memory_space<vmem>>, vector<4x256xf32>,
    %796 = tpu.iota {dimensions = array<i32: 0>} : vector<16x8xi32>
    %797 = tpu.iota {dimensions = array<i32: 1>} : vector<16x8xi32>
    %c2_i32 = arith.constant 2 : i32
    %798 = vector.broadcast %c2_i32 : i32 to vector<16x8xi32>
    %799 = arith.muli %798, %797 : vector<16x8xi32>
    %800 = arith.cmpi eq, %796, %799 : vector<16x8xi32>
    %801 = arith.extui %800 : vector<16x8xi1> to vector<16x8xi32>
    %802 = arith.sitofp %801 : vector<16x8xi32> to vector<16x8xf32>
    %c0_99 = arith.constant 0 : index
    %c128_100 = arith.constant 128 : index
    %803 = vector.load %arg10[%c0_99, %c128_100] : memref<4x512xf32, #tpu.memory_space<vmem>>, vector<4x16xf32>
    %c0_101 = arith.constant 0 : index
    %c129_102 = arith.constant 129 : index
    %804 = vector.load %arg10[%c0_101, %c129_102] : memref<4x512xf32, #tpu.memory_space<vmem>>, vector<4x16xf32>
    %c0_103 = arith.constant 0 : index
    %c144_104 = arith.constant 144 : index
    %805 = vector.load %arg10[%c0_103, %c144_104] : memref<4x512xf32, #tpu.memory_space<vmem>>, vector<4x16xf32>
    %c0_105 = arith.constant 0 : index
    %c145_106 = arith.constant 145 : index
    %806 = vector.load %arg10[%c0_105, %c145_106] : memref<4x512xf32, #tpu.memory_space<vmem>>, vector<4x16xf32>
    %807 = arith.maximumf %803, %804 : vector<4x16xf32>
    %808 = arith.maximumf %805, %806 : vector<4x16xf32>
    %809 = arith.maximumf %807, %808 : vector<4x16xf32>
    %cst_107 = arith.constant dense<0.000000e+00> : vector<4x8xf32>
    %810 = tpu.matmul %809, %802, %cst_107 {dimension_numbers = #tpu.dot_dimension_numbers<[1], [0], [0], [1], [0, 0, 1, 1], [], []>} : vector<4x16xf32>, vector<16x8xf32>, vector<4x8xf32> -> vector<4x8xf32>
    %c0_108 = arith.constant 0 : index
    %c0_109 = arith.constant 0 : index
    %c0_110 = arith.constant 0 : index
    %811 = vector.load %arg9[%c0_108, %c0_109, %c0_110] : memref<1x4x64xf32, #tpu.memory_space<vmem>>, vector<1x4x8xf32>
    %812 = vector.shape_cast %811 : vector<1x4x8xf32> to vector<4x8xf32>
    %813 = vector.shape_cast %810 : vector<4x8xf32> to vector<1x4x8xf32>
    tpu.vector_store %arg9[%c0_108, %c0_109, %c0_110], %813 {strides = array<i32>} : memref<1x4x64xf32, #tpu.memory_space<vmem>>, vector<1x4x8xf32>,
    %c0_111 = arith.constant 0 : index
    %c160 = arith.constant 160 : index
    %814 = vector.load %arg10[%c0_111, %c160] : memref<4x512xf32, #tpu.memory_space<vmem>>, vector<4x16xf32>
    %c0_112 = arith.constant 0 : index
    %c161 = arith.constant 161 : index
    %815 = vector.load %arg10[%c0_112, %c161] : memref<4x512xf32, #tpu.memory_space<vmem>>, vector<4x16xf32>
    %c0_113 = arith.constant 0 : index
    %c176 = arith.constant 176 : index
    %816 = vector.load %arg10[%c0_113, %c176] : memref<4x512xf32, #tpu.memory_space<vmem>>, vector<4x16xf32>
    %c0_114 = arith.constant 0 : index
    %c177 = arith.constant 177 : index
    %817 = vector.load %arg10[%c0_114, %c177] : memref<4x512xf32, #tpu.memory_space<vmem>>, vector<4x16xf32>
    %818 = arith.maximumf %814, %815 : vector<4x16xf32>
    %819 = arith.maximumf %816, %817 : vector<4x16xf32>
    %820 = arith.maximumf %818, %819 : vector<4x16xf32>
    %cst_115 = arith.constant dense<0.000000e+00> : vector<4x8xf32>
    %821 = tpu.matmul %820, %802, %cst_115 {dimension_numbers = #tpu.dot_dimension_numbers<[1], [0], [0], [1], [0, 0, 1, 1], [], []>} : vector<4x16xf32>, vector<16x8xf32>, vector<4x8xf32> -> vector<4x8xf32>
    %c0_116 = arith.constant 0 : index
    %c0_117 = arith.constant 0 : index
    %c8 = arith.constant 8 : index
    %822 = vector.load %arg9[%c0_116, %c0_117, %c8] : memref<1x4x64xf32, #tpu.memory_space<vmem>>, vector<1x4x8xf32>
    %823 = vector.shape_cast %822 : vector<1x4x8xf32> to vector<4x8xf32>
    %824 = vector.shape_cast %821 : vector<4x8xf32> to vector<1x4x8xf32>
    tpu.vector_store %arg9[%c0_116, %c0_117, %c8], %824 {strides = array<i32>} : memref<1x4x64xf32, #tpu.memory_space<vmem>>, vector<1x4x8xf32>,
    %c0_118 = arith.constant 0 : index
    %c192 = arith.constant 192 : index
    %825 = vector.load %arg10[%c0_118, %c192] : memref<4x512xf32, #tpu.memory_space<vmem>>, vector<4x16xf32>
    %c0_119 = arith.constant 0 : index
    %c193 = arith.constant 193 : index
    %826 = vector.load %arg10[%c0_119, %c193] : memref<4x512xf32, #tpu.memory_space<vmem>>, vector<4x16xf32>
    %c0_120 = arith.constant 0 : index
    %c208 = arith.constant 208 : index
    %827 = vector.load %arg10[%c0_120, %c208] : memref<4x512xf32, #tpu.memory_space<vmem>>, vector<4x16xf32>
    %c0_121 = arith.constant 0 : index
    %c209 = arith.constant 209 : index
    %828 = vector.load %arg10[%c0_121, %c209] : memref<4x512xf32, #tpu.memory_space<vmem>>, vector<4x16xf32>
    %829 = arith.maximumf %825, %826 : vector<4x16xf32>
    %830 = arith.maximumf %827, %828 : vector<4x16xf32>
    %831 = arith.maximumf %829, %830 : vector<4x16xf32>
    %cst_122 = arith.constant dense<0.000000e+00> : vector<4x8xf32>
    %832 = tpu.matmul %831, %802, %cst_122 {dimension_numbers = #tpu.dot_dimension_numbers<[1], [0], [0], [1], [0, 0, 1, 1], [], []>} : vector<4x16xf32>, vector<16x8xf32>, vector<4x8xf32> -> vector<4x8xf32>
    %c0_123 = arith.constant 0 : index
    %c0_124 = arith.constant 0 : index
    %c16 = arith.constant 16 : index
    %833 = vector.load %arg9[%c0_123, %c0_124, %c16] : memref<1x4x64xf32, #tpu.memory_space<vmem>>, vector<1x4x8xf32>
    %834 = vector.shape_cast %833 : vector<1x4x8xf32> to vector<4x8xf32>
    %835 = vector.shape_cast %832 : vector<4x8xf32> to vector<1x4x8xf32>
    tpu.vector_store %arg9[%c0_123, %c0_124, %c16], %835 {strides = array<i32>} : memref<1x4x64xf32, #tpu.memory_space<vmem>>, vector<1x4x8xf32>,
    %c0_125 = arith.constant 0 : index
    %c224 = arith.constant 224 : index
    %836 = vector.load %arg10[%c0_125, %c224] : memref<4x512xf32, #tpu.memory_space<vmem>>, vector<4x16xf32>
    %c0_126 = arith.constant 0 : index
    %c225 = arith.constant 225 : index
    %837 = vector.load %arg10[%c0_126, %c225] : memref<4x512xf32, #tpu.memory_space<vmem>>, vector<4x16xf32>
    %c0_127 = arith.constant 0 : index
    %c240 = arith.constant 240 : index
    %838 = vector.load %arg10[%c0_127, %c240] : memref<4x512xf32, #tpu.memory_space<vmem>>, vector<4x16xf32>
    %c0_128 = arith.constant 0 : index
    %c241 = arith.constant 241 : index
    %839 = vector.load %arg10[%c0_128, %c241] : memref<4x512xf32, #tpu.memory_space<vmem>>, vector<4x16xf32>
    %840 = arith.maximumf %836, %837 : vector<4x16xf32>
    %841 = arith.maximumf %838, %839 : vector<4x16xf32>
    %842 = arith.maximumf %840, %841 : vector<4x16xf32>
    %cst_129 = arith.constant dense<0.000000e+00> : vector<4x8xf32>
    %843 = tpu.matmul %842, %802, %cst_129 {dimension_numbers = #tpu.dot_dimension_numbers<[1], [0], [0], [1], [0, 0, 1, 1], [], []>} : vector<4x16xf32>, vector<16x8xf32>, vector<4x8xf32> -> vector<4x8xf32>
    %c0_130 = arith.constant 0 : index
    %c0_131 = arith.constant 0 : index
    %c24 = arith.constant 24 : index
    %844 = vector.load %arg9[%c0_130, %c0_131, %c24] : memref<1x4x64xf32, #tpu.memory_space<vmem>>, vector<1x4x8xf32>
    %845 = vector.shape_cast %844 : vector<1x4x8xf32> to vector<4x8xf32>
    %846 = vector.shape_cast %843 : vector<4x8xf32> to vector<1x4x8xf32>
    tpu.vector_store %arg9[%c0_130, %c0_131, %c24], %846 {strides = array<i32>} : memref<1x4x64xf32, #tpu.memory_space<vmem>>, vector<1x4x8xf32>,
    %c0_132 = arith.constant 0 : index
    %c256 = arith.constant 256 : index
    %847 = vector.load %arg10[%c0_132, %c256] : memref<4x512xf32, #tpu.memory_space<vmem>>, vector<4x16xf32>
    %c0_133 = arith.constant 0 : index
    %c257 = arith.constant 257 : index
    %848 = vector.load %arg10[%c0_133, %c257] : memref<4x512xf32, #tpu.memory_space<vmem>>, vector<4x16xf32>
    %c0_134 = arith.constant 0 : index
    %c272 = arith.constant 272 : index
    %849 = vector.load %arg10[%c0_134, %c272] : memref<4x512xf32, #tpu.memory_space<vmem>>, vector<4x16xf32>
    %c0_135 = arith.constant 0 : index
    %c273 = arith.constant 273 : index
    %850 = vector.load %arg10[%c0_135, %c273] : memref<4x512xf32, #tpu.memory_space<vmem>>, vector<4x16xf32>
    %851 = arith.maximumf %847, %848 : vector<4x16xf32>
    %852 = arith.maximumf %849, %850 : vector<4x16xf32>
    %853 = arith.maximumf %851, %852 : vector<4x16xf32>
    %cst_136 = arith.constant dense<0.000000e+00> : vector<4x8xf32>
    %854 = tpu.matmul %853, %802, %cst_136 {dimension_numbers = #tpu.dot_dimension_numbers<[1], [0], [0], [1], [0, 0, 1, 1], [], []>} : vector<4x16xf32>, vector<16x8xf32>, vector<4x8xf32> -> vector<4x8xf32>
    %c0_137 = arith.constant 0 : index
    %c0_138 = arith.constant 0 : index
    %c32 = arith.constant 32 : index
    %855 = vector.load %arg9[%c0_137, %c0_138, %c32] : memref<1x4x64xf32, #tpu.memory_space<vmem>>, vector<1x4x8xf32>
    %856 = vector.shape_cast %855 : vector<1x4x8xf32> to vector<4x8xf32>
    %857 = vector.shape_cast %854 : vector<4x8xf32> to vector<1x4x8xf32>
    tpu.vector_store %arg9[%c0_137, %c0_138, %c32], %857 {strides = array<i32>} : memref<1x4x64xf32, #tpu.memory_space<vmem>>, vector<1x4x8xf32>,
    %c0_139 = arith.constant 0 : index
    %c288 = arith.constant 288 : index
    %858 = vector.load %arg10[%c0_139, %c288] : memref<4x512xf32, #tpu.memory_space<vmem>>, vector<4x16xf32>
    %c0_140 = arith.constant 0 : index
    %c289 = arith.constant 289 : index
    %859 = vector.load %arg10[%c0_140, %c289] : memref<4x512xf32, #tpu.memory_space<vmem>>, vector<4x16xf32>
    %c0_141 = arith.constant 0 : index
    %c304 = arith.constant 304 : index
    %860 = vector.load %arg10[%c0_141, %c304] : memref<4x512xf32, #tpu.memory_space<vmem>>, vector<4x16xf32>
    %c0_142 = arith.constant 0 : index
    %c305 = arith.constant 305 : index
    %861 = vector.load %arg10[%c0_142, %c305] : memref<4x512xf32, #tpu.memory_space<vmem>>, vector<4x16xf32>
    %862 = arith.maximumf %858, %859 : vector<4x16xf32>
    %863 = arith.maximumf %860, %861 : vector<4x16xf32>
    %864 = arith.maximumf %862, %863 : vector<4x16xf32>
    %cst_143 = arith.constant dense<0.000000e+00> : vector<4x8xf32>
    %865 = tpu.matmul %864, %802, %cst_143 {dimension_numbers = #tpu.dot_dimension_numbers<[1], [0], [0], [1], [0, 0, 1, 1], [], []>} : vector<4x16xf32>, vector<16x8xf32>, vector<4x8xf32> -> vector<4x8xf32>
    %c0_144 = arith.constant 0 : index
    %c0_145 = arith.constant 0 : index
    %c40 = arith.constant 40 : index
    %866 = vector.load %arg9[%c0_144, %c0_145, %c40] : memref<1x4x64xf32, #tpu.memory_space<vmem>>, vector<1x4x8xf32>
    %867 = vector.shape_cast %866 : vector<1x4x8xf32> to vector<4x8xf32>
    %868 = vector.shape_cast %865 : vector<4x8xf32> to vector<1x4x8xf32>
    tpu.vector_store %arg9[%c0_144, %c0_145, %c40], %868 {strides = array<i32>} : memref<1x4x64xf32, #tpu.memory_space<vmem>>, vector<1x4x8xf32>,
    %c0_146 = arith.constant 0 : index
    %c320 = arith.constant 320 : index
    %869 = vector.load %arg10[%c0_146, %c320] : memref<4x512xf32, #tpu.memory_space<vmem>>, vector<4x16xf32>
    %c0_147 = arith.constant 0 : index
    %c321 = arith.constant 321 : index
    %870 = vector.load %arg10[%c0_147, %c321] : memref<4x512xf32, #tpu.memory_space<vmem>>, vector<4x16xf32>
    %c0_148 = arith.constant 0 : index
    %c336 = arith.constant 336 : index
    %871 = vector.load %arg10[%c0_148, %c336] : memref<4x512xf32, #tpu.memory_space<vmem>>, vector<4x16xf32>
    %c0_149 = arith.constant 0 : index
    %c337 = arith.constant 337 : index
    %872 = vector.load %arg10[%c0_149, %c337] : memref<4x512xf32, #tpu.memory_space<vmem>>, vector<4x16xf32>
    %873 = arith.maximumf %869, %870 : vector<4x16xf32>
    %874 = arith.maximumf %871, %872 : vector<4x16xf32>
    %875 = arith.maximumf %873, %874 : vector<4x16xf32>
    %cst_150 = arith.constant dense<0.000000e+00> : vector<4x8xf32>
    %876 = tpu.matmul %875, %802, %cst_150 {dimension_numbers = #tpu.dot_dimension_numbers<[1], [0], [0], [1], [0, 0, 1, 1], [], []>} : vector<4x16xf32>, vector<16x8xf32>, vector<4x8xf32> -> vector<4x8xf32>
    %c0_151 = arith.constant 0 : index
    %c0_152 = arith.constant 0 : index
    %c48 = arith.constant 48 : index
    %877 = vector.load %arg9[%c0_151, %c0_152, %c48] : memref<1x4x64xf32, #tpu.memory_space<vmem>>, vector<1x4x8xf32>
    %878 = vector.shape_cast %877 : vector<1x4x8xf32> to vector<4x8xf32>
    %879 = vector.shape_cast %876 : vector<4x8xf32> to vector<1x4x8xf32>
    tpu.vector_store %arg9[%c0_151, %c0_152, %c48], %879 {strides = array<i32>} : memref<1x4x64xf32, #tpu.memory_space<vmem>>, vector<1x4x8xf32>,
    %c0_153 = arith.constant 0 : index
    %c352 = arith.constant 352 : index
    %880 = vector.load %arg10[%c0_153, %c352] : memref<4x512xf32, #tpu.memory_space<vmem>>, vector<4x16xf32>
    %c0_154 = arith.constant 0 : index
    %c353 = arith.constant 353 : index
    %881 = vector.load %arg10[%c0_154, %c353] : memref<4x512xf32, #tpu.memory_space<vmem>>, vector<4x16xf32>
    %c0_155 = arith.constant 0 : index
    %c368 = arith.constant 368 : index
    %882 = vector.load %arg10[%c0_155, %c368] : memref<4x512xf32, #tpu.memory_space<vmem>>, vector<4x16xf32>
    %c0_156 = arith.constant 0 : index
    %c369 = arith.constant 369 : index
    %883 = vector.load %arg10[%c0_156, %c369] : memref<4x512xf32, #tpu.memory_space<vmem>>, vector<4x16xf32>
    %884 = arith.maximumf %880, %881 : vector<4x16xf32>
    %885 = arith.maximumf %882, %883 : vector<4x16xf32>
    %886 = arith.maximumf %884, %885 : vector<4x16xf32>
    %cst_157 = arith.constant dense<0.000000e+00> : vector<4x8xf32>
    %887 = tpu.matmul %886, %802, %cst_157 {dimension_numbers = #tpu.dot_dimension_numbers<[1], [0], [0], [1], [0, 0, 1, 1], [], []>} : vector<4x16xf32>, vector<16x8xf32>, vector<4x8xf32> -> vector<4x8xf32>
    %c0_158 = arith.constant 0 : index
    %c0_159 = arith.constant 0 : index
    %c56 = arith.constant 56 : index
    %888 = vector.load %arg9[%c0_158, %c0_159, %c56] : memref<1x4x64xf32, #tpu.memory_space<vmem>>, vector<1x4x8xf32>
    %889 = vector.shape_cast %888 : vector<1x4x8xf32> to vector<4x8xf32>
    %890 = vector.shape_cast %887 : vector<4x8xf32> to vector<1x4x8xf32>
    tpu.vector_store %arg9[%c0_158, %c0_159, %c56], %890 {strides = array<i32>} : memref<1x4x64xf32, #tpu.memory_space<vmem>>, vector<1x4x8xf32>,
    return
  }
  func.func @transform_0(%arg0: i32) -> (i32, i32, i32) {
    %c0_i32 = arith.constant 0 : i32
    %c0_i32_0 = arith.constant 0 : i32
    %c0_i32_1 = arith.constant 0 : i32
    return %arg0, %c0_i32, %c0_i32_0 : i32, i32, i32
  }
  func.func @transform_1(%arg0: i32) -> (i32, i32) {
    %c0_i32 = arith.constant 0 : i32
    %c0_i32_0 = arith.constant 0 : i32
    %c0_i32_1 = arith.constant 0 : i32
    return %c0_i32, %c0_i32_0 : i32, i32
  }
  func.func @transform_2(%arg0: i32) -> (i32, i32) {
    %c0_i32 = arith.constant 0 : i32
    %c0_i32_0 = arith.constant 0 : i32
    %c0_i32_1 = arith.constant 0 : i32
    return %c0_i32, %c0_i32_0 : i32, i32
  }
  func.func @transform_3(%arg0: i32) -> (i32, i32) {
    %c0_i32 = arith.constant 0 : i32
    %c0_i32_0 = arith.constant 0 : i32
    %c0_i32_1 = arith.constant 0 : i32
    return %c0_i32, %c0_i32_0 : i32, i32
  }
  func.func @transform_4(%arg0: i32) -> (i32, i32) {
    %c0_i32 = arith.constant 0 : i32
    %c0_i32_0 = arith.constant 0 : i32
    %c0_i32_1 = arith.constant 0 : i32
    return %c0_i32, %c0_i32_0 : i32, i32
  }
  func.func @transform_5(%arg0: i32) -> (i32, i32) {
    %c0_i32 = arith.constant 0 : i32
    %c0_i32_0 = arith.constant 0 : i32
    %c0_i32_1 = arith.constant 0 : i32
    return %c0_i32, %c0_i32_0 : i32, i32
  }
  func.func @transform_6(%arg0: i32) -> (i32, i32) {
    %c0_i32 = arith.constant 0 : i32
    %c0_i32_0 = arith.constant 0 : i32
    %c0_i32_1 = arith.constant 0 : i32
    return %c0_i32, %c0_i32_0 : i32, i32
  }
  func.func @transform_7(%arg0: i32) -> (i32, i32, i32) {
    %c0_i32 = arith.constant 0 : i32
    %c0_i32_0 = arith.constant 0 : i32
    %c0_i32_1 = arith.constant 0 : i32
    return %arg0, %c0_i32, %c0_i32_0 : i32, i32, i32
  }
  func.func @transform_8(%arg0: i32) -> (i32, i32, i32) {
    %c0_i32 = arith.constant 0 : i32
    %c0_i32_0 = arith.constant 0 : i32
    %c0_i32_1 = arith.constant 0 : i32
    return %arg0, %c0_i32, %c0_i32_0 : i32, i32, i32
  }
}

</mosaic_0001>

<bundles_post_ra>
// kernel: generator_encoder_forward.1
= control target key start
LH: loop header
LB: loop body
LE: loop exit
PB: predicated region body
PF: predicated region fallthrough
CT: control target
= control target key end

     0   :  { %s2896_s27 = smov 0   ;;  %s4105_s0 = inlined_call_operand.vmem [shape: f32[2,4,256], index: 0, kind: input, shape index: {}]   ;;  %s4106_s1 = inlined_call_operand.vmem [shape: f32[4,36], index: 1, kind: input, shape index: {}]   ;;  %s4107_s2 = inlined_call_operand.vmem [shape: f32[4,1], index: 2, kind: input, shape index: {}]   ;;  %s4108_s3 = inlined_call_operand.vmem [shape: f32[4,36], index: 3, kind: input, shape index: {}]   ;;  %s4109_s4 = inlined_call_operand.vmem [shape: f32[4,1], index: 4, kind: input, shape index: {}]   ;;  %s4110_s5 = inlined_call_operand.vmem [shape: f32[4,36], index: 5, kind: input, shape index: {}]   ;;  %s4111_s6 = inlined_call_operand.vmem [shape: f32[4,1], index: 6, kind: input, shape index: {}]   ;;  %s4112_s7 = inlined_call_operand.vmem [shape: f32[2,4,256], index: 7, kind: output, shape index: {0}]   ;;  %s4113_s8 = inlined_call_operand.vmem [shape: f32[2,4,64], index: 8, kind: output, shape index: {1}]  }
   0x1 LB: > { %s2576_s28 = sadd.s32 4294967295, %s2795_s27   ;;  %p2580_p0 = scmp.ge.s32.totalorder %s2795_s27, 1  ;;  %s2795_s27 = sphi %s2896_s27, %s19_s27  }
   0x2   : > { %p265_p1 = scmp.lt.s32.totalorder %s2795_s27, 3 }
   0x4   : > { %p266_p2 = pnand %p2580_p0, %p265_p1 }
   0x5   : > { %p303_p3 = scmp.lt.s32.totalorder (!%p266_p2), %s2576_s28, 1  ;;  %s2823_s13 = smov (!%p266_p2), 17  }
   0x6   : > { %269 = sbr.rel (%p266_p2) target bundleno = 1960 (0x7a8), region = 48  ;;  %s2824_s14 = smov (!%p266_p2), 16  }
   0x7   : > { %s2826_s15 = smov (!%p266_p2), 15   ;;  %s2829_s16 = smov (!%p266_p2), 1  }
   0x8   : > { %s2830_s17 = smov (!%p266_p2), 127   ;;  %s2834_s18 = smov (!%p266_p2), 113  }
   0x9   : > { %s2839_s19 = smov (!%p266_p2), 112   ;;  %s2841_s24 = smov (!%p266_p2), 111  }
   0xa   : > { %s2846_s22 = smov (!%p266_p2), 24   ;;  %s2848_s23 = smov (!%p266_p2), 48  }
   0xb   : > { %v2907_v0 = vld [vmem:[%s4106_s1] sm:$0xf]  ;;  %v4161_v1 = vmov 2   ;;  %v4156_v2 = vmov 0   ;;  %v4162_v3 = vmov 4   ;;  %v4153_v4 = vmov 3  }
   0xc   : > { %2680 = vset.pattern.permute.xlu1 %v4161_v1  ;;  %2678 = vset.pattern.permute.xlu0 %v4156_v2  ;;  %v2801_v5 = vmov 1   ;;  %v4146_v6 = vmov 7   ;;  %v4152_v7 = vmov 6   ;;  %v4163_v8 = vmov 5   ;;  %s4211_s28 = smov (!%p303_p3, %s2576_s28), 1 }
   0xd   : > { %399 = vperm.xlu1 %2680, %v2907_v0   ;;  %362 = vperm.xlu0 %2678, %v2907_v0   ;;  %v4160_v9 = vmov 9   ;;  %v4159_v10 = vmov 8   ;;  %v4154_v11 = vmov 10   ;;  %v4151_v12 = vmov 14   ;;  %s2614_s9 = sshll.u32 %s4211_s28, 3 }
   0xe   : > { %2682 = vset.pattern.permute.xlu2 %v4162_v3  ;;  %v4147_v13 = vmov 11   ;;  %v4149_v14 = vmov 12   ;;  %v4143_v15 = vmov 16   ;;  %v4150_v16 = vmov 13   ;;  %s307_s12 = scalar_lea.vmem %s4105_s0, %s2614_s9 }
   0xf   : > { %457 = vperm.xlu2 %2682, %v2907_v0   ;;  %v4131_v17 = vmov 17   ;;  %v4114_v18 = vmov 19   ;;  %v4144_v19 = vmov 15   ;;  %v4129_v20 = vmov 22   ;;  %v2965_v23 = vld [vmem:[%s307_s12] sm:$0xff] }
  0x10   : > { %v4127_v21 = vmov 21   ;;  %v4117_v22 = vmov 18   ;;  %v4145_v24 = vmov 20   ;;  %v2820_v25 = vmov 0.0   ;;  %357 = vst [vmem:[#allocation2 + $0x4] sm:$0xff] %v2965_v23 }
  0x11   : > { %317 = vst [vmem:[#allocation2] sm:$0xf] %v2820_v25  ;;  %v4125_v26 = vmov 23   ;;  %vm449_vm0 = vcmask 138240   ;;  %vm559_vm1 = vcmask 121856   ;;  %vm502_vm2 = vcmask 130048  }
  0x12   : > { %318 = vst [vmem:[#allocation2 + $0xc] sm:$0xf] %v2820_v25  ;;  %vm614_vm7 = vcmask 7168   ;;  %vm767_vm8 = vcmask 1039360   ;;  %vm822_vm9 = vcmask 924672   ;;  %vm877_vm10 = vcmask 916480  }
  0x13   : > { %1528 = vst [vmem:[#allocation1] ss:$2 sm:$0xff] %v2965_v23  ;;  %vm930_vm11 = vcmask 908288   ;;  %vm951_vm12 = vcmask 1043456   ;;  %vm2168_vm15 = vcmask 60416  }
  0x15   : > { %2681 = vset.pattern.permute.xlu1 %v4153_v4  ;;  %2679 = vset.pattern.permute.xlu0 %v2801_v5 }
  0x16   : > { %418 = vperm.xlu1 %2681, %v2907_v0   ;;  %380 = vperm.xlu0 %2679, %v2907_v0  }
  0x17   : > { %2685 = vset.pattern.permute.xlu2 %v4146_v6  ;;  %v359_v29 = vld [vmem:[#allocation2 + $0x8] sm:$0xf] }
  0x18   : > { %484 = vperm.xlu2 %2685, %v2907_v0   ;;  %v358_v27 = vld [vmem:[#allocation2] sm:$0xff]  ;;  %v369_v32 = vperm.slane %v359_v29, 0  ;;  %v385_v34 = vperm.slane %v359_v29, 1  ;;  %v404_v39 = vperm.slane %v359_v29, 2  ;;  %v423_v44 = vperm.slane %v359_v29, 3 }
  0x19   : > { %v367_v31 = vperm.slane %v358_v27, 0  ;;  %v383_v33 = vperm.slane %v358_v27, 1  ;;  %v402_v35 = vperm.slane %v358_v27, 2  ;;  %v368_v36 = vperm.slane %v358_v27, 4 }
  0x1a   : > { %v384_v38 = vperm.slane %v358_v27, 5  ;;  %v2975_v40 = vperm.slane %v369_v32, 0  ;;  %v421_v41 = vperm.slane %v358_v27, 3  ;;  %v2979_v45 = vperm.slane %v385_v34, 1 }
  0x1b   : > { %v2973_v37 = vperm.slane %v367_v31, 0  ;;  %v2977_v42 = vperm.slane %v383_v33, 1  ;;  %v2981_v46 = vperm.slane %v402_v35, 2  ;;  %v2983_v47 = vperm.slane %v368_v36, 0 }
  0x1c   : > { %v2986_v49 = vperm.slane %v384_v38, 1  ;;  %v2988_v50 = vperm.slane %v404_v39, 2  ;;  %v403_v54 = vperm.slane %v358_v27, 6  ;;  %v2991_v55 = vperm.slane %v421_v41, 3 }
  0x1d   : > { %v2994_v57 = vperm.slane %v423_v44, 3  ;;  %v422_v31 = vperm.slane %v358_v27, 7  ;;  %v4123_v44 = vmov 25  }
  0x1e   : > { %2684 = vset.pattern.permute.xlu1 %v4152_v7  ;;  %2683 = vset.pattern.permute.xlu0 %v4163_v8  ;;  %v3001_v29 = vperm.slane %v403_v54, 2 }
  0x1f   : > { %474 = vperm.xlu1 %2684, %v2907_v0   ;;  %464 = vperm.xlu0 %2683, %v2907_v0  }
  0x20   : > { %2687 = vset.pattern.permute.xlu2 %v4160_v9 }
  0x21   : > { %517 = vperm.xlu2 %2687, %v2907_v0  }
  0x27   : > { %2686 = vset.pattern.permute.xlu1 %v4159_v10  ;;  %2688 = vset.pattern.permute.xlu0 %v4154_v11 }
  0x28   : > { %510 = vperm.xlu1 %2686, %v2907_v0   ;;  %527 = vperm.xlu0 %2688, %v2907_v0  }
  0x29   : > { %2692 = vset.pattern.permute.xlu2 %v4151_v12 }
  0x2a   : > { %586 = vperm.xlu2 %2692, %v2907_v0  }
  0x30   : > { %2689 = vset.pattern.permute.xlu1 %v4147_v13  ;;  %2690 = vset.pattern.permute.xlu0 %v4149_v14 }
  0x31   : > { %537 = vperm.xlu1 %2689, %v2907_v0   ;;  %569 = vperm.xlu0 %2690, %v2907_v0  }
  0x32   : > { %2694 = vset.pattern.permute.xlu2 %v4143_v15 }
  0x33   : > { %625 = vperm.xlu2 %2694, %v2907_v0  }
  0x39   : > { %2691 = vset.pattern.permute.xlu1 %v4150_v16  ;;  %2695 = vset.pattern.permute.xlu0 %v4131_v17 }
  0x3a   : > { %576 = vperm.xlu1 %2691, %v2907_v0   ;;  %638 = vperm.xlu0 %2695, %v2907_v0  }
  0x3b   : > { %2697 = vset.pattern.permute.xlu2 %v4114_v18 }
  0x3c   : > { %666 = vperm.xlu2 %2697, %v2907_v0  }
  0x42   : > { %2693 = vset.pattern.permute.xlu1 %v4144_v19  ;;  %2700 = vset.pattern.permute.xlu0 %v4129_v20 }
  0x43   : > { %596 = vperm.xlu1 %2693, %v2907_v0   ;;  %721 = vperm.xlu0 %2700, %v2907_v0  }
  0x44   : > { %2699 = vset.pattern.permute.xlu2 %v4127_v21 }
  0x45   : > { %702 = vperm.xlu2 %2699, %v2907_v0  }
  0x4b   : > { %2696 = vset.pattern.permute.xlu1 %v4117_v22 }
  0x4c   : > { %652 = vperm.xlu1 %2696, %v2907_v0  }
  0x54   : > { %2698 = vset.pattern.permute.xlu1 %v4145_v24 }
  0x55   : > { %684 = vperm.xlu1 %2698, %v2907_v0  }
  0x5d   : > { %2701 = vset.pattern.permute.xlu1 %v4125_v26 }
  0x5e   : > { %740 = vperm.xlu1 %2701, %v2907_v0  }
  0x66   : > { %2703 = vset.pattern.permute.xlu1 %v4123_v44 }
  0x69   : > { %v458_v43 = vpop.permute.xlu2 %457 }
  0x6a   : > { %v462_v27 = vmul.f32 %v458_v43, %v2975_v40 }
  0x72   : > { %v485_v39 = vpop.permute.xlu2 %484 }
  0x7f   : > { %v400_v28 = vpop.permute.xlu1 %399  ;;  %v363_v30 = vpop.permute.xlu0 %362 }
  0x80   : > { %v376_v48 = vmul.f32 %v2973_v37, %v363_v30  ;;  %v378_v51 = vmul.f32 %v2975_v40, %v363_v30  ;;  %v411_v59 = vmul.f32 %v2981_v46, %v400_v28  ;;  %v377_v60 = vmul.f32 %v2983_v47, %v363_v30 }
  0x81   : > { %v413_v63 = vmul.f32 %v2988_v50, %v400_v28  ;;  %v460_v30 = vmul.f32 %v458_v43, %v2973_v37 }
  0x88   : > { %v419_v52 = vpop.permute.xlu1 %418  ;;  %v381_v53 = vpop.permute.xlu0 %380 }
  0x89   : > { %v392_v56 = vmul.f32 %v2977_v42, %v381_v53  ;;  %v394_v58 = vmul.f32 %v2979_v45, %v381_v53  ;;  %v393_v61 = vmul.f32 %v2986_v49, %v381_v53  ;;  %v430_v32 = vmul.f32 %v2991_v55, %v419_v52 }
  0x8a   : > { %v432_v34 = vmul.f32 %v2994_v57, %v419_v52 }
  0x8b   : > { %v395_v62 = vadd.f32 %v392_v56, %v376_v48  ;;  %v397_v25 = vadd.f32 %v394_v58, %v378_v51  ;;  %v396_v36 = vadd.f32 %v393_v61, %v377_v60  ;;  %v412_v48 = vmul.f32 %v3001_v29, %v400_v28 }
  0x8c   : > { %v3008_v51 = vperm.slane %v422_v31, 3  ;;  %v461_v58 = vmul.f32 %v458_v43, %v2983_v47 }
  0x8d   : > { %v414_v33 = vadd.f32 %v411_v59, %v395_v62  ;;  %v416_v35 = vadd.f32 %v413_v63, %v397_v25  ;;  %v415_v28 = vadd.f32 %v412_v48, %v396_v36  ;;  %v487_v63 = vmul.f32 %v485_v39, %v2991_v55  ;;  %v518_v36 = vpop.permute.xlu2 %517 }
  0x8e   : > { %v431_v25 = vmul.f32 %v3008_v51, %v419_v52  ;;  %v488_v52 = vmul.f32 %v485_v39, %v3008_v51 }
  0x8f   : > { %v433_v38 = vadd.f32 %v430_v32, %v414_v33  ;;  %v435_v41 = vadd.f32 %v432_v34, %v416_v35  ;;  %v489_v33 = vmul.f32 %v485_v39, %v2994_v57  ;;  %v522_v39 = vmul.f32 %v518_v36, %v2979_v45 }
  0x90   : > { %v434_v43 = vadd.f32 %v431_v25, %v415_v28 }
  0x91   : > { %v475_v53 = vpop.permute.xlu1 %474  ;;  %v465_v54 = vpop.permute.xlu0 %464  ;;  %443 = vrot.lane.b32.xlu2 %v433_v38, %s2823_s13  ;;  %447 = vrot.lane.b32.xlu1 %v435_v41, %s2823_s13 }
  0x92   : > { %v467_v56 = vmul.f32 %v465_v54, %v2977_v42  ;;  %v468_v59 = vmul.f32 %v465_v54, %v2986_v49  ;;  %v469_v60 = vmul.f32 %v465_v54, %v2979_v45  ;;  %v477_v61 = vmul.f32 %v475_v53, %v2981_v46 }
  0x93   : > { %v479_v31 = vmul.f32 %v475_v53, %v2988_v50  ;;  %v478_v54 = vmul.f32 %v475_v53, %v3001_v29 }
  0x94   : > { %v470_v62 = vadd.f32 %v467_v56, %v460_v30  ;;  %v472_v32 = vadd.f32 %v469_v60, %v462_v27  ;;  %v471_v35 = vadd.f32 %v468_v59, %v461_v58  ;;  %v520_v56 = vmul.f32 %v518_v36, %v2977_v42 }
  0x95   : > { %v521_v58 = vmul.f32 %v518_v36, %v2986_v49  ;;  %v587_v36 = vpop.permute.xlu2 %586 }
  0x96   : > { %v480_v34 = vadd.f32 %v477_v61, %v470_v62  ;;  %v482_v38 = vadd.f32 %v479_v31, %v472_v32  ;;  %v481_v27 = vadd.f32 %v478_v54, %v471_v35 }
  0x98   : > { %v490_v41 = vadd.f32 %v487_v63, %v480_v34  ;;  %v492_v30 = vadd.f32 %v489_v33, %v482_v38  ;;  %v491_v28 = vadd.f32 %v488_v52, %v481_v27  ;;  %v4148_v38 = vmov 24  }
  0x99   : > { %445 = vrot.lane.b32.xlu2 %v434_v43, %s2823_s13  ;;  %2702 = vset.pattern.permute.xlu0 %v4148_v38 }
  0x9a   : > { %v511_v48 = vpop.permute.xlu1 %510  ;;  %496 = vrot.lane.b32.xlu1 %v490_v41, %s2824_s14  ;;  %500 = vrot.lane.b32.xlu0 %v492_v30, %s2824_s14  ;;  %v528_v60 = vpop.permute.xlu0 %527 }
  0x9b   : > { %v513_v59 = vmul.f32 %v511_v48, %v2973_v37  ;;  %v514_v53 = vmul.f32 %v511_v48, %v2983_v47  ;;  %v530_v63 = vmul.f32 %v528_v60, %v2981_v46  ;;  %v531_v25 = vmul.f32 %v528_v60, %v3001_v29 }
  0x9c   : > { %v515_v31 = vmul.f32 %v511_v48, %v2975_v40  ;;  %v532_v52 = vmul.f32 %v528_v60, %v2988_v50  ;;  %v4121_v60 = vmov 26  }
  0x9d   : > { %v523_v61 = vadd.f32 %v520_v56, %v513_v59  ;;  %v524_v62 = vadd.f32 %v521_v58, %v514_v53  ;;  %2704 = vset.pattern.permute.xlu2 %v4121_v60 }
  0x9e   : > { %v525_v30 = vadd.f32 %v522_v39, %v515_v31 }
  0x9f   : > { %v534_v35 = vadd.f32 %v531_v25, %v524_v62  ;;  %v533_v43 = vadd.f32 %v530_v63, %v523_v61 }
  0xa0   : > { %v535_v58 = vadd.f32 %v532_v52, %v525_v30  ;;  %v4119_v30 = vmov 27  }
  0xa1   : > { %498 = vrot.lane.b32.xlu2 %v491_v28, %s2824_s14 }
  0xa3   : > { %v538_v32 = vpop.permute.xlu1 %537  ;;  %v570_v48 = vpop.permute.xlu0 %569 }
  0xa4   : > { %v540_v33 = vmul.f32 %v538_v32, %v2991_v55  ;;  %v541_v34 = vmul.f32 %v538_v32, %v3008_v51  ;;  %v542_v27 = vmul.f32 %v538_v32, %v2994_v57  ;;  %v573_v28 = vmul.f32 %v570_v48, %v2983_v47  ;;  %v3055_v32 = vpop.permute.xlu2 %625 }
  0xa5   : > { %v574_v61 = vmul.f32 %v570_v48, %v2975_v40  ;;  %v572_v63 = vmul.f32 %v570_v48, %v2973_v37  ;;  %v589_v40 = vmul.f32 %v587_v36, %v2981_v46  ;;  %v642_v48 = vperm.slane %v2965_v23, 5 }
  0xa6   : > { %v544_v41 = vadd.f32 %v541_v34, %v534_v35  ;;  %v543_v54 = vadd.f32 %v540_v33, %v533_v43  ;;  %v545_v25 = vadd.f32 %v542_v27, %v535_v58  ;;  %v682_v27 = vld [vmem:[#allocation2 + $0xc] sm:$0xf] }
  0xa8   : > { %555 = vrot.lane.b32.xlu1 %v544_v41, %s2826_s15 }
  0xa9   : > { %553 = vrot.lane.b32.xlu2 %v543_v54, %s2826_s15 }
  0xac   : > { %v577_v56 = vpop.permute.xlu1 %576  ;;  %v3064_v46 = vpop.permute.xlu2 %666 }
  0xad   : > { %v580_v59 = vmul.f32 %v577_v56, %v2986_v49  ;;  %v581_v53 = vmul.f32 %v577_v56, %v2979_v45  ;;  %v579_v62 = vmul.f32 %v577_v56, %v2977_v42  ;;  %v590_v49 = vmul.f32 %v587_v36, %v3001_v29  ;;  %v3070_v52 = vpop.permute.xlu0 %638 }
  0xae   : > { %v591_v45 = vmul.f32 %v587_v36, %v2988_v50  ;;  %v641_v36 = vperm.slane %v2965_v23, 1 }
  0xaf   : > { %v583_v39 = vadd.f32 %v580_v59, %v573_v28  ;;  %v584_v31 = vadd.f32 %v581_v53, %v574_v61  ;;  %v582_v47 = vadd.f32 %v579_v62, %v572_v63  ;;  %v3082_v28 = vperm.slane %v642_v48, 1 }
  0xb0   : > { %784 = vperm.xlu1 %2703, %v2907_v0   ;;  %v3080_v53 = vperm.slane %v641_v36, 1  ;;  %v655_v61 = vperm.slane %v2965_v23, 2  ;;  %v656_v62 = vperm.slane %v2965_v23, 6  ;;  %v745_v48 = vperm.slane %v682_v27, 3 }
  0xb1   : > { %557 = vrot.lane.b32.xlu2 %v545_v25, %s2826_s15  ;;  %v593_v42 = vadd.f32 %v590_v49, %v583_v39  ;;  %v594_v34 = vadd.f32 %v591_v45, %v584_v31  ;;  %v592_v41 = vadd.f32 %v589_v40, %v582_v47  ;;  %v707_v25 = vperm.slane %v682_v27, 1 }
  0xb2   : > { %v691_v39 = vperm.slane %v682_v27, 0 }
  0xb4   : > { %v703_v59 = vpop.permute.xlu2 %702 }
  0xb5   : > { %v597_v33 = vpop.permute.xlu1 %596  ;;  %v714_v31 = vmul.f32 %v703_v59, %v3080_v53  ;;  %v715_v49 = vmul.f32 %v703_v59, %v3082_v28  ;;  %v722_v40 = vpop.permute.xlu0 %721 }
  0xb6   : > { %v599_v37 = vmul.f32 %v597_v33, %v2991_v55  ;;  %v600_v35 = vmul.f32 %v597_v33, %v3008_v51  ;;  %v601_v43 = vmul.f32 %v597_v33, %v2994_v57  ;;  %v629_v57 = vperm.slane %v2965_v23, 0 }
  0xb7   : > { %v630_v51 = vperm.slane %v2965_v23, 4  ;;  %v3090_v33 = vperm.slane %v655_v61, 2 }
  0xb8   : > { %v603_v29 = vadd.f32 %v600_v35, %v593_v42  ;;  %v604_v54 = vadd.f32 %v601_v43, %v594_v34  ;;  %v602_v50 = vadd.f32 %v599_v37, %v592_v41  ;;  %2705 = vset.pattern.permute.xlu1 %v4119_v30  ;;  %v3076_v56 = vperm.slane %v629_v57, 0 }
  0xb9   : > { %v3078_v58 = vperm.slane %v630_v51, 0  ;;  %v3092_v42 = vperm.slane %v656_v62, 2  ;;  %v669_v34 = vperm.slane %v2965_v23, 3  ;;  %v670_v37 = vperm.slane %v2965_v23, 7 }
  0xba   : > { %610 = vrot.lane.b32.xlu0 %v603_v29, %s2829_s16  ;;  %612 = vrot.lane.b32.xlu1 %v604_v54, %s2829_s16  ;;  %v3096_v35 = vperm.slane %v707_v25, 1  ;;  %v3098_v43 = vperm.slane %v691_v39, 0  ;;  %v726_v41 = vperm.slane %v682_v27, 2 }
  0xbb   : > { %608 = vrot.lane.b32.xlu2 %v602_v50, %s2829_s16  ;;  %v733_v50 = vmul.f32 %v722_v40, %v3090_v33  ;;  %v734_v57 = vmul.f32 %v722_v40, %v3092_v42  ;;  %v3102_v51 = vperm.slane %v669_v34, 3  ;;  %v3104_v36 = vperm.slane %v670_v37, 3 }
  0xbc   : > { %v716_v61 = vmul.f32 %v3096_v35, %v703_v59  ;;  %v3108_v62 = vperm.slane %v726_v41, 2 }
  0xbd   : > { %v675_v44 = vmul.f32 %v3102_v51, %v3064_v46 }
  0xbe   : > { %v3066_v55 = vpop.permute.xlu1 %652  ;;  %v735_v27 = vmul.f32 %v3108_v62, %v722_v40  ;;  %v4116_v40 = vlaneseq }
  0xc2   : > { %777 = vperm.xlu0 %2702, %v2907_v0  }
  0xc3   : > { %794 = vperm.xlu2 %2704, %v2907_v0  }
  0xc7   : > { %v685_v63 = vpop.permute.xlu1 %684 }
  0xc8   : > { %v698_v45 = vmul.f32 %v685_v63, %v3076_v56  ;;  %v699_v47 = vmul.f32 %v685_v63, %v3078_v58  ;;  %v700_v23 = vmul.f32 %v3098_v43, %v685_v63 }
  0xca   : > { %v717_v29 = vadd.f32 %v714_v31, %v698_v45  ;;  %v718_v54 = vadd.f32 %v715_v49, %v699_v47  ;;  %v3112_v45 = vperm.slane %v745_v48, 3  ;;  %v719_v37 = vadd.f32 %v716_v61, %v700_v23 }
  0xcb   : > { %v3121_v23 = vand.u32 127, %v4116_v40 }
  0xcc   : > { %v736_v39 = vadd.f32 %v733_v50, %v717_v29  ;;  %v737_v18 = vadd.f32 %v734_v57, %v718_v54  ;;  %v738_v63 = vadd.f32 %v735_v27, %v719_v37  ;;  %v636_v37 = vmul.f32 %v3078_v58, %v3055_v32 }
  0xcd   : > { %v647_v27 = vmul.f32 %v3080_v53, %v3070_v52 }
  0xd0   : > { %v741_v25 = vpop.permute.xlu1 %740 }
  0xd1   : > { %v752_v31 = vmul.f32 %v741_v25, %v3102_v51  ;;  %v753_v49 = vmul.f32 %v741_v25, %v3104_v36  ;;  %v754_v59 = vmul.f32 %v3112_v45, %v741_v25 }
  0xd3   : > { %v756_v47 = vadd.f32 %v753_v49, %v737_v18  ;;  %v755_v34 = vadd.f32 %v752_v31, %v736_v39  ;;  %v757_v41 = vadd.f32 %v754_v59, %v738_v63  ;;  %v328_v39 = vadd.s32 128, %v3121_v23 }
  0xd4   : > { %v333_v49 = vand.u32 15, %v3121_v23  ;;  %v648_v63 = vmul.f32 %v3082_v28, %v3070_v52 }
  0xd5   : > { %763 = vrot.lane.b32.xlu1 %v756_v47, %s2830_s17  ;;  %761 = vrot.lane.b32.xlu2 %v755_v34, %s2830_s17  ;;  %v340_v31 = vand.u32 15, %v328_v39  ;;  %v635_v34 = vmul.f32 %v3076_v56, %v3055_v32  ;;  %v662_v39 = vmul.f32 %v3092_v42, %v3066_v55 }
  0xd6   : > { %vm3142_vm4 = vcmp.ge.s32.totalorder %v333_v49, 1  ;;  %vm3146_vm5 = vcmp.le.s32.totalorder %v333_v49, 14  ;;  %v650_v20 = vadd.f32 %v648_v63, %v636_v37 }
  0xd7   : > { %vm3138_vm3 = vcmp.ge.s32.totalorder %v340_v31, 1  ;;  %vm3151_vm6 = vcmp.le.s32.totalorder %v340_v31, 14  ;;  %v649_v21 = vadd.f32 %v647_v27, %v635_v34 }
  0xdd   : > { %804 = vperm.xlu1 %2705, %v2907_v0   ;;  %765 = vrot.lane.b32.xlu2 %v757_v41, %s2830_s17  ;;  %v661_v41 = vmul.f32 %v3090_v33, %v3066_v55 }
  0xdf   : > { %v663_v31 = vadd.f32 %v661_v41, %v649_v21 }
  0xe1   : > { %v677_v17 = vadd.f32 %v675_v44, %v663_v31 }
  0xeb   : > { %v444_v29 = vpop.permute.xlu2 %443 }
  0xf3   : > { %v446_v54 = vpop.permute.xlu2 %445 }
  0xf4   : > { %v450_v40 = vsel %vm449_vm0, %v444_v29, %v446_v54 }
  0xfb   : > { %v499_v50 = vpop.permute.xlu2 %498 }
 0x103   : > { %v448_v18 = vpop.permute.xlu1 %447  ;;  %v554_v48 = vpop.permute.xlu2 %553 }
 0x104   : > { %v451_v52 = vsel %vm449_vm0, %v446_v54, %v448_v18  ;;  %v676_v54 = vmul.f32 %v3104_v36, %v3064_v46  ;;  %v454_v18 = vsel %vm3142_vm4, %v450_v40, 0.0 }
 0x10b   : > { %v558_v25 = vpop.permute.xlu2 %557 }
 0x10c   : > { %v497_v57 = vpop.permute.xlu1 %496  ;;  %v501_v59 = vpop.permute.xlu0 %500 }
 0x10d   : > { %v504_v26 = vsel %vm502_vm2, %v499_v50, %v501_v59  ;;  %v503_v49 = vsel %vm502_vm2, %v497_v57, %v499_v50  ;;  %v664_v50 = vadd.f32 %v662_v39, %v650_v20 }
 0x10e   : > { %v507_v34 = vadd.f32 %v503_v49, %v454_v18  ;;  %v4158_v49 = vmov 29   ;;  %v4133_v18 = vmov 30  }
 0x10f   : > { %v678_v21 = vadd.f32 %v676_v54, %v664_v50  ;;  %2707 = vset.pattern.permute.xlu0 %v4158_v49  ;;  %2708 = vset.pattern.permute.xlu1 %v4133_v18 }
 0x115   : > { %v609_v37 = vpop.permute.xlu2 %608 }
 0x11a   : > { %v556_v61 = vpop.permute.xlu1 %555 }
 0x11b   : > { %v560_v55 = vsel %vm559_vm1, %v554_v48, %v556_v61  ;;  %v561_v29 = vsel %vm559_vm1, %v556_v61, %v558_v25  ;;  %v455_v48 = vsel %vm3138_vm3, %v451_v52, 0.0 }
 0x11c   : > { %v564_v61 = vsel %vm3146_vm5, %v560_v55, 0.0  ;;  %v565_v25 = vsel %vm3151_vm6, %v561_v29, 0.0  ;;  %v508_v57 = vadd.f32 %v504_v26, %v455_v48  ;;  %v4135_v48 = vmov 28  }
 0x11d   : > { %v566_v59 = vadd.f32 %v564_v61, %v507_v34  ;;  %2706 = vset.pattern.permute.xlu2 %v4135_v48  ;;  %v795_v34 = vpop.permute.xlu2 %794 }
 0x11e   : > { %v567_v63 = vadd.f32 %v565_v25, %v508_v57 }
 0x122   : > { %v785_v47 = vpop.permute.xlu1 %784 }
 0x123   : > { %v788_v25 = vmul.f32 %v785_v47, %v3082_v28  ;;  %v789_v57 = vmul.f32 %v785_v47, %v3096_v35  ;;  %v787_v31 = vmul.f32 %v785_v47, %v3080_v53 }
 0x12c   : > { %v611_v27 = vpop.permute.xlu0 %610  ;;  %v613_v46 = vpop.permute.xlu1 %612 }
 0x12d   : > { %v615_v40 = vsel %vm614_vm7, %v609_v37, %v611_v27  ;;  %v616_v52 = vsel %vm614_vm7, %v611_v27, %v613_v46  ;;  %v798_v37 = vmul.f32 %v795_v34, %v3092_v42  ;;  %v799_v27 = vmul.f32 %v795_v34, %v3108_v62 }
 0x12e   : > { %v619_v55 = vsel %vm3142_vm4, %v615_v40, 0.0  ;;  %v620_v29 = vsel %vm3138_vm3, %v616_v52, 0.0 }
 0x12f   : > { %v621_v20 = vadd.f32 %v619_v55, %v566_v59  ;;  %v622_v26 = vadd.f32 %v620_v29, %v567_v63  ;;  %v797_v63 = vmul.f32 %v795_v34, %v3090_v33 }
 0x131   : > { %v679_v41 = vadd.f32 %v677_v17, %v621_v20  ;;  %v680_v39 = vadd.f32 %v678_v21, %v622_v26 }
 0x134   : > { %v778_v61 = vpop.permute.xlu0 %777 }
 0x135   : > { %v781_v44 = vmul.f32 %v778_v61, %v3078_v58  ;;  %v782_v54 = vmul.f32 %v778_v61, %v3098_v43  ;;  %v780_v50 = vmul.f32 %v778_v61, %v3076_v56 }
 0x137   : > { %v791_v46 = vadd.f32 %v788_v25, %v781_v44  ;;  %v792_v59 = vadd.f32 %v789_v57, %v782_v54  ;;  %v790_v40 = vadd.f32 %v787_v31, %v780_v50  ;;  %v4137_v25 = vmov 31   ;;  %v762_v57 = vpop.permute.xlu2 %761 }
 0x138   : > { %v4141_v54 = vmov 32   ;;  %v4157_v50 = vmov 34  }
 0x139   : > { %v802_v55 = vadd.f32 %v799_v27, %v792_v59  ;;  %v801_v29 = vadd.f32 %v798_v37, %v791_v46  ;;  %v800_v26 = vadd.f32 %v797_v63, %v790_v40 }
 0x13f   : > { %v766_v44 = vpop.permute.xlu2 %765 }
 0x147   : > { %v764_v17 = vpop.permute.xlu1 %763 }
 0x14f   : > { %v805_v52 = vpop.permute.xlu1 %804 }
 0x150   : > { %v807_v21 = vmul.f32 %v805_v52, %v3102_v51  ;;  %v808_v20 = vmul.f32 %v805_v52, %v3104_v36  ;;  %v809_v47 = vmul.f32 %v805_v52, %v3112_v45 }
 0x152   : > { %v812_v61 = vadd.f32 %v809_v47, %v802_v55  ;;  %v811_v18 = vadd.f32 %v808_v20, %v801_v29  ;;  %v810_v48 = vadd.f32 %v807_v21, %v800_v26  ;;  %v4139_v47 = vmov 33  }
 0x154   : > { %820 = vrot.lane.b32.xlu1 %v812_v61, %s2834_s18  ;;  %818 = vrot.lane.b32.xlu0 %v811_v18, %s2834_s18  ;;  %v768_v18 = vsel %vm767_vm8, %v762_v57, %v764_v17 }
 0x155   : > { %816 = vrot.lane.b32.xlu2 %v810_v48, %s2834_s18  ;;  %v769_v48 = vsel %vm767_vm8, %v764_v17, %v766_v44  ;;  %v772_v37 = vsel %vm3146_vm5, %v768_v18, 0.0 }
 0x156   : > { %v773_v27 = vsel %vm3151_vm6, %v769_v48, 0.0  ;;  %v774_v63 = vadd.f32 %v772_v37, %v679_v41 }
 0x157   : > { %v775_v40 = vadd.f32 %v773_v27, %v680_v39 }
 0x15c   : > { %839 = vperm.xlu0 %2707, %v2907_v0   ;;  %849 = vperm.xlu1 %2708, %v2907_v0  }
 0x15d   : > { %832 = vperm.xlu2 %2706, %v2907_v0  }
 0x164   : > { %2710 = vset.pattern.permute.xlu1 %v4141_v54  ;;  %2712 = vset.pattern.permute.xlu0 %v4157_v50 }
 0x165   : > { %2709 = vset.pattern.permute.xlu2 %v4137_v25 }
 0x166   : > { %859 = vperm.xlu2 %2709, %v2907_v0  }
 0x16e   : > { %2711 = vset.pattern.permute.xlu2 %v4139_v47 }
 0x1af   : > { %v817_v31 = vpop.permute.xlu2 %816 }
 0x1b7   : > { %v833_v34 = vpop.permute.xlu2 %832 }
 0x1b8   : > { %v835_v41 = vmul.f32 %v833_v34, %v3076_v56  ;;  %v836_v39 = vmul.f32 %v833_v34, %v3078_v58  ;;  %v837_v61 = vmul.f32 %v833_v34, %v3098_v43 }
 0x1c0   : > { %v860_v26 = vpop.permute.xlu2 %859 }
 0x1c6   : > { %v821_v46 = vpop.permute.xlu1 %820  ;;  %v819_v59 = vpop.permute.xlu0 %818 }
 0x1c7   : > { %v823_v52 = vsel %vm822_vm9, %v817_v31, %v819_v59  ;;  %v824_v55 = vsel %vm822_vm9, %v819_v59, %v821_v46  ;;  %v862_v59 = vmul.f32 %v860_v26, %v3102_v51 }
 0x1c8   : > { %v827_v17 = vsel %vm3142_vm4, %v823_v52, 0.0  ;;  %v828_v29 = vsel %vm3138_vm3, %v824_v55, 0.0  ;;  %v864_v55 = vmul.f32 %v860_v26, %v3112_v45 }
 0x1c9   : > { %v3214_v21 = vadd.f32 %v827_v17, %v774_v63  ;;  %v830_v20 = vadd.f32 %v828_v29, %v775_v40  ;;  %v863_v63 = vmul.f32 %v860_v26, %v3104_v36  ;;  %v4155_v26 = vmov 35  }
 0x1ce   : > { %v840_v57 = vpop.permute.xlu0 %839  ;;  %v850_v44 = vpop.permute.xlu1 %849 }
 0x1cf   : > { %v842_v31 = vmul.f32 %v840_v57, %v3080_v53  ;;  %v843_v18 = vmul.f32 %v840_v57, %v3082_v28  ;;  %v844_v48 = vmul.f32 %v840_v57, %v3096_v35  ;;  %v852_v37 = vmul.f32 %v850_v44, %v3090_v33 }
 0x1d0   : > { %v853_v27 = vmul.f32 %v850_v44, %v3092_v42  ;;  %v854_v46 = vmul.f32 %v850_v44, %v3108_v62 }
 0x1d1   : > { %v845_v40 = vadd.f32 %v842_v31, %v835_v41  ;;  %v846_v34 = vadd.f32 %v843_v18, %v836_v39  ;;  %v847_v52 = vadd.f32 %v844_v48, %v837_v61 }
 0x1d3   : > { %v857_v17 = vadd.f32 %v854_v46, %v847_v52  ;;  %v856_v29 = vadd.f32 %v853_v27, %v846_v34  ;;  %v855_v25 = vadd.f32 %v852_v37, %v845_v40 }
 0x1d5   : > { %v867_v47 = vadd.f32 %v864_v55, %v857_v17  ;;  %v866_v57 = vadd.f32 %v863_v63, %v856_v29  ;;  %v865_v54 = vadd.f32 %v862_v59, %v855_v25  ;;  %v322_v25 = vld [vmem:[%s4107_s2] sm:$0xf] }
 0x1d7   : > { %875 = vrot.lane.b32.xlu0 %v867_v47, %s2839_s19  ;;  %873 = vrot.lane.b32.xlu2 %v866_v57, %s2839_s19 }
 0x1d8   : > { %871 = vrot.lane.b32.xlu1 %v865_v54, %s2839_s19  ;;  %v3247_v54 = vld [vmem:[%s4108_s3] sm:$0xf] }
 0x1df   : > { %902 = vperm.xlu0 %2712, %v2907_v0   ;;  %892 = vperm.xlu2 %2711, %v2907_v0  }
 0x1e0   : > { %885 = vperm.xlu1 %2710, %v2907_v0  }
 0x1e7   : > { %2714 = vset.pattern.permute.xlu0 %v4156_v2  ;;  %2716 = vset.pattern.permute.xlu2 %v2801_v5 }
 0x1e8   : > { %2713 = vset.pattern.permute.xlu1 %v4155_v26  ;;  %941 = vperm.xlu0 %2714, %v322_v25  }
 0x1e9   : > { %912 = vperm.xlu1 %2713, %v2907_v0  }
 0x1f0   : > { %2719 = vset.pattern.permute.xlu0 %v4162_v3 }
 0x1f1   : > { %2715 = vset.pattern.permute.xlu1 %v4156_v2  ;;  %1049 = vperm.xlu0 %2719, %v3247_v54  }
 0x1f9   : > { %2724 = vset.pattern.permute.xlu0 %v4160_v9 }
 0x1fa   : > { %1108 = vperm.xlu0 %2724, %v3247_v54  }
 0x202   : > { %2729 = vset.pattern.permute.xlu0 %v4151_v12 }
 0x203   : > { %1172 = vperm.xlu0 %2729, %v3247_v54  }
 0x20b   : > { %2731 = vset.pattern.permute.xlu0 %v4143_v15 }
 0x20c   : > { %1210 = vperm.xlu0 %2731, %v3247_v54  }
 0x214   : > { %2736 = vset.pattern.permute.xlu0 %v4148_v38 }
 0x231   : > { %v3254_v0 = vpop.permute.xlu2 %873 }
 0x239   : > { %v893_v44 = vpop.permute.xlu2 %892 }
 0x23a   : > { %v895_v18 = vmul.f32 %v893_v44, %v3080_v53  ;;  %v896_v48 = vmul.f32 %v893_v44, %v3082_v28  ;;  %v897_v34 = vmul.f32 %v893_v44, %v3096_v35 }
 0x249   : > { %v876_v47 = vpop.permute.xlu0 %875 }
 0x24a   : > { %v879_v41 = vsel %vm877_vm10, %v3254_v0, %v876_v47  ;;  %v3258_v39 = vpop.permute.xlu1 %871 }
 0x24b   : > { %v3260_v61 = vadd.f32 %v879_v41, %v830_v20  ;;  %v878_v44 = vsel %vm877_vm10, %v3258_v39, %v3254_v0 }
 0x251   : > { %v903_v46 = vpop.permute.xlu0 %902 }
 0x252   : > { %v886_v31 = vpop.permute.xlu1 %885  ;;  %v905_v63 = vmul.f32 %v903_v46, %v3090_v33  ;;  %v906_v40 = vmul.f32 %v903_v46, %v3092_v42  ;;  %v907_v25 = vmul.f32 %v903_v46, %v3108_v62  ;;  %v4175_v62 = vmov 23  }
 0x253   : > { %v888_v37 = vmul.f32 %v886_v31, %v3076_v56  ;;  %v889_v27 = vmul.f32 %v886_v31, %v3078_v58  ;;  %v890_v52 = vmul.f32 %v886_v31, %v3098_v43  ;;  %v4172_v43 = vmov 17  }
 0x255   : > { %v898_v59 = vadd.f32 %v895_v18, %v888_v37  ;;  %v899_v20 = vadd.f32 %v896_v48, %v889_v27  ;;  %v900_v57 = vadd.f32 %v897_v34, %v890_v52  ;;  %v882_v18 = vadd.f32 %v878_v44, %v3214_v21 }
 0x257   : > { %v908_v55 = vadd.f32 %v905_v63, %v898_v59  ;;  %v909_v28 = vadd.f32 %v906_v40, %v899_v20  ;;  %v910_v42 = vadd.f32 %v907_v25, %v900_v57 }
 0x25a   : > { %v942_v63 = vpop.permute.xlu0 %941 }
 0x25b   : > { %v913_v53 = vpop.permute.xlu1 %912 }
 0x25c   : > { %v915_v56 = vmul.f32 %v913_v53, %v3102_v51  ;;  %v916_v58 = vmul.f32 %v913_v53, %v3104_v36  ;;  %v917_v33 = vmul.f32 %v913_v53, %v3112_v45  ;;  %v4173_v51 = vmov 22  }
 0x25d   : > { %v4174_v36 = vmov 21   ;;  %v4176_v45 = vmov 25  }
 0x25e   : > { %v919_v17 = vadd.f32 %v916_v58, %v909_v28  ;;  %v918_v29 = vadd.f32 %v915_v56, %v908_v55  ;;  %v920_v35 = vadd.f32 %v917_v33, %v910_v42 }
 0x260   : > { %926 = vrot.lane.b32.xlu1 %v919_v17, %s2841_s24  ;;  %924 = vrot.lane.b32.xlu2 %v918_v29, %s2841_s24 }
 0x268   : > { %959 = vperm.xlu1 %2715, %v3247_v54   ;;  %928 = vrot.lane.b32.xlu2 %v920_v35, %s2841_s24 }
 0x270   : > { %2717 = vset.pattern.permute.xlu1 %v4161_v1  ;;  %977 = vperm.xlu2 %2716, %v3247_v54  }
 0x271   : > { %996 = vperm.xlu1 %2717, %v3247_v54  }
 0x278   : > { %2718 = vset.pattern.permute.xlu2 %v4153_v4 }
 0x279   : > { %2720 = vset.pattern.permute.xlu1 %v4163_v8  ;;  %1015 = vperm.xlu2 %2718, %v3247_v54  }
 0x27a   : > { %1056 = vperm.xlu1 %2720, %v3247_v54  }
 0x281   : > { %2721 = vset.pattern.permute.xlu2 %v4152_v7 }
 0x282   : > { %2722 = vset.pattern.permute.xlu1 %v4146_v6  ;;  %1066 = vperm.xlu2 %2721, %v3247_v54  }
 0x283   : > { %1076 = vperm.xlu1 %2722, %v3247_v54  }
 0x28a   : > { %2723 = vset.pattern.permute.xlu2 %v4159_v10 }
 0x28b   : > { %2725 = vset.pattern.permute.xlu1 %v4154_v11  ;;  %1101 = vperm.xlu2 %2723, %v3247_v54  }
 0x28c   : > { %1118 = vperm.xlu1 %2725, %v3247_v54  }
 0x293   : > { %2726 = vset.pattern.permute.xlu2 %v4147_v13 }
 0x294   : > { %2727 = vset.pattern.permute.xlu1 %v4149_v14  ;;  %1128 = vperm.xlu2 %2726, %v3247_v54  }
 0x295   : > { %1155 = vperm.xlu1 %2727, %v3247_v54  }
 0x29c   : > { %2728 = vset.pattern.permute.xlu2 %v4150_v16 }
 0x29d   : > { %2730 = vset.pattern.permute.xlu1 %v4144_v19  ;;  %1162 = vperm.xlu2 %2728, %v3247_v54  }
 0x29e   : > { %1182 = vperm.xlu1 %2730, %v3247_v54  }
 0x2a5   : > { %2733 = vset.pattern.permute.xlu2 %v4145_v24 }
 0x2a6   : > { %2732 = vset.pattern.permute.xlu1 %v4172_v43  ;;  %1269 = vperm.xlu2 %2733, %v3247_v54  }
 0x2a7   : > { %1223 = vperm.xlu1 %2732, %v3247_v54  }
 0x2ae   : > { %2735 = vset.pattern.permute.xlu2 %v4173_v51 }
 0x2af   : > { %2734 = vset.pattern.permute.xlu1 %v4174_v36  ;;  %1306 = vperm.xlu2 %2735, %v3247_v54  }
 0x2b0   : > { %1287 = vperm.xlu1 %2734, %v3247_v54  }
 0x2b7   : > { %2738 = vset.pattern.permute.xlu2 %v4175_v62 }
 0x2b8   : > { %2737 = vset.pattern.permute.xlu1 %v4176_v45 }
 0x2ba   : > { %v925_v47 = vpop.permute.xlu2 %924 }
 0x2c2   : > { %v929_v41 = vpop.permute.xlu2 %928 }
 0x2ca   : > { %v978_v40 = vpop.permute.xlu2 %977 }
 0x2d2   : > { %v927_v31 = vpop.permute.xlu1 %926 }
 0x2d3   : > { %v931_v48 = vsel %vm930_vm11, %v925_v47, %v927_v31  ;;  %v932_v37 = vsel %vm930_vm11, %v927_v31, %v929_v41  ;;  %v1016_v28 = vpop.permute.xlu2 %1015 }
 0x2d4   : > { %v935_v27 = vsel %vm3146_vm5, %v931_v48, 0.0  ;;  %v936_v46 = vsel %vm3151_vm6, %v932_v37, 0.0 }
 0x2d5   : > { %v937_v59 = vadd.f32 %v935_v27, %v882_v18  ;;  %v938_v20 = vadd.f32 %v936_v46, %v3260_v61 }
 0x2d7   : > { %v944_v0 = vadd.f32 %v942_v63, %v937_v59  ;;  %v945_v39 = vadd.f32 %v942_v63, %v938_v20 }
 0x2d9   : > { %v947_v34 = vmax.f32 %v945_v39, 0.0  ;;  %v946_v52 = vmax.f32 %v944_v0, 0.0 }
 0x2da   : > { %v960_v21 = vpop.permute.xlu1 %959 }
 0x2db   : > { %v950_v53 = vrot.slane %v947_v34, 4 }
 0x2dc   : > { %v1067_v41 = vpop.permute.xlu2 %1066 }
 0x2dd   : > { %v3326_v55 = vsel %vm951_vm12, %v946_v52, %v950_v53 }
 0x2de   : > { %954 = vst [vmem:[#allocation2 + $0x4] sm:$0xff] %v3326_v55 }
 0x2e3   : > { %v997_v56 = vpop.permute.xlu1 %996 }
 0x2e5   : > { %v955_v58 = vld [vmem:[#allocation2] sm:$0xff]  ;;  %v956_v17 = vld [vmem:[#allocation2 + $0x8] sm:$0xf]  ;;  %v1102_v13 = vpop.permute.xlu2 %1101 }
 0x2e6   : > { %v980_v29 = vperm.slane %v955_v58, 1  ;;  %v981_v61 = vperm.slane %v955_v58, 5  ;;  %v982_v57 = vperm.slane %v956_v17, 1  ;;  %v964_v25 = vperm.slane %v955_v58, 0 }
 0x2e7   : > { %v965_v33 = vperm.slane %v955_v58, 4  ;;  %v966_v35 = vperm.slane %v956_v17, 0  ;;  %v1018_v37 = vperm.slane %v955_v58, 3  ;;  %v1020_v27 = vperm.slane %v956_v17, 3 }
 0x2e8   : > { %v3329_v42 = vperm.slane %v982_v57, 1  ;;  %v3331_v47 = vperm.slane %v981_v61, 1  ;;  %v3333_v44 = vperm.slane %v980_v29, 1  ;;  %v3335_v31 = vperm.slane %v964_v25, 0  ;;  %v1050_v57 = vpop.permute.xlu0 %1049 }
 0x2e9   : > { %v3337_v18 = vperm.slane %v965_v33, 0  ;;  %v3339_v48 = vperm.slane %v966_v35, 0  ;;  %v999_v63 = vperm.slane %v955_v58, 2  ;;  %v1000_v0 = vperm.slane %v955_v58, 6 }
 0x2ea   : > { %v991_v20 = vmul.f32 %v3329_v42, %v978_v40  ;;  %v1019_v39 = vperm.slane %v955_v58, 7  ;;  %v990_v52 = vmul.f32 %v3331_v47, %v978_v40  ;;  %v1001_v53 = vperm.slane %v956_v17, 2 }
 0x2eb   : > { %v975_v59 = vmul.f32 %v3339_v48, %v960_v21  ;;  %v974_v34 = vmul.f32 %v3337_v18, %v960_v21  ;;  %v973_v29 = vmul.f32 %v3335_v31, %v960_v21  ;;  %v989_v61 = vmul.f32 %v3333_v44, %v978_v40 }
 0x2ec   : > { %v1057_v46 = vpop.permute.xlu1 %1056  ;;  %v3347_v25 = vperm.slane %v1020_v27, 3  ;;  %v3349_v33 = vperm.slane %v1000_v0, 2  ;;  %v3351_v35 = vperm.slane %v1001_v53, 2  ;;  %v3353_v19 = vperm.slane %v999_v63, 2 }
 0x2ed   : > { %v994_v15 = vadd.f32 %v991_v20, %v975_v59  ;;  %v3355_v58 = vperm.slane %v1018_v37, 3  ;;  %v3357_v24 = vperm.slane %v1019_v39, 3  ;;  %v993_v6 = vadd.f32 %v990_v52, %v974_v34 }
 0x2ee   : > { %v992_v17 = vadd.f32 %v989_v61, %v973_v29  ;;  %v1010_v21 = vmul.f32 %v3351_v35, %v997_v56  ;;  %v1029_v40 = vmul.f32 %v3347_v25, %v1016_v28  ;;  %v1009_v27 = vmul.f32 %v3349_v33, %v997_v56 }
 0x2ef   : > { %v1059_v0 = vmul.f32 %v1057_v46, %v3333_v44  ;;  %v1061_v53 = vmul.f32 %v1057_v46, %v3329_v42  ;;  %v1008_v59 = vmul.f32 %v3353_v19, %v997_v56  ;;  %v1052_v37 = vmul.f32 %v1050_v57, %v3335_v31 }
 0x2f0   : > { %v1060_v20 = vmul.f32 %v1057_v46, %v3331_v47  ;;  %v1013_v63 = vadd.f32 %v1010_v21, %v994_v15  ;;  %v1027_v34 = vmul.f32 %v3355_v58, %v1016_v28  ;;  %v1028_v52 = vmul.f32 %v3357_v24, %v1016_v28  ;;  %v1109_v21 = vpop.permute.xlu0 %1108 }
 0x2f1   : > { %v1054_v29 = vmul.f32 %v1050_v57, %v3339_v48  ;;  %v1012_v61 = vadd.f32 %v1009_v27, %v993_v6  ;;  %v1053_v38 = vmul.f32 %v1050_v57, %v3337_v18  ;;  %v1062_v14 = vadd.f32 %v1059_v0, %v1052_v37 }
 0x2f2   : > { %v1032_v16 = vadd.f32 %v1029_v40, %v1013_v63  ;;  %v1011_v12 = vadd.f32 %v1008_v59, %v992_v17  ;;  %v1069_v4 = vmul.f32 %v1067_v41, %v3353_v19  ;;  %v1071_v28 = vmul.f32 %v1067_v41, %v3351_v35  ;;  %v1129_v63 = vpop.permute.xlu2 %1128 }
 0x2f3   : > { %v1064_v7 = vadd.f32 %v1061_v53, %v1054_v29  ;;  %v1031_v56 = vadd.f32 %v1028_v52, %v1012_v61  ;;  %v1063_v11 = vadd.f32 %v1060_v20, %v1053_v38  ;;  %v1111_v57 = vmul.f32 %v1109_v21, %v3333_v44 }
 0x2f4   : > { %1040 = vrot.lane.b32.xlu2 %v1032_v16, %s2823_s13  ;;  %v1030_v15 = vadd.f32 %v1027_v34, %v1011_v12  ;;  %v1070_v17 = vmul.f32 %v1067_v41, %v3349_v33  ;;  %v1072_v40 = vadd.f32 %v1069_v4, %v1062_v14  ;;  %v1112_v12 = vmul.f32 %v1109_v21, %v3331_v47 }
 0x2f5   : > { %v1077_v39 = vpop.permute.xlu1 %1076  ;;  %1038 = vrot.lane.b32.xlu1 %v1031_v56, %s2823_s13  ;;  %v1104_v16 = vmul.f32 %v1102_v13, %v3335_v31  ;;  %v1105_v27 = vmul.f32 %v1102_v13, %v3337_v18  ;;  %v1074_v0 = vadd.f32 %v1071_v28, %v1064_v7  ;;  %v1113_v53 = vmul.f32 %v1109_v21, %v3329_v42 }
 0x2f6   : > { %v1079_v46 = vmul.f32 %v1077_v39, %v3355_v58  ;;  %v1081_v6 = vmul.f32 %v1077_v39, %v3347_v25  ;;  %1036 = vrot.lane.b32.xlu0 %v1030_v15, %s2823_s13  ;;  %v1080_v38 = vmul.f32 %v1077_v39, %v3357_v24  ;;  %v1106_v59 = vmul.f32 %v1102_v13, %v3339_v48 }
 0x2f7   : > { %v1073_v37 = vadd.f32 %v1070_v17, %v1063_v11  ;;  %v1114_v29 = vadd.f32 %v1111_v57, %v1104_v16  ;;  %v1115_v61 = vadd.f32 %v1112_v12, %v1105_v27  ;;  %v1132_v13 = vmul.f32 %v1129_v63, %v3357_v24 }
 0x2f8   : > { %v1082_v20 = vadd.f32 %v1079_v46, %v1072_v40  ;;  %v1084_v41 = vadd.f32 %v1081_v6, %v1074_v0  ;;  %v1116_v56 = vadd.f32 %v1113_v53, %v1106_v59  ;;  %v1131_v46 = vmul.f32 %v1129_v63, %v3355_v58  ;;  %v1173_v59 = vpop.permute.xlu0 %1172 }
 0x2f9   : > { %v1083_v52 = vadd.f32 %v1080_v38, %v1073_v37  ;;  %v1133_v21 = vmul.f32 %v1129_v63, %v3347_v25  ;;  %v1175_v37 = vmul.f32 %v1173_v59, %v3353_v19 }
 0x2fa   : > { %v1163_v38 = vpop.permute.xlu2 %1162 }
 0x2fb   : > { %v1165_v16 = vmul.f32 %v1163_v38, %v3333_v44  ;;  %v1166_v27 = vmul.f32 %v1163_v38, %v3331_v47  ;;  %v1167_v47 = vmul.f32 %v1163_v38, %v3329_v42  ;;  %v4177_v42 = vmov 26  }
 0x2fc   : > { %1088 = vrot.lane.b32.xlu2 %v1082_v20, %s2824_s14  ;;  %v1176_v20 = vmul.f32 %v1173_v59, %v3349_v33 }
 0x2fd   : > { %1092 = vrot.lane.b32.xlu1 %v1084_v41, %s2824_s14 }
 0x2fe   : > { %v1119_v34 = vpop.permute.xlu1 %1118  ;;  %1090 = vrot.lane.b32.xlu0 %v1083_v52, %s2824_s14 }
 0x2ff   : > { %v1121_v39 = vmul.f32 %v1119_v34, %v3353_v19  ;;  %v1122_v4 = vmul.f32 %v1119_v34, %v3349_v33  ;;  %v1123_v14 = vmul.f32 %v1119_v34, %v3351_v35  ;;  %v1177_v19 = vmul.f32 %v1173_v59, %v3351_v35 }
 0x300   : > { %v4179_v35 = vmov 27   ;;  %v1214_v59 = vperm.slane %v3326_v55, 0 }
 0x301   : > { %v1125_v7 = vadd.f32 %v1122_v4, %v1115_v61  ;;  %v1124_v11 = vadd.f32 %v1121_v39, %v1114_v29  ;;  %v1126_v15 = vadd.f32 %v1123_v14, %v1116_v56  ;;  %v4181_v14 = vmov 33  }
 0x302   : > { %v4182_v29 = vmov 30   ;;  %v4183_v61 = vmov 31   ;;  %v1270_v56 = vpop.permute.xlu2 %1269 }
 0x303   : > { %v1135_v28 = vadd.f32 %v1132_v13, %v1125_v7  ;;  %v1134_v6 = vadd.f32 %v1131_v46, %v1124_v11  ;;  %v1136_v57 = vadd.f32 %v1133_v21, %v1126_v15  ;;  %v4184_v7 = vmov 18  }
 0x304   : > { %v4185_v13 = vmov 19  }
 0x305   : > { %1142 = vrot.lane.b32.xlu2 %v1135_v28, %s2826_s15  ;;  %1140 = vrot.lane.b32.xlu1 %v1134_v6, %s2826_s15  ;;  %v3445_v6 = vpop.permute.xlu0 %1210 }
 0x306   : > { %1144 = vrot.lane.b32.xlu0 %v1136_v57, %s2826_s15 }
 0x307   : > { %v1156_v17 = vpop.permute.xlu1 %1155 }
 0x308   : > { %v1158_v40 = vmul.f32 %v1156_v17, %v3335_v31  ;;  %v1159_v12 = vmul.f32 %v1156_v17, %v3337_v18  ;;  %v1160_v63 = vmul.f32 %v1156_v17, %v3339_v48 }
 0x30a   : > { %v1168_v0 = vadd.f32 %v1165_v16, %v1158_v40  ;;  %v1169_v53 = vadd.f32 %v1166_v27, %v1159_v12  ;;  %v1170_v4 = vadd.f32 %v1167_v47, %v1160_v63  ;;  %v1307_v11 = vpop.permute.xlu2 %1306  ;;  %v1267_v12 = vld [vmem:[#allocation2 + $0xc] sm:$0xf] }
 0x30c   : > { %v1179_v34 = vadd.f32 %v1176_v20, %v1169_v53  ;;  %v1178_v44 = vadd.f32 %v1175_v37, %v1168_v0  ;;  %v1180_v33 = vadd.f32 %v1177_v19, %v1170_v4  ;;  %v1276_v0 = vperm.slane %v1267_v12, 0 }
 0x30d   : > { %v1227_v53 = vperm.slane %v3326_v55, 5  ;;  %v1215_v37 = vperm.slane %v3326_v55, 4  ;;  %v1309_v19 = vperm.slane %v3326_v55, 2 }
 0x30e   : > { %1361 = vperm.xlu0 %2736, %v3247_v54  }
 0x310   : > { %v1183_v31 = vpop.permute.xlu1 %1182 }
 0x311   : > { %v1185_v18 = vmul.f32 %v1183_v31, %v3355_v58  ;;  %v1186_v41 = vmul.f32 %v1183_v31, %v3357_v24  ;;  %v1187_v48 = vmul.f32 %v1183_v31, %v3347_v25  ;;  %v4178_v25 = vmov 28  }
 0x312   : > { %v4180_v58 = vmov 32   ;;  %v3457_v31 = vperm.slane %v1276_v0, 0 }
 0x313   : > { %v1189_v52 = vadd.f32 %v1186_v41, %v1179_v34  ;;  %v1188_v39 = vadd.f32 %v1185_v18, %v1178_v44  ;;  %v1190_v24 = vadd.f32 %v1187_v48, %v1180_v33  ;;  %v1311_v18 = vperm.slane %v1267_v12, 2 }
 0x314   : > { %v3459_v41 = vperm.slane %v1227_v53, 1  ;;  %v1310_v48 = vperm.slane %v3326_v55, 6  ;;  %v1330_v53 = vperm.slane %v1267_v12, 3 }
 0x315   : > { %1196 = vrot.lane.b32.xlu1 %v1189_v52, %s2829_s16  ;;  %1194 = vrot.lane.b32.xlu2 %v1188_v39, %s2829_s16 }
 0x316   : > { %2741 = vset.pattern.permute.xlu0 %v4158_v49 }
 0x317   : > { %1422 = vperm.xlu0 %2741, %v3247_v54  }
 0x319   : > { %v3442_v46 = vpop.permute.xlu1 %1223 }
 0x31d   : > { %1368 = vperm.xlu1 %2737, %v3247_v54   ;;  %1198 = vrot.lane.b32.xlu2 %v1190_v24, %s2829_s16 }
 0x31f   : > { %2746 = vset.pattern.permute.xlu0 %v4157_v50 }
 0x320   : > { %1484 = vperm.xlu0 %2746, %v3247_v54  }
 0x322   : > { %v1288_v28 = vpop.permute.xlu1 %1287 }
 0x325   : > { %2739 = vset.pattern.permute.xlu1 %v4177_v42  ;;  %1325 = vperm.xlu2 %2738, %v3247_v54  }
 0x326   : > { %1378 = vperm.xlu1 %2739, %v3247_v54  }
 0x328   : > { %2751 = vset.pattern.permute.xlu0 %v4156_v2 }
 0x32d   : > { %2740 = vset.pattern.permute.xlu2 %v4178_v25 }
 0x32e   : > { %2742 = vset.pattern.permute.xlu1 %v4179_v35  ;;  %1415 = vperm.xlu2 %2740, %v3247_v54  }
 0x32f   : > { %1388 = vperm.xlu1 %2742, %v3247_v54  }
 0x336   : > { %2743 = vset.pattern.permute.xlu2 %v4180_v58 }
 0x337   : > { %2744 = vset.pattern.permute.xlu1 %v4181_v14  ;;  %1467 = vperm.xlu2 %2743, %v3247_v54  }
 0x338   : > { %1474 = vperm.xlu1 %2744, %v3247_v54  }
 0x33f   : > { %2745 = vset.pattern.permute.xlu2 %v4182_v29 }
 0x340   : > { %2747 = vset.pattern.permute.xlu1 %v4183_v61  ;;  %1432 = vperm.xlu2 %2745, %v3247_v54  }
 0x341   : > { %1442 = vperm.xlu1 %2747, %v3247_v54  }
 0x348   : > { %2748 = vset.pattern.permute.xlu2 %v4155_v26 }
 0x349   : > { %2749 = vset.pattern.permute.xlu1 %v4184_v7  ;;  %1494 = vperm.xlu2 %2748, %v3247_v54  }
 0x34a   : > { %1237 = vperm.xlu1 %2749, %v3247_v54  }
 0x34e   : > { %v1041_v15 = vpop.permute.xlu2 %1040 }
 0x351   : > { %2750 = vset.pattern.permute.xlu2 %v4185_v13 }
 0x352   : > { %2752 = vset.pattern.permute.xlu1 %v4156_v2  ;;  %1251 = vperm.xlu2 %2750, %v3247_v54   ;;  %v1226_v54 = vperm.slane %v3326_v55, 1  ;;  %v3491_v2 = vperm.slane %v1330_v53, 3 }
 0x354   : > { %v3455_v20 = vperm.slane %v1226_v54, 1  ;;  %v1300_v54 = vmul.f32 %v1288_v28, %v3459_v41 }
 0x356   : > { %v1089_v21 = vpop.permute.xlu2 %1088 }
 0x35a   : > { %2753 = vset.pattern.permute.xlu2 %v2801_v5  ;;  %v1292_v5 = vperm.slane %v1267_v12, 1 }
 0x35c   : > { %v3461_v34 = vperm.slane %v1292_v5, 1 }
 0x35e   : > { %v1301_v0 = vmul.f32 %v3461_v34, %v1288_v28 }
 0x35f   : > { %v1143_v57 = vpop.permute.xlu2 %1142 }
 0x367   : > { %v1039_v17 = vpop.permute.xlu1 %1038 }
 0x368   : > { %v1043_v38 = vsel %vm449_vm0, %v1039_v17, %v1041_v15  ;;  %v1037_v40 = vpop.permute.xlu0 %1036 }
 0x369   : > { %v1042_v16 = vsel %vm449_vm0, %v1037_v40, %v1039_v17  ;;  %v1047_v47 = vsel %vm3138_vm3, %v1043_v38, 0.0  ;;  %v3471_v17 = vperm.slane %v1214_v59, 0  ;;  %v3473_v40 = vperm.slane %v1215_v37, 0 }
 0x36a   : > { %v1046_v52 = vsel %vm3142_vm4, %v1042_v16, 0.0  ;;  %v1299_v38 = vmul.f32 %v1288_v28, %v3455_v20  ;;  %v1285_v16 = vmul.f32 %v3457_v31, %v1270_v56  ;;  %v1328_v59 = vperm.slane %v3326_v55, 3 }
 0x36b   : > { %v1283_v5 = vmul.f32 %v1270_v56, %v3471_v17  ;;  %v1329_v37 = vperm.slane %v3326_v55, 7 }
 0x36c   : > { %v1304_v26 = vadd.f32 %v1301_v0, %v1285_v16 }
 0x36d   : > { %v3502_v16 = vperm.slane %v1329_v37, 3 }
 0x36f   : > { %v3449_v27 = vpop.permute.xlu2 %1194  ;;  %v1093_v63 = vpop.permute.xlu1 %1092 }
 0x370   : > { %v1091_v44 = vpop.permute.xlu0 %1090 }
 0x371   : > { %v1094_v39 = vsel %vm502_vm2, %v1089_v21, %v1091_v44  ;;  %v1095_v4 = vsel %vm502_vm2, %v1091_v44, %v1093_v63  ;;  %v3478_v21 = vperm.slane %v1311_v18, 2  ;;  %v1284_v63 = vmul.f32 %v1270_v56, %v3473_v40 }
 0x372   : > { %v1098_v33 = vadd.f32 %v1094_v39, %v1046_v52  ;;  %v1099_v24 = vadd.f32 %v1095_v4, %v1047_v47  ;;  %v3485_v44 = vperm.slane %v1309_v19, 2  ;;  %v3487_v47 = vperm.slane %v1310_v48, 2 }
 0x373   : > { %v1302_v52 = vadd.f32 %v1299_v38, %v1283_v5  ;;  %v1303_v39 = vadd.f32 %v1300_v54, %v1284_v63  ;;  %v1320_v18 = vmul.f32 %v3478_v21, %v1307_v11  ;;  %v3500_v54 = vperm.slane %v1328_v59, 3 }
 0x374   : > { %v1318_v56 = vmul.f32 %v3485_v44, %v1307_v11  ;;  %v1319_v50 = vmul.f32 %v3487_v47, %v1307_v11 }
 0x376   : > { %v1322_v5 = vadd.f32 %v1319_v50, %v1303_v39  ;;  %v1321_v63 = vadd.f32 %v1318_v56, %v1302_v52 }
 0x377   : > { %v1199_v15 = vpop.permute.xlu2 %1198  ;;  %v1141_v4 = vpop.permute.xlu1 %1140 }
 0x378   : > { %v1145_v28 = vpop.permute.xlu0 %1144  ;;  %v1146_v12 = vsel %vm559_vm1, %v1141_v4, %v1143_v57 }
 0x379   : > { %v1147_v55 = vsel %vm559_vm1, %v1143_v57, %v1145_v28  ;;  %v1150_v19 = vsel %vm3146_vm5, %v1146_v12, 0.0  ;;  %v1323_v28 = vadd.f32 %v1320_v18, %v1304_v26 }
 0x37a   : > { %v1151_v48 = vsel %vm3151_vm6, %v1147_v55, 0.0  ;;  %v1152_v38 = vadd.f32 %v1150_v19, %v1098_v33 }
 0x37b   : > { %v1153_v0 = vadd.f32 %v1151_v48, %v1099_v24 }
 0x37f   : > { %v1326_v53 = vpop.permute.xlu2 %1325 }
 0x380   : > { %v1337_v4 = vmul.f32 %v3500_v54, %v1326_v53  ;;  %v1338_v11 = vmul.f32 %v3502_v16, %v1326_v53  ;;  %v1339_v57 = vmul.f32 %v3491_v2, %v1326_v53 }
 0x382   : > { %v1342_v12 = vadd.f32 %v1339_v57, %v1323_v28  ;;  %v1341_v49 = vadd.f32 %v1338_v11, %v1322_v5  ;;  %v1340_v10 = vadd.f32 %v1337_v4, %v1321_v63 }
 0x384   : > { %1350 = vrot.lane.b32.xlu1 %v1342_v12, %s2830_s17  ;;  %1348 = vrot.lane.b32.xlu0 %v1341_v49, %s2830_s17 }
 0x385   : > { %1346 = vrot.lane.b32.xlu2 %v1340_v10, %s2830_s17  ;;  %v1362_v10 = vpop.permute.xlu0 %1361 }
 0x386   : > { %v1366_v55 = vmul.f32 %v1362_v10, %v3457_v31  ;;  %v1364_v48 = vmul.f32 %v1362_v10, %v3471_v17 }
 0x387   : > { %v1197_v33 = vpop.permute.xlu1 %1196 }
 0x388   : > { %v1200_v50 = vsel %vm614_vm7, %v3449_v27, %v1197_v33  ;;  %v1201_v24 = vsel %vm614_vm7, %v1197_v33, %v1199_v15  ;;  %v3521_v39 = vpop.permute.xlu2 %1415 }
 0x389   : > { %v1204_v59 = vsel %vm3142_vm4, %v1200_v50, 0.0  ;;  %v1205_v26 = vsel %vm3138_vm3, %v1201_v24, 0.0 }
 0x38a   : > { %v3517_v37 = vadd.f32 %v1204_v59, %v1152_v38  ;;  %v3519_v52 = vadd.f32 %v1205_v26, %v1153_v0  ;;  %v1365_v38 = vmul.f32 %v1362_v10, %v3473_v40 }
 0x38d   : > { %v1423_v11 = vpop.permute.xlu0 %1422 }
 0x38f   : > { %v1369_v49 = vpop.permute.xlu1 %1368 }
 0x390   : > { %v1371_v27 = vmul.f32 %v1369_v49, %v3455_v20  ;;  %v1372_v15 = vmul.f32 %v1369_v49, %v3459_v41  ;;  %v1373_v19 = vmul.f32 %v1369_v49, %v3461_v34 }
 0x391   : > { %v1468_v18 = vpop.permute.xlu2 %1467 }
 0x392   : > { %v1374_v63 = vadd.f32 %v1371_v27, %v1364_v48  ;;  %v1375_v4 = vadd.f32 %v1372_v15, %v1365_v38  ;;  %v1376_v57 = vadd.f32 %v1373_v19, %v1366_v55  ;;  %v1471_v15 = vmul.f32 %v1468_v18, %v3473_v40 }
 0x393   : > { %v1427_v19 = vmul.f32 %v1423_v11, %v3461_v34  ;;  %v1420_v48 = vmul.f32 %v3521_v39, %v3457_v31 }
 0x398   : > { %v1379_v56 = vpop.permute.xlu1 %1378 }
 0x399   : > { %v1381_v0 = vmul.f32 %v1379_v56, %v3485_v44  ;;  %v1382_v53 = vmul.f32 %v1379_v56, %v3487_v47  ;;  %v1383_v5 = vmul.f32 %v1379_v56, %v3478_v21  ;;  %v1485_v56 = vpop.permute.xlu0 %1484 }
 0x39a   : > { %v1433_v24 = vpop.permute.xlu2 %1432 }
 0x39b   : > { %v1384_v28 = vadd.f32 %v1381_v0, %v1374_v63  ;;  %v1385_v12 = vadd.f32 %v1382_v53, %v1375_v4  ;;  %v1386_v50 = vadd.f32 %v1383_v5, %v1376_v57  ;;  %v1488_v0 = vmul.f32 %v1485_v56, %v3487_v47 }
 0x39c   : > { %v1470_v63 = vmul.f32 %v1468_v18, %v3471_v17 }
 0x3a1   : > { %v1389_v33 = vpop.permute.xlu1 %1388 }
 0x3a2   : > { %v1391_v59 = vmul.f32 %v1389_v33, %v3500_v54  ;;  %v1392_v26 = vmul.f32 %v1389_v33, %v3502_v16  ;;  %v1393_v49 = vmul.f32 %v1389_v33, %v3491_v2  ;;  %v1437_v33 = vmul.f32 %v1433_v24, %v3478_v21 }
 0x3a3   : > { %v1495_v38 = vpop.permute.xlu2 %1494 }
 0x3a4   : > { %v1396_v10 = vadd.f32 %v1393_v49, %v1386_v50  ;;  %v1395_v9 = vadd.f32 %v1392_v26, %v1385_v12  ;;  %v1394_v1 = vadd.f32 %v1391_v59, %v1384_v28  ;;  %v1498_v4 = vmul.f32 %v1495_v38, %v3502_v16 }
 0x3a5   : > { %v1430_v28 = vadd.f32 %v1427_v19, %v1420_v48  ;;  %v1436_v12 = vmul.f32 %v1433_v24, %v3487_v47 }
 0x3a6   : > { %1404 = vrot.lane.b32.xlu1 %v1396_v10, %s2834_s18  ;;  %1402 = vrot.lane.b32.xlu0 %v1395_v9, %s2834_s18  ;;  %v1426_v9 = vmul.f32 %v1423_v11, %v3459_v41  ;;  %v1487_v10 = vmul.f32 %v1485_v56, %v3485_v44 }
 0x3a7   : > { %1400 = vrot.lane.b32.xlu2 %v1394_v1, %s2834_s18  ;;  %v1419_v1 = vmul.f32 %v3521_v39, %v3473_v40  ;;  %v1440_v8 = vadd.f32 %v1437_v33, %v1430_v28 }
 0x3a9   : > { %v1429_v26 = vadd.f32 %v1426_v9, %v1419_v1  ;;  %v1435_v1 = vmul.f32 %v1433_v24, %v3485_v44  ;;  %v1220_v24 = vmul.f32 %v3471_v17, %v3445_v6 }
 0x3aa   : > { %v1475_v27 = vpop.permute.xlu1 %1474 }
 0x3ab   : > { %v1478_v55 = vmul.f32 %v1475_v27, %v3459_v41  ;;  %v1477_v53 = vmul.f32 %v1475_v27, %v3455_v20  ;;  %v1479_v49 = vmul.f32 %v1475_v27, %v3461_v34  ;;  %v1439_v3 = vadd.f32 %v1436_v12, %v1429_v26 }
 0x3ac   : > { %v1489_v34 = vmul.f32 %v1485_v56, %v3478_v21  ;;  %v1499_v21 = vmul.f32 %v1495_v38, %v3491_v2  ;;  %v1221_v56 = vmul.f32 %v3473_v40, %v3445_v6  ;;  %v3586_v6 = vld [vmem:[%s4110_s5] sm:$0xf] }
 0x3ad   : > { %v1481_v5 = vadd.f32 %v1478_v55, %v1471_v15  ;;  %v1480_v50 = vadd.f32 %v1477_v53, %v1470_v63  ;;  %v1472_v15 = vmul.f32 %v1468_v18, %v3457_v31  ;;  %v1418_v53 = vmul.f32 %v3521_v39, %v3471_v17 }
 0x3ae   : > { %v1497_v18 = vmul.f32 %v1495_v38, %v3500_v54  ;;  %v1233_v39 = vmul.f32 %v3459_v41, %v3442_v46 }
 0x3af   : > { %v1491_v57 = vadd.f32 %v1488_v0, %v1481_v5  ;;  %v1425_v0 = vmul.f32 %v1423_v11, %v3455_v20  ;;  %v1490_v5 = vadd.f32 %v1487_v10, %v1480_v50  ;;  %v1482_v27 = vadd.f32 %v1479_v49, %v1472_v15 }
 0x3b0   : > { %v1232_v11 = vmul.f32 %v3455_v20, %v3442_v46  ;;  %v1252_v20 = vpop.permute.xlu2 %1251  ;;  %v1235_v46 = vadd.f32 %v1233_v39, %v1221_v56  ;;  %v4186_v49 = vmov 5   ;;  %v4187_v10 = vmov 4  }
 0x3b1   : > { %v1501_v59 = vadd.f32 %v1498_v4, %v1491_v57  ;;  %v1500_v63 = vadd.f32 %v1497_v18, %v1490_v5  ;;  %v1428_v4 = vadd.f32 %v1425_v0, %v1418_v53  ;;  %v1260_v50 = vmul.f32 %v3500_v54, %v1252_v20 }
 0x3b2   : > { %v1234_v12 = vadd.f32 %v1232_v11, %v1220_v24  ;;  %v1261_v17 = vmul.f32 %v3502_v16, %v1252_v20  ;;  %v4188_v15 = vmov 2   ;;  %v4194_v0 = vmov 14  }
 0x3b3   : > { %v1443_v55 = vpop.permute.xlu1 %1442  ;;  %1508 = vrot.lane.b32.xlu2 %v1501_v59, %s2841_s24  ;;  %v1438_v57 = vadd.f32 %v1435_v1, %v1428_v4  ;;  %v4195_v53 = vmov 13   ;;  %v4196_v5 = vmov 12   ;;  %v4201_v18 = vmov 20  }
 0x3b4   : > { %v1446_v19 = vmul.f32 %v1443_v55, %v3502_v16  ;;  %v1447_v48 = vmul.f32 %v1443_v55, %v3491_v2  ;;  %v323_v16 = vld [vmem:[%s4109_s4] sm:$0xf]  ;;  %v4202_v1 = vmov 15   ;;  %v4203_v11 = vmov 34  }
 0x3b6   : > { %v1450_v9 = vadd.f32 %v1447_v48, %v1440_v8  ;;  %v1449_v31 = vadd.f32 %v1446_v19, %v1439_v3  ;;  %v1445_v3 = vmul.f32 %v1443_v55, %v3500_v54  ;;  %v1492_v8 = vadd.f32 %v1489_v34, %v1482_v27 }
 0x3b7   : > { %v4191_v55 = vmov 10   ;;  %v4192_v19 = vmov 3   ;;  %v4193_v48 = vmov 6   ;;  %v4197_v34 = vmov 24  }
 0x3b8   : > { %1458 = vrot.lane.b32.xlu1 %v1450_v9, %s2839_s19  ;;  %1456 = vrot.lane.b32.xlu0 %v1449_v31, %s2839_s19  ;;  %v1448_v38 = vadd.f32 %v1445_v3, %v1438_v57  ;;  %v1502_v33 = vadd.f32 %v1499_v21, %v1492_v8  ;;  %v4198_v27 = vmov 11   ;;  %v4199_v9 = vmov 7  }
 0x3b9   : > { %v4200_v31 = vmov 29   ;;  %v4205_v21 = vmov 0  }
 0x3bb   : > { %1506 = vrot.lane.b32.xlu2 %v1500_v63, %s2841_s24  ;;  %v4204_v63 = vmov 16  }
 0x3bc   : > { %v1238_v28 = vpop.permute.xlu1 %1237 }
 0x3bd   : > { %v1246_v41 = vmul.f32 %v3485_v44, %v1238_v28  ;;  %v1247_v2 = vmul.f32 %v3487_v47, %v1238_v28 }
 0x3bf   : > { %v1248_v59 = vadd.f32 %v1246_v41, %v1234_v12  ;;  %v1249_v26 = vadd.f32 %v1247_v2, %v1235_v46 }
 0x3c0   : > { %1454 = vrot.lane.b32.xlu1 %v1448_v38, %s2839_s19  ;;  %1510 = vrot.lane.b32.xlu0 %v1502_v33, %s2841_s24 }
 0x3c1   : > { %v1262_v40 = vadd.f32 %v1260_v50, %v1248_v59  ;;  %v1263_v44 = vadd.f32 %v1261_v17, %v1249_v26 }
 0x3c3   : > { %1565 = vperm.xlu2 %2753, %v3586_v6   ;;  %v3590_v47 = vadd.f32 %v1262_v40, %v3517_v37  ;;  %v3593_v54 = vadd.f32 %v1263_v44, %v3519_v52  ;;  %v4189_v37 = vmov 9   ;;  %v4190_v52 = vmov 8  }
 0x3c8   : > { %1547 = vperm.xlu1 %2752, %v3586_v6   ;;  %1522 = vperm.xlu0 %2751, %v323_v16  }
 0x3cb   : > { %2755 = vset.pattern.permute.xlu2 %v4186_v49 }
 0x3cc   : > { %1644 = vperm.xlu2 %2755, %v3586_v6  }
 0x3d0   : > { %2754 = vset.pattern.permute.xlu1 %v4187_v10  ;;  %2756 = vset.pattern.permute.xlu0 %v4188_v15 }
 0x3d1   : > { %1637 = vperm.xlu1 %2754, %v3586_v6   ;;  %1584 = vperm.xlu0 %2756, %v3586_v6  }
 0x3d4   : > { %2758 = vset.pattern.permute.xlu2 %v4189_v37  ;;  %v1529_v37 = vld.sshfl [vmem:[#allocation1] sm:$0xff pattern:$0x75316420] }
 0x3d5   : > { %1696 = vperm.xlu2 %2758, %v3586_v6  }
 0x3d9   : > { %2757 = vset.pattern.permute.xlu1 %v4190_v52  ;;  %2761 = vset.pattern.permute.xlu0 %v4191_v55  ;;  %v1530_v52 = vld.sshfl [vmem:[#allocation1 + $0x8] sm:$0xff pattern:$0x75316420] }
 0x3da   : > { %1689 = vperm.xlu1 %2757, %v3586_v6   ;;  %1706 = vperm.xlu0 %2761, %v3586_v6  }
 0x3dd   : > { %2760 = vset.pattern.permute.xlu2 %v4192_v19 }
 0x3de   : > { %1603 = vperm.xlu2 %2760, %v3586_v6  }
 0x3df   : > { %v1347_v39 = vpop.permute.xlu2 %1346 }
 0x3e2   : > { %2759 = vset.pattern.permute.xlu1 %v4193_v48  ;;  %2766 = vset.pattern.permute.xlu0 %v4194_v0 }
 0x3e3   : > { %1654 = vperm.xlu1 %2759, %v3586_v6   ;;  %1760 = vperm.xlu0 %2766, %v3586_v6  }
 0x3e6   : > { %2763 = vset.pattern.permute.xlu2 %v4195_v53 }
 0x3e7   : > { %1750 = vperm.xlu2 %2763, %v3586_v6  }
 0x3eb   : > { %2762 = vset.pattern.permute.xlu1 %v4196_v5  ;;  %2771 = vset.pattern.permute.xlu0 %v4197_v34 }
 0x3ec   : > { %1743 = vperm.xlu1 %2762, %v3586_v6   ;;  %1949 = vperm.xlu0 %2771, %v3586_v6  }
 0x3ef   : > { %2765 = vset.pattern.permute.xlu2 %v4198_v27 }
 0x3f0   : > { %1716 = vperm.xlu2 %2765, %v3586_v6  }
 0x3f4   : > { %2764 = vset.pattern.permute.xlu1 %v4199_v9  ;;  %2776 = vset.pattern.permute.xlu0 %v4200_v31 }
 0x3f5   : > { %1664 = vperm.xlu1 %2764, %v3586_v6   ;;  %2010 = vperm.xlu0 %2776, %v3586_v6  }
 0x3f8   : > { %2768 = vset.pattern.permute.xlu2 %v4201_v18 }
 0x3f9   : > { %1857 = vperm.xlu2 %2768, %v3586_v6  }
 0x3fd   : > { %2767 = vset.pattern.permute.xlu1 %v4202_v1  ;;  %2781 = vset.pattern.permute.xlu0 %v4203_v11 }
 0x3fe   : > { %1770 = vperm.xlu1 %2767, %v3586_v6   ;;  %2072 = vperm.xlu0 %2781, %v3586_v6  }
 0x401   : > { %2770 = vset.pattern.permute.xlu2 %v4173_v51  ;;  %v1401_v4 = vpop.permute.xlu2 %1400 }
 0x402   : > { %1894 = vperm.xlu2 %2770, %v3586_v6  }
 0x406   : > { %2769 = vset.pattern.permute.xlu1 %v4174_v36  ;;  %2784 = vset.pattern.permute.xlu0 %v4204_v63  ;;  %v1351_v36 = vpop.permute.xlu1 %1350 }
 0x407   : > { %1875 = vperm.xlu1 %2769, %v3586_v6   ;;  %1798 = vperm.xlu0 %2784, %v3586_v6  }
 0x40a   : > { %2773 = vset.pattern.permute.xlu2 %v4175_v62  ;;  %v1349_v62 = vpop.permute.xlu0 %1348 }
 0x40b   : > { %1913 = vperm.xlu2 %2773, %v3586_v6  }
 0x40d   : > { %v1509_v51 = vpop.permute.xlu2 %1508 }
 0x40f   : > { %2772 = vset.pattern.permute.xlu1 %v4176_v45  ;;  %2788 = vset.pattern.permute.xlu0 %v4205_v21 }
 0x410   : > { %1956 = vperm.xlu1 %2772, %v3586_v6  }
 0x413   : > { %2775 = vset.pattern.permute.xlu2 %v4178_v25 }
 0x414   : > { %2003 = vperm.xlu2 %2775, %v3586_v6  }
 0x415   : > { %v1507_v45 = vpop.permute.xlu2 %1506 }
 0x416   : > { %v1512_v40 = vsel %vm930_vm11, %v1507_v45, %v1509_v51 }
 0x418   : > { %2774 = vset.pattern.permute.xlu1 %v4177_v42  ;;  %v1405_v3 = vpop.permute.xlu1 %1404  ;;  %v1403_v8 = vpop.permute.xlu0 %1402 }
 0x419   : > { %1966 = vperm.xlu1 %2774, %v3586_v6   ;;  %v1406_v56 = vsel %vm822_vm9, %v1401_v4, %v1403_v8  ;;  %v1407_v20 = vsel %vm822_vm9, %v1403_v8, %v1405_v3 }
 0x41a   : > { %v1410_v28 = vsel %vm3142_vm4, %v1406_v56, 0.0  ;;  %v1411_v41 = vsel %vm3138_vm3, %v1407_v20, 0.0 }
 0x41c   : > { %2778 = vset.pattern.permute.xlu2 %v4180_v58  ;;  %v1352_v58 = vsel %vm767_vm8, %v1347_v39, %v1349_v62 }
 0x41d   : > { %2055 = vperm.xlu2 %2778, %v3586_v6   ;;  %v3656_v42 = vpop.permute.xlu2 %1565  ;;  %v1356_v57 = vsel %vm3146_vm5, %v1352_v58, 0.0 }
 0x41e   : > { %v1358_v12 = vadd.f32 %v1356_v57, %v3590_v47 }
 0x420   : > { %v1412_v50 = vadd.f32 %v1410_v28, %v1358_v12 }
 0x421   : > { %2777 = vset.pattern.permute.xlu1 %v4179_v35  ;;  %v1353_v35 = vsel %vm767_vm8, %v1349_v62, %v1351_v36 }
 0x422   : > { %1976 = vperm.xlu1 %2777, %v3586_v6  }
 0x425   : > { %2780 = vset.pattern.permute.xlu2 %v4182_v29  ;;  %v4206_v29 = vmov 35  }
 0x426   : > { %2020 = vperm.xlu2 %2780, %v3586_v6   ;;  %v3673_v46 = vpop.permute.xlu2 %1644 }
 0x42a   : > { %v1459_v25 = vpop.permute.xlu1 %1458  ;;  %v1457_v24 = vpop.permute.xlu0 %1456  ;;  %2779 = vset.pattern.permute.xlu1 %v4181_v14  ;;  %v1357_v14 = vsel %vm3151_vm6, %v1353_v35, 0.0 }
 0x42b   : > { %2062 = vperm.xlu1 %2779, %v3586_v6   ;;  %v1359_v33 = vadd.f32 %v1357_v14, %v3593_v54  ;;  %v1461_v26 = vsel %vm877_vm10, %v1457_v24, %v1459_v25  ;;  %v1516_v54 = vsel %vm3146_vm5, %v1512_v40, 0.0 }
 0x42d   : > { %v1413_v44 = vadd.f32 %v1411_v41, %v1359_v33 }
 0x42e   : > { %2783 = vset.pattern.permute.xlu2 %v4206_v29 }
 0x42f   : > { %2082 = vperm.xlu2 %2783, %v3586_v6   ;;  %v1465_v49 = vadd.f32 %v1461_v26, %v1413_v44  ;;  %v3691_v19 = vpop.permute.xlu2 %1696 }
 0x432   : > { %v1455_v2 = vpop.permute.xlu1 %1454  ;;  %v1511_v38 = vpop.permute.xlu0 %1510 }
 0x433   : > { %v1460_v17 = vsel %vm877_vm10, %v1455_v2, %v1457_v24  ;;  %v1513_v59 = vsel %vm930_vm11, %v1509_v51, %v1511_v38  ;;  %2782 = vset.pattern.permute.xlu1 %v4183_v61 }
 0x434   : > { %2030 = vperm.xlu1 %2782, %v3586_v6   ;;  %v1464_v47 = vadd.f32 %v1460_v17, %v1412_v50  ;;  %v1517_v16 = vsel %vm3151_vm6, %v1513_v59, 0.0 }
 0x435   : > { %v1519_v15 = vadd.f32 %v1517_v16, %v1465_v49 }
 0x436   : > { %v1518_v10 = vadd.f32 %v1516_v54, %v1464_v47 }
 0x437   : > { %2786 = vset.pattern.permute.xlu2 %v4184_v7 }
 0x438   : > { %v3700_v18 = vpop.permute.xlu2 %1603 }
 0x43a   : > { %v3689_v61 = vpop.permute.xlu1 %1547  ;;  %v1523_v55 = vpop.permute.xlu0 %1522 }
 0x43b   : > { %v1525_v48 = vadd.f32 %v1523_v55, %v1518_v10  ;;  %v1526_v0 = vadd.f32 %v1523_v55, %v1519_v15 }
 0x43c   : > { %2785 = vset.pattern.permute.xlu1 %v4172_v43 }
 0x43d   : > { %v1533_v53 = vadd.f32 %v1529_v37, %v1525_v48  ;;  %v1534_v5 = vadd.f32 %v1530_v52, %v1526_v0 }
 0x43f   : > { %v1536_v34 = vmax.f32 %v1534_v5, 0.0  ;;  %v1535_v7 = vmax.f32 %v1533_v53, 0.0 }
 0x441   : > { %v1539_v27 = vrot.slane %v1536_v34, 4  ;;  %v3708_v51 = vpop.permute.xlu2 %1750 }
 0x443   : > { %v3695_v9 = vsel %vm951_vm12, %v1535_v7, %v1539_v27  ;;  %v3697_v31 = vpop.permute.xlu1 %1637  ;;  %v3718_v8 = vpop.permute.xlu0 %1584 }
 0x444   : > { %1542 = vst [vmem:[#allocation2 + $0x4] sm:$0xff] %v3695_v9 }
 0x44a   : > { %v3735_v33 = vpop.permute.xlu2 %1716 }
 0x44b   : > { %v3702_v1 = vld [vmem:[#allocation2] sm:$0xff]  ;;  %v1544_v11 = vld [vmem:[#allocation2 + $0x8] sm:$0xf] }
 0x44c   : > { %v3704_v39 = vpop.permute.xlu1 %1689  ;;  %v1553_v43 = vperm.slane %v3702_v1, 4  ;;  %v1554_v63 = vperm.slane %v1544_v11, 0  ;;  %v1569_v4 = vperm.slane %v3702_v1, 5  ;;  %v1570_v21 = vperm.slane %v1544_v11, 1  ;;  %v3750_v16 = vpop.permute.xlu0 %1706 }
 0x44d   : > { %v1608_v57 = vperm.slane %v1544_v11, 3  ;;  %v1588_v29 = vperm.slane %v3702_v1, 6  ;;  %v1589_v20 = vperm.slane %v1544_v11, 2  ;;  %v1607_v14 = vperm.slane %v3702_v1, 7 }
 0x44e   : > { %v3710_v36 = vperm.slane %v1554_v63, 0  ;;  %v3712_v62 = vperm.slane %v1553_v43, 0  ;;  %v3714_v45 = vperm.slane %v1569_v4, 1  ;;  %v3716_v3 = vperm.slane %v1570_v21, 1 }
 0x44f   : > { %v3730_v12 = vperm.slane %v1588_v29, 2  ;;  %v3732_v41 = vperm.slane %v1589_v20, 2  ;;  %v1552_v2 = vperm.slane %v3702_v1, 0  ;;  %v3739_v17 = vperm.slane %v1608_v57, 3 }
 0x450   : > { %v1563_v25 = vmul.f32 %v3710_v36, %v3689_v61  ;;  %v1562_v24 = vmul.f32 %v3712_v62, %v3689_v61  ;;  %v1578_v58 = vmul.f32 %v3714_v45, %v3656_v42  ;;  %v1579_v35 = vmul.f32 %v3716_v3, %v3656_v42 }
 0x451   : > { %v1693_v50 = vmul.f32 %v3704_v39, %v3712_v62  ;;  %v1568_v59 = vperm.slane %v3702_v1, 1  ;;  %v1598_v26 = vmul.f32 %v3732_v41, %v3718_v8  ;;  %v1700_v40 = vmul.f32 %v3691_v19, %v3714_v45 }
 0x452   : > { %v1582_v28 = vadd.f32 %v1579_v35, %v1563_v25  ;;  %v1581_v38 = vadd.f32 %v1578_v58, %v1562_v24  ;;  %v3746_v44 = vperm.slane %v1607_v14, 3  ;;  %v1597_v47 = vmul.f32 %v3730_v12, %v3718_v8 }
 0x453   : > { %v1703_v54 = vadd.f32 %v1700_v40, %v1693_v50  ;;  %v1710_v10 = vmul.f32 %v3750_v16, %v3730_v12  ;;  %v3754_v15 = vperm.slane %v1552_v2, 0  ;;  %v1617_v52 = vmul.f32 %v3739_v17, %v3700_v18  ;;  %v3779_v58 = vpop.permute.xlu2 %1857 }
 0x454   : > { %v1601_v49 = vadd.f32 %v1598_v26, %v1582_v28  ;;  %v1600_v37 = vadd.f32 %v1597_v47, %v1581_v38  ;;  %v3758_v55 = vperm.slane %v1568_v59, 1  ;;  %v1587_v48 = vperm.slane %v3702_v1, 2 }
 0x455   : > { %v1655_v56 = vpop.permute.xlu1 %1654  ;;  %v1713_v0 = vadd.f32 %v1710_v10, %v1703_v54  ;;  %v1616_v5 = vmul.f32 %v3746_v44, %v3700_v18  ;;  %v1720_v34 = vmul.f32 %v3735_v33, %v3746_v44  ;;  %v1606_v27 = vperm.slane %v3702_v1, 3 }
 0x456   : > { %v1620_v7 = vadd.f32 %v1617_v52, %v1601_v49  ;;  %v1640_v11 = vmul.f32 %v3697_v31, %v3754_v15  ;;  %v1641_v4 = vmul.f32 %v3697_v31, %v3712_v62  ;;  %v1647_v21 = vmul.f32 %v3673_v46, %v3758_v55 }
 0x457   : > { %v1619_v43 = vadd.f32 %v1616_v5, %v1600_v37  ;;  %v1723_v63 = vadd.f32 %v1720_v34, %v1713_v0  ;;  %v1648_v25 = vmul.f32 %v3673_v46, %v3714_v45  ;;  %v3776_v24 = vperm.slane %v1587_v48, 2  ;;  %v3812_v5 = vpop.permute.xlu0 %1760 }
 0x458   : > { %1628 = vrot.lane.b32.xlu2 %v1620_v7, %s2823_s13  ;;  %v1658_v35 = vmul.f32 %v1655_v56, %v3730_v12  ;;  %v3785_v57 = vperm.slane %v1606_v27, 3  ;;  %v1650_v29 = vadd.f32 %v1647_v21, %v1640_v11  ;;  %v1561_v14 = vmul.f32 %v3754_v15, %v3689_v61 }
 0x459   : > { %1626 = vrot.lane.b32.xlu1 %v1619_v43, %s2823_s13  ;;  %1730 = vrot.lane.b32.xlu0 %v1723_v63, %s2826_s15  ;;  %v1657_v1 = vmul.f32 %v1655_v56, %v3776_v24  ;;  %v1651_v20 = vadd.f32 %v1648_v25, %v1641_v4  ;;  %v1577_v28 = vmul.f32 %v3758_v55, %v3656_v42 }
 0x45a   : > { %v1642_v2 = vmul.f32 %v3697_v31, %v3710_v36  ;;  %v1649_v38 = vmul.f32 %v3673_v46, %v3716_v3  ;;  %v1659_v49 = vmul.f32 %v1655_v56, %v3732_v41  ;;  %v1755_v31 = vmul.f32 %v3708_v51, %v3716_v3 }
 0x45b   : > { %v1660_v59 = vadd.f32 %v1657_v1, %v1650_v29  ;;  %v1661_v26 = vadd.f32 %v1658_v35, %v1651_v20  ;;  %v1580_v54 = vadd.f32 %v1577_v28, %v1561_v14  ;;  %v1596_v52 = vmul.f32 %v3776_v24, %v3718_v8 }
 0x45c   : > { %v1652_v37 = vadd.f32 %v1649_v38, %v1642_v2  ;;  %v1694_v56 = vmul.f32 %v3704_v39, %v3710_v36  ;;  %v1701_v48 = vmul.f32 %v3691_v19, %v3716_v3  ;;  %v3814_v34 = vpop.permute.xlu2 %1894  ;;  %v1615_v8 = vmul.f32 %v3785_v57, %v3700_v18 }
 0x45d   : > { %v1599_v7 = vadd.f32 %v1596_v52, %v1580_v54  ;;  %v1765_v43 = vmul.f32 %v3812_v5, %v3732_v41  ;;  %v1711_v25 = vmul.f32 %v3750_v16, %v3732_v41  ;;  %v1863_v1 = vperm.slane %v3695_v9, 4  ;;  %v1855_v54 = vld [vmem:[#allocation2 + $0xc] sm:$0xf] }
 0x45e   : > { %v3761_v53 = vpop.permute.xlu1 %1743  ;;  %v1662_v0 = vadd.f32 %v1659_v49, %v1652_v37  ;;  %v1879_v18 = vperm.slane %v3695_v9, 5  ;;  %v1692_v29 = vmul.f32 %v3704_v39, %v3754_v15  ;;  %v1699_v20 = vmul.f32 %v3691_v19, %v3758_v55 }
 0x45f   : > { %v1748_v61 = vmul.f32 %v3761_v53, %v3710_v36  ;;  %v1704_v36 = vadd.f32 %v1701_v48, %v1694_v56  ;;  %v1618_v4 = vadd.f32 %v1615_v8, %v1599_v7  ;;  %v1898_v41 = vperm.slane %v3695_v9, 6 }
 0x460   : > { %v1721_v28 = vmul.f32 %v3735_v33, %v3739_v17  ;;  %v3841_v38 = vperm.slane %v1863_v1, 0  ;;  %v1917_v39 = vperm.slane %v3695_v9, 7  ;;  %v1702_v19 = vadd.f32 %v1699_v20, %v1692_v29 }
 0x461   : > { %1811 = vperm.xlu1 %2785, %v3586_v6   ;;  %v1758_v27 = vadd.f32 %v1755_v31, %v1748_v61  ;;  %v1714_v14 = vadd.f32 %v1711_v25, %v1704_v36  ;;  %v1764_v31 = vmul.f32 %v3812_v5, %v3730_v12  ;;  %v1719_v48 = vmul.f32 %v3735_v33, %v3785_v57 }
 0x462   : > { %v1746_v7 = vmul.f32 %v3761_v53, %v3754_v15  ;;  %v1897_v1 = vperm.slane %v3695_v9, 2  ;;  %v1763_v29 = vmul.f32 %v3812_v5, %v3776_v24 }
 0x463   : > { %v1768_v21 = vadd.f32 %v1765_v43, %v1758_v27  ;;  %v1878_v27 = vperm.slane %v3695_v9, 1  ;;  %v1899_v43 = vperm.slane %v1855_v54, 2 }
 0x465   : > { %v3839_v2 = vpop.permute.xlu2 %1913  ;;  %v3885_v25 = vperm.slane %v1878_v27, 1 }
 0x467   : > { %v1665_v50 = vpop.permute.xlu1 %1664 }
 0x468   : > { %v1667_v40 = vmul.f32 %v1665_v50, %v3785_v57  ;;  %v1668_v47 = vmul.f32 %v1665_v50, %v3746_v44  ;;  %v1669_v46 = vmul.f32 %v1665_v50, %v3739_v17  ;;  %v3846_v50 = vperm.slane %v1879_v18, 1 }
 0x469   : > { %2787 = vset.pattern.permute.xlu1 %v4185_v13  ;;  %v1747_v13 = vmul.f32 %v3761_v53, %v3712_v62  ;;  %v1709_v62 = vmul.f32 %v3750_v16, %v3776_v24  ;;  %v3889_v18 = vperm.slane %v1899_v43, 2  ;;  %v3907_v24 = vperm.slane %v1897_v1, 2 }
 0x46a   : > { %v1671_v42 = vadd.f32 %v1668_v47, %v1661_v26  ;;  %v1670_v10 = vadd.f32 %v1667_v40, %v1660_v59  ;;  %v1672_v11 = vadd.f32 %v1669_v46, %v1662_v0  ;;  %v1724_v59 = vadd.f32 %v1721_v28, %v1714_v14 }
 0x46b   : > { %v1754_v40 = vmul.f32 %v3708_v51, %v3714_v45  ;;  %v3852_v47 = vperm.slane %v1898_v41, 2  ;;  %v1712_v37 = vadd.f32 %v1709_v62, %v1702_v19  ;;  %v1880_v46 = vperm.slane %v1855_v54, 1  ;;  %v1950_v19 = vpop.permute.xlu0 %1949 }
 0x46c   : > { %1678 = vrot.lane.b32.xlu2 %v1671_v42, %s2824_s14  ;;  %1676 = vrot.lane.b32.xlu0 %v1670_v10, %s2824_s14  ;;  %v3860_v10 = vperm.slane %v1917_v39, 3  ;;  %v1864_v0 = vperm.slane %v1855_v54, 0  ;;  %v1908_v39 = vmul.f32 %v3889_v18, %v3814_v34 }
 0x46d   : > { %1680 = vrot.lane.b32.xlu1 %v1672_v11, %s2824_s14  ;;  %v1907_v61 = vmul.f32 %v3852_v47, %v3814_v34  ;;  %v1757_v42 = vadd.f32 %v1754_v40, %v1747_v13  ;;  %v3874_v12 = vperm.slane %v1880_v46, 1 }
 0x46e   : > { %v1926_v16 = vmul.f32 %v3860_v10, %v3839_v2  ;;  %v3876_v36 = vpop.permute.xlu2 %2003  ;;  %v3882_v15 = vperm.slane %v1864_v0, 0 }
 0x46f   : > { %v1767_v11 = vadd.f32 %v1764_v31, %v1757_v42 }
 0x470   : > { %v3820_v63 = vpop.permute.xlu1 %1770  ;;  %v1873_v41 = vmul.f32 %v3882_v15, %v3779_v58 }
 0x471   : > { %v1775_v3 = vmul.f32 %v3820_v63, %v3739_v17  ;;  %v1872_v17 = vmul.f32 %v3841_v38, %v3779_v58  ;;  %v1774_v52 = vmul.f32 %v3820_v63, %v3746_v44  ;;  %v1753_v44 = vmul.f32 %v3708_v51, %v3758_v55 }
 0x472   : > { %v1918_v51 = vperm.slane %v1855_v54, 3  ;;  %v1773_v20 = vmul.f32 %v3820_v63, %v3785_v57  ;;  %v1916_v57 = vperm.slane %v3695_v9, 3 }
 0x473   : > { %v1778_v35 = vadd.f32 %v1775_v3, %v1768_v21  ;;  %v1722_v3 = vadd.f32 %v1719_v48, %v1712_v37  ;;  %v1777_v33 = vadd.f32 %v1774_v52, %v1767_v11  ;;  %v1756_v53 = vadd.f32 %v1753_v44, %v1746_v7 }
 0x474   : > { %1624 = vrot.lane.b32.xlu2 %v1618_v4, %s2823_s13  ;;  %v1862_v4 = vperm.slane %v3695_v9, 0  ;;  %v3918_v54 = vperm.slane %v1916_v57, 3  ;;  %v1954_v9 = vmul.f32 %v1950_v19, %v3882_v15  ;;  %v2007_v57 = vmul.f32 %v3876_v36, %v3841_v38 }
 0x475   : > { %1786 = vrot.lane.b32.xlu0 %v1778_v35, %s2829_s16  ;;  %1732 = vrot.lane.b32.xlu1 %v1724_v59, %s2826_s15  ;;  %v1766_v13 = vadd.f32 %v1763_v29, %v1756_v53  ;;  %v3905_v59 = vperm.slane %v1918_v51, 3 }
 0x476   : > { %v3892_v35 = vperm.slane %v1862_v4, 0 }
 0x477   : > { %v1776_v5 = vadd.f32 %v1773_v20, %v1766_v13 }
 0x478   : > { %v1871_v28 = vmul.f32 %v3892_v35, %v3779_v58  ;;  %v1906_v58 = vmul.f32 %v3907_v24, %v3814_v34  ;;  %v1953_v34 = vmul.f32 %v1950_v19, %v3841_v38  ;;  %v1952_v7 = vmul.f32 %v1950_v19, %v3892_v35 }
 0x479   : > { %v1876_v26 = vpop.permute.xlu1 %1875 }
 0x47a   : > { %v1888_v49 = vmul.f32 %v3846_v50, %v1876_v26  ;;  %v1889_v55 = vmul.f32 %v3874_v12, %v1876_v26  ;;  %v1887_v14 = vmul.f32 %v3885_v25, %v1876_v26  ;;  %v3910_v26 = vpop.permute.xlu2 %2055 }
 0x47b   : > { %v2059_v20 = vmul.f32 %v3910_v26, %v3841_v38 }
 0x47c   : > { %v1891_v45 = vadd.f32 %v1888_v49, %v1872_v17  ;;  %1825 = vperm.xlu2 %2786, %v3586_v6   ;;  %v1892_v40 = vadd.f32 %v1889_v55, %v1873_v41  ;;  %v1890_v63 = vadd.f32 %v1887_v14, %v1871_v28  ;;  %v1927_v49 = vmul.f32 %v3905_v59, %v3839_v2 }
 0x47d   : > { %1728 = vrot.lane.b32.xlu1 %v1722_v3, %s2826_s15  ;;  %v2008_v28 = vmul.f32 %v3876_v36, %v3882_v15  ;;  %s312_s15 = scalar_lea.vmem %s4112_s7, %s2614_s9  ;;  %s2842_s9 = smov 64  }
 0x47e   : > { %v1910_v56 = vadd.f32 %v1907_v61, %v1891_v45  ;;  %v1911_v62 = vadd.f32 %v1908_v39, %v1892_v40  ;;  %v1909_v61 = vadd.f32 %v1906_v58, %v1890_v63 }
 0x480   : > { %v1929_v8 = vadd.f32 %v1926_v16, %v1910_v56  ;;  %v1930_v31 = vadd.f32 %v1927_v49, %v1911_v62  ;;  %v2011_v56 = vpop.permute.xlu0 %2010 }
 0x481   : > { %v2015_v41 = vmul.f32 %v2011_v56, %v3874_v12  ;;  %v2014_v58 = vmul.f32 %v2011_v56, %v3846_v50 }
 0x482   : > { %v1957_v21 = vpop.permute.xlu1 %1956  ;;  %1936 = vrot.lane.b32.xlu0 %v1929_v8, %s2830_s17  ;;  %v2021_v11 = vpop.permute.xlu2 %2020 }
 0x483   : > { %v1960_v42 = vmul.f32 %v1957_v21, %v3846_v50  ;;  %v1961_v45 = vmul.f32 %v1957_v21, %v3874_v12  ;;  %v1959_v16 = vmul.f32 %v1957_v21, %v3885_v25  ;;  %v2018_v49 = vadd.f32 %v2015_v41, %v2008_v28 }
 0x484   : > { %1784 = vrot.lane.b32.xlu2 %v1777_v33, %s2829_s16  ;;  %v2024_v62 = vmul.f32 %v2021_v11, %v3852_v47 }
 0x485   : > { %1839 = vperm.xlu1 %2787, %v3586_v6   ;;  %v1925_v6 = vmul.f32 %v3918_v54, %v3839_v2  ;;  %v1963_v48 = vadd.f32 %v1960_v42, %v1953_v34  ;;  %v1964_v0 = vadd.f32 %v1961_v45, %v1954_v9  ;;  %v1962_v4 = vadd.f32 %v1959_v16, %v1952_v7 }
 0x486   : > { %v2017_v45 = vadd.f32 %v2014_v58, %v2007_v57 }
 0x487   : > { %v1928_v52 = vadd.f32 %v1925_v6, %v1909_v61  ;;  %v2025_v61 = vmul.f32 %v2021_v11, %v3889_v18 }
 0x488   : > { %v2073_v55 = vpop.permute.xlu0 %2072 }
 0x489   : > { %v2076_v39 = vmul.f32 %v2073_v55, %v3852_v47  ;;  %v2075_v34 = vmul.f32 %v2073_v55, %v3907_v24  ;;  %v2028_v16 = vadd.f32 %v2025_v61, %v2018_v49 }
 0x48a   : > { %v2083_v13 = vpop.permute.xlu2 %2082 }
 0x48b   : > { %v1967_v17 = vpop.permute.xlu1 %1966  ;;  %v2086_v63 = vmul.f32 %v2083_v13, %v3860_v10 }
 0x48c   : > { %1782 = vrot.lane.b32.xlu2 %v1776_v5, %s2829_s16  ;;  %v1970_v37 = vmul.f32 %v1967_v17, %v3852_v47  ;;  %v1971_v46 = vmul.f32 %v1967_v17, %v3889_v18  ;;  %v1969_v27 = vmul.f32 %v1967_v17, %v3907_v24  ;;  %v2058_v5 = vmul.f32 %v3910_v26, %v3892_v35  ;;  %s2843_s16 = smov 96  }
 0x48d   : > { %1938 = vrot.lane.b32.xlu1 %v1930_v31, %s2830_s17  ;;  %v2027_v31 = vadd.f32 %v2024_v62, %v2017_v45 }
 0x48e   : > { %v1973_v8 = vadd.f32 %v1970_v37, %v1963_v48  ;;  %v1974_v43 = vadd.f32 %v1971_v46, %v1964_v0  ;;  %v1972_v1 = vadd.f32 %v1969_v27, %v1962_v4  ;;  %v2060_v37 = vmul.f32 %v3910_v26, %v3882_v15 }
 0x48f   : > { %v2006_v0 = vmul.f32 %v3876_v36, %v3892_v35  ;;  %v2085_v15 = vmul.f32 %v2083_v13, %v3918_v54  ;;  %v2013_v26 = vmul.f32 %v2011_v56, %v3885_v25  ;;  %v2087_v36 = vmul.f32 %v2083_v13, %v3905_v59  ;;  %v324_v56 = vld [vmem:[%s4111_s6] sm:$0xf] }
 0x494   : > { %v1977_v2 = vpop.permute.xlu1 %1976  ;;  %1934 = vrot.lane.b32.xlu2 %v1928_v52, %s2830_s17 }
 0x495   : > { %v1980_v3 = vmul.f32 %v1977_v2, %v3860_v10  ;;  %v1981_v44 = vmul.f32 %v1977_v2, %v3905_v59  ;;  %v1979_v33 = vmul.f32 %v1977_v2, %v3918_v54 }
 0x497   : > { %v1984_v21 = vadd.f32 %v1981_v44, %v1974_v43  ;;  %v1983_v53 = vadd.f32 %v1980_v3, %v1973_v8  ;;  %v1982_v51 = vadd.f32 %v1979_v33, %v1972_v1  ;;  %v2023_v43 = vmul.f32 %v2021_v11, %v3907_v24 }
 0x498   : > { %v2016_v44 = vadd.f32 %v2013_v26, %v2006_v0 }
 0x499   : > { %1990 = vrot.lane.b32.xlu0 %v1983_v53, %s2834_s18  ;;  %1992 = vrot.lane.b32.xlu1 %v1984_v21, %s2834_s18 }
 0x49a   : > { %v2026_v33 = vadd.f32 %v2023_v43, %v2016_v44 }
 0x49c   : > { %1988 = vrot.lane.b32.xlu2 %v1982_v51, %s2834_s18  ;;  %s2585_s18 = sshll.u32 %s4211_s28, 2  ;;  %s2847_s28 = smov 8  }
 0x49d   : > { %v2063_v29 = vpop.permute.xlu1 %2062  ;;  %s4090_s21 = scalar_lea.vmem %s4113_s8, %s2585_s18 }
 0x49e   : > { %v2066_v14 = vmul.f32 %v2063_v29, %v3846_v50  ;;  %v2065_v19 = vmul.f32 %v2063_v29, %v3885_v25  ;;  %v2067_v6 = vmul.f32 %v2063_v29, %v3874_v12  ;;  %v2077_v12 = vmul.f32 %v2073_v55, %v3889_v18 }
 0x4a0   : > { %v2069_v40 = vadd.f32 %v2066_v14, %v2059_v20  ;;  %v2068_v9 = vadd.f32 %v2065_v19, %v2058_v5  ;;  %v2070_v27 = vadd.f32 %v2067_v6, %v2060_v37  ;;  %v1799_v14 = vpop.permute.xlu0 %1798 }
 0x4a2   : > { %v2079_v17 = vadd.f32 %v2076_v39, %v2069_v40  ;;  %v2078_v7 = vadd.f32 %v2075_v34, %v2068_v9  ;;  %v2080_v18 = vadd.f32 %v2077_v12, %v2070_v27  ;;  %v1808_v34 = vmul.f32 %v3892_v35, %v1799_v14 }
 0x4a3   : > { %v1809_v35 = vmul.f32 %v3841_v38, %v1799_v14 }
 0x4a4   : > { %v2089_v42 = vadd.f32 %v2086_v63, %v2079_v17  ;;  %v2088_v3 = vadd.f32 %v2085_v15, %v2078_v7  ;;  %v2090_v53 = vadd.f32 %v2087_v36, %v2080_v18 }
 0x4a6   : > { %v2031_v46 = vpop.permute.xlu1 %2030  ;;  %2096 = vrot.lane.b32.xlu2 %v2089_v42, %s2841_s24 }
 0x4a7   : > { %v2034_v52 = vmul.f32 %v2031_v46, %v3860_v10  ;;  %v2035_v48 = vmul.f32 %v2031_v46, %v3905_v59  ;;  %v2033_v4 = vmul.f32 %v2031_v46, %v3918_v54 }
 0x4a9   : > { %v2038_v2 = vadd.f32 %v2035_v48, %v2028_v16  ;;  %v2037_v8 = vadd.f32 %v2034_v52, %v2027_v31  ;;  %v2036_v21 = vadd.f32 %v2033_v4, %v2026_v33 }
 0x4ab   : > { %2046 = vrot.lane.b32.xlu1 %v2038_v2, %s2839_s19  ;;  %2044 = vrot.lane.b32.xlu0 %v2037_v8, %s2839_s19 }
 0x4ae   : > { %2094 = vrot.lane.b32.xlu2 %v2088_v3, %s2841_s24 }
 0x4b2   : > { %v1629_v11 = vpop.permute.xlu2 %1628 }
 0x4b3   : > { %2042 = vrot.lane.b32.xlu1 %v2036_v21, %s2839_s19  ;;  %2098 = vrot.lane.b32.xlu0 %v2090_v53, %s2841_s24  ;;  %s2849_s24 = smov 40  }
 0x4bb   : > { %2110 = vperm.xlu0 %2788, %v324_v56  }
 0x4c6   : > { %v1679_v59 = vpop.permute.xlu2 %1678 }
 0x4cb   : > { %v1627_v1 = vpop.permute.xlu1 %1626  ;;  %v1731_v28 = vpop.permute.xlu0 %1730 }
 0x4cc   : > { %v1631_v46 = vsel %vm449_vm0, %v1627_v1, %v1629_v11 }
 0x4cd   : > { %v1635_v15 = vsel %vm3138_vm3, %v1631_v46, 0.0 }
 0x4ce   : > { %v1625_v55 = vpop.permute.xlu2 %1624 }
 0x4cf   : > { %v1630_v62 = vsel %vm449_vm0, %v1625_v55, %v1627_v1  ;;  %vm2212_vm0 = vcmask 126016  }
 0x4d0   : > { %v1634_v31 = vsel %vm3142_vm4, %v1630_v62, 0.0 }
 0x4d3   : > { %v1812_v51 = vpop.permute.xlu1 %1811 }
 0x4d4   : > { %v1820_v61 = vmul.f32 %v3885_v25, %v1812_v51  ;;  %v1821_v16 = vmul.f32 %v3846_v50, %v1812_v51 }
 0x4d6   : > { %v1826_v20 = vpop.permute.xlu2 %1825  ;;  %v1822_v52 = vadd.f32 %v1820_v61, %v1808_v34  ;;  %v1823_v26 = vadd.f32 %v1821_v16, %v1809_v35 }
 0x4d7   : > { %v1834_v37 = vmul.f32 %v3907_v24, %v1826_v20  ;;  %v1835_v12 = vmul.f32 %v3852_v47, %v1826_v20 }
 0x4d9   : > { %v1836_v27 = vadd.f32 %v1834_v37, %v1822_v52  ;;  %v1837_v18 = vadd.f32 %v1835_v12, %v1823_v26 }
 0x4de   : > { %v1785_v13 = vpop.permute.xlu2 %1784  ;;  %v1677_v19 = vpop.permute.xlu0 %1676 }
 0x4df   : > { %v1681_v29 = vpop.permute.xlu1 %1680  ;;  %v1682_v42 = vsel %vm502_vm2, %v1677_v19, %v1679_v59 }
 0x4e0   : > { %v1686_v48 = vadd.f32 %v1682_v42, %v1634_v31  ;;  %v1683_v24 = vsel %vm502_vm2, %v1679_v59, %v1681_v29 }
 0x4e1   : > { %v1687_v3 = vadd.f32 %v1683_v24, %v1635_v15 }
 0x4e6   : > { %v1783_v40 = vpop.permute.xlu2 %1782 }
 0x4e7   : > { %v1733_v41 = vpop.permute.xlu1 %1732  ;;  %v1787_v5 = vpop.permute.xlu0 %1786  ;;  %v1788_v2 = vsel %vm614_vm7, %v1783_v40, %v1785_v13 }
 0x4e8   : > { %v1735_v0 = vsel %vm559_vm1, %v1731_v28, %v1733_v41  ;;  %v1792_v47 = vsel %vm3142_vm4, %v1788_v2, 0.0 }
 0x4e9   : > { %v1739_v43 = vsel %vm3151_vm6, %v1735_v0, 0.0 }
 0x4ea   : > { %v1741_v33 = vadd.f32 %v1739_v43, %v1687_v3 }
 0x4ee   : > { %v1935_v63 = vpop.permute.xlu2 %1934 }
 0x4ef   : > { %v1729_v39 = vpop.permute.xlu1 %1728 }
 0x4f0   : > { %v1734_v9 = vsel %vm559_vm1, %v1729_v39, %v1731_v28  ;;  %vm2256_vm1 = vcmask 191616  }
 0x4f1   : > { %v1738_v25 = vsel %vm3146_vm5, %v1734_v9, 0.0 }
 0x4f2   : > { %v1740_v8 = vadd.f32 %v1738_v25, %v1686_v48 }
 0x4f4   : > { %v1937_v17 = vpop.permute.xlu0 %1936  ;;  %v1794_v21 = vadd.f32 %v1792_v47, %v1740_v8 }
 0x4f5   : > { %v1940_v56 = vsel %vm767_vm8, %v1935_v63, %v1937_v17 }
 0x4f6   : > { %v1989_v49 = vpop.permute.xlu2 %1988  ;;  %v1944_v29 = vsel %vm3146_vm5, %v1940_v56, 0.0 }
 0x4f7   : > { %v1840_v57 = vpop.permute.xlu1 %1839 }
 0x4f8   : > { %v1848_v7 = vmul.f32 %v3918_v54, %v1840_v57  ;;  %v1789_v54 = vsel %vm614_vm7, %v1785_v13, %v1787_v5  ;;  %v1849_v38 = vmul.f32 %v3860_v10, %v1840_v57 }
 0x4f9   : > { %v1793_v53 = vsel %vm3138_vm3, %v1789_v54, 0.0 }
 0x4fa   : > { %v1850_v44 = vadd.f32 %v1848_v7, %v1836_v27  ;;  %v1851_v11 = vadd.f32 %v1849_v38, %v1837_v18  ;;  %v1795_v51 = vadd.f32 %v1793_v53, %v1741_v33 }
 0x4fc   : > { %v1852_v1 = vadd.f32 %v1850_v44, %v1794_v21  ;;  %v1853_v41 = vadd.f32 %v1851_v11, %v1795_v51 }
 0x4fe   : > { %v1946_v13 = vadd.f32 %v1944_v29, %v1852_v1 }
 0x4ff   : > { %v1939_v58 = vpop.permute.xlu1 %1938 }
 0x500   : > { %v2097_v50 = vpop.permute.xlu2 %2096  ;;  %v1941_v59 = vsel %vm767_vm8, %v1937_v17, %v1939_v58 }
 0x501   : > { %v1945_v20 = vsel %vm3151_vm6, %v1941_v59, 0.0 }
 0x502   : > { %v1947_v57 = vadd.f32 %v1945_v20, %v1853_v41  ;;  %v4207_v41 = vlaneseq }
 0x508   : > { %v2095_v28 = vpop.permute.xlu2 %2094 }
 0x509   : > { %v2100_v32 = vsel %vm930_vm11, %v2095_v28, %v2097_v50  ;;  %v2125_v28 = vshrl.u32 %v4207_v41, 7 }
 0x50a   : > { %v2104_v9 = vsel %vm3146_vm5, %v2100_v32, 0.0  ;;  %vm2436_vm5 = vcmask 454016  }
 0x50b   : > { %v1993_v45 = vpop.permute.xlu1 %1992  ;;  %v1991_v6 = vpop.permute.xlu0 %1990 }
 0x50c   : > { %v1994_v10 = vsel %vm822_vm9, %v1989_v49, %v1991_v6  ;;  %v1995_v55 = vsel %vm822_vm9, %v1991_v6, %v1993_v45 }
 0x50d   : > { %v1998_v14 = vsel %vm3142_vm4, %v1994_v10, 0.0  ;;  %v1999_v39 = vsel %vm3138_vm3, %v1995_v55, 0.0  ;;  %vm2348_vm3 = vcmask 322816   ;;  %vm2392_vm4 = vcmask 388416  }
 0x50e   : > { %v2000_v5 = vadd.f32 %v1998_v14, %v1946_v13  ;;  %v2001_v49 = vadd.f32 %v1999_v39, %v1947_v57  ;;  %v2127_v13 = vmul.u32 2, %v3121_v23 }
 0x510   : > { %vm2128_vm14 = vcmp.eq.s32.totalorder %v2125_v28, %v2127_v13 }
 0x51d   : > { %v2047_v36 = vpop.permute.xlu1 %2046  ;;  %v2045_v4 = vpop.permute.xlu0 %2044 }
 0x51e   : > { %v2049_v58 = vsel %vm877_vm10, %v2045_v4, %v2047_v36 }
 0x51f   : > { %v2053_v22 = vadd.f32 %v2049_v58, %v2001_v49 }
 0x525   : > { %v2043_v19 = vpop.permute.xlu1 %2042  ;;  %v2099_v40 = vpop.permute.xlu0 %2098 }
 0x526   : > { %v2048_v63 = vsel %vm877_vm10, %v2043_v19, %v2045_v4  ;;  %v2101_v17 = vsel %vm930_vm11, %v2097_v50, %v2099_v40  ;;  %v2126_v19 = vadd.s32 8, %v2125_v28 }
 0x527   : > { %v2052_v62 = vadd.f32 %v2048_v63, %v2000_v5  ;;  %v2105_v61 = vsel %vm3151_vm6, %v2101_v17, 0.0  ;;  %v2845_v63 = vmov 1.0   ;;  %vm2488_vm6 = vcmask 519616  }
 0x528   : > { %v2107_v45 = vadd.f32 %v2105_v61, %v2053_v22  ;;  %vm4053_vm13 = vcmp.eq.s32.totalorder %v2126_v19, %v2127_v13 }
 0x529   : > { %v2106_v42 = vadd.f32 %v2104_v9, %v2052_v62  ;;  %2588 = vmatpush.msk.msra.mxu0 %vm4053_vm13, %v2845_v63  ;;  %2594 = vmatpush.msk.msra.mxu2 %vm4053_vm13, %v2845_v63 }
 0x52a   : > { %2591 = vmatpush.msk.msra.mxu1 %vm4053_vm13, %v2845_v63  ;;  %2597 = vmatpush.msk.msra.mxu3 %vm4053_vm13, %v2845_v63 }
 0x52b   : > { %2589 = vmatpush.msk.msra.mxu0 %vm2128_vm14, %v2845_v63  ;;  %2595 = vmatpush.msk.msra.mxu2 %vm2128_vm14, %v2845_v63 }
 0x52c   : > { %2592 = vmatpush.msk.msra.mxu1 %vm2128_vm14, %v2845_v63  ;;  %2598 = vmatpush.msk.msra.mxu3 %vm2128_vm14, %v2845_v63 }
 0x52d   : > { %v2111_v6 = vpop.permute.xlu0 %2110  ;;  %2600 = vmatpush.msk.msrb.mxu0 %vm4053_vm13, %v2845_v63  ;;  %2606 = vmatpush.msk.msrb.mxu2 %vm4053_vm13, %v2845_v63 }
 0x52e   : > { %v2113_v34 = vadd.f32 %v2111_v6, %v2106_v42  ;;  %v2114_v37 = vadd.f32 %v2111_v6, %v2107_v45  ;;  %2609 = vmatpush.msk.msrb.mxu3 %vm4053_vm13, %v2845_v63  ;;  %2603 = vmatpush.msk.msrb.mxu1 %vm4053_vm13, %v2845_v63 }
 0x52f   : > { %2601 = vmatpush.msk.msrb.mxu0 %vm2128_vm14, %v2845_v63  ;;  %2607 = vmatpush.msk.msrb.mxu2 %vm2128_vm14, %v2845_v63 }
 0x530   : > { %v2116_v46 = vmax.f32 %v2114_v37, 0.0  ;;  %v2115_v31 = vmax.f32 %v2113_v34, 0.0  ;;  %2610 = vmatpush.msk.msrb.mxu3 %vm2128_vm14, %v2845_v63  ;;  %2604 = vmatpush.msk.msrb.mxu1 %vm2128_vm14, %v2845_v63 }
 0x532   : > { %v2119_v16 = vrot.slane %v2116_v46, 4 }
 0x534   : > { %v2120_v60 = vsel %vm951_vm12, %v2115_v31, %v2119_v16 }
 0x535   : > { %2122 = vst [vmem:[%s312_s15] sm:$0xff] %v2120_v60 }
 0x536   : > { %2123 = vst [vmem:[#allocation2 + $0x4] sm:$0xff] %v2120_v60 }
 0x53d   : > { %v2394_v25 = vld [vmem:[#allocation2 + $0x8] sm:$0xf]  ;;  %v2214_v30 = vld [vmem:[#allocation2 + $0x4] sm:$0xf] }
 0x53e   : > { %v2170_v52 = vld [vmem:[#allocation2 + $0x4] sm:$0xf]  ;;  %2396 = vrot.lane.b32.xlu0 %v2394_v25, %s2830_s17  ;;  %2216 = vrot.lane.b32.xlu2 %v2214_v30, %s2830_s17  ;;  %v2350_v48 = vld [vmem:[#allocation2 + $0x8] sm:$0xf] }
 0x53f   : > { %2172 = vrot.lane.b32.xlu1 %v2170_v52, %s2830_s17  ;;  %v2439_v0 = vld [vmem:[#allocation2 + $0x8] sm:$0xff]  ;;  %v2258_v7 = vld [vmem:[#allocation2 + $0x4] sm:$0xf] }
 0x540   : > { %v2134_v3 = vld [vmem:[#allocation2 + $0x4] sm:$0xf]  ;;  %v2438_v36 = vld [vmem:[#allocation2 + $0x8] sm:$0xf] }
 0x541   : > { %v2310_v33 = vld [vmem:[#allocation2 + $0x8] sm:$0xf] }
 0x546   : > { %2352 = vrot.lane.b32.xlu2 %v2350_v48, %s2830_s17 }
 0x547   : > { %2266 = vrot.lane.b32.xlu1 %v2120_v60, %s2830_s17 }
 0x54f   : > { %2446 = vrot.lane.b32.xlu1 %v2439_v0, %s2830_s17 }
 0x557   : > { %2261 = vrot.lane.b32.xlu1 %v2258_v7, %s2830_s17 }
 0x598   : > { %v2217_v35 = vpop.permute.xlu2 %2216 }
 0x599   : > { %v2219_v24 = vmax.f32 %v2214_v30, %v2217_v35 }
 0x59b   : > { %2221 = vrot.lane.b32.xlu0 %v2219_v24, %s2839_s19 }
 0x5a0   : > { %v2353_v12 = vpop.permute.xlu2 %2352 }
 0x5a1   : > { %v2355_v27 = vmax.f32 %v2350_v48, %v2353_v12 }
 0x5a3   : > { %2357 = vrot.lane.b32.xlu0 %v2355_v27, %s2839_s19 }
 0x5b0   : > { %v2397_v2 = vpop.permute.xlu0 %2396 }
 0x5b1   : > { %v2399_v8 = vmax.f32 %v2394_v25, %v2397_v2  ;;  %v2173_v50 = vpop.permute.xlu1 %2172 }
 0x5b2   : > { %v2175_v15 = vmax.f32 %v2170_v52, %v2173_v50 }
 0x5b3   : > { %2401 = vrot.lane.b32.xlu1 %v2399_v8, %s2839_s19 }
 0x5b4   : > { %2177 = vrot.lane.b32.xlu2 %v2175_v15, %s2839_s19 }
 0x5b9   : > { %v2267_v26 = vpop.permute.xlu1 %2266 }
 0x5ba   : > { %v2268_v43 = vrot.slane %v2267_v26, 4 }
 0x5bb   : > { %2136 = vrot.lane.b32.xlu1 %v2134_v3, %s2830_s17 }
 0x5bc   : > { %v2269_v54 = vsel %vm767_vm8, %v2267_v26, %v2268_v43 }
 0x5bd   : > { %v2271_v38 = vmax.f32 %v2258_v7, %v2269_v54 }
 0x5bf   : > { %2273 = vrot.lane.b32.xlu2 %v2271_v38, %s2839_s19 }
 0x5c1   : > { %v2447_v44 = vpop.permute.xlu1 %2446 }
 0x5c2   : > { %v2448_v47 = vrot.slane %v2447_v44, 4 }
 0x5c4   : > { %v2449_v4 = vsel %vm767_vm8, %v2447_v44, %v2448_v47 }
 0x5c5   : > { %v2451_v18 = vmax.f32 %v2438_v36, %v2449_v4 }
 0x5c7   : > { %2441 = vrot.lane.b32.xlu2 %v2438_v36, %s2830_s17  ;;  %2453 = vrot.lane.b32.xlu0 %v2451_v18, %s2839_s19 }
 0x5c9   : > { %v2262_v10 = vpop.permute.xlu1 %2261 }
 0x5ca   : > { %v2264_v51 = vmax.f32 %v2258_v7, %v2262_v10 }
 0x5cf   : > { %2312 = vrot.lane.b32.xlu2 %v2310_v33, %s2830_s17  ;;  %s2844_s17 = smov 32  }
 0x60d   : > { %v2222_v56 = vpop.permute.xlu0 %2221 }
 0x60e   : > { %v2178_v21 = vpop.permute.xlu2 %2177  ;;  %v2224_v11 = vmax.f32 %v2219_v24, %v2222_v56 }
 0x60f   : > { %v2180_v53 = vmax.f32 %v2175_v15, %v2178_v21 }
 0x611   : > { %2182 = vst [vmem:[#allocation1] ss:$2 sm:$0xff] %v2180_v53 }
 0x615   : > { %v2358_v14 = vpop.permute.xlu0 %2357 }
 0x616   : > { %v2360_v40 = vmax.f32 %v2355_v27, %v2358_v14 }
 0x618   : > { %v2183_v1 = vld.sshfl [vmem:[#allocation1] sm:$0xff pattern:$0x75316420] }
 0x619   : > { %2226 = vst [vmem:[#allocation1] ss:$2 sm:$0xff] %v2224_v11  ;;  %v2274_v59 = vpop.permute.xlu2 %2273 }
 0x61a   : > { %v2276_v55 = vmax.f32 %v2264_v51, %v2274_v59 }
 0x620   : > { %v2227_v29 = vld.sshfl [vmem:[#allocation1] sm:$0xff pattern:$0x75316420] }
 0x621   : > { %2228 = vrot.lane.b32.xlu0 %v2227_v29, %s2842_s9  ;;  %2278 = vst [vmem:[#allocation1] ss:$2 sm:$0xff] %v2276_v55  ;;  %v2442_v20 = vpop.permute.xlu2 %2441 }
 0x622   : > { %v2444_v61 = vmax.f32 %v2438_v36, %v2442_v20 }
 0x625   : > { %v2402_v39 = vpop.permute.xlu1 %2401 }
 0x626   : > { %v2404_v32 = vmax.f32 %v2399_v8, %v2402_v39 }
 0x628   : > { %v2279_v57 = vld.sshfl [vmem:[#allocation1] sm:$0xff pattern:$0x75316420] }
 0x629   : > { %2184 = vrot.lane.b32.xlu0 %v2183_v1, %s2843_s16  ;;  %2362 = vst [vmem:[#allocation1] ss:$2 sm:$0xff] %v2360_v40  ;;  %2280 = vrot.lane.b32.xlu1 %v2279_v57, %s2844_s17  ;;  %v2313_v23 = vpop.permute.xlu2 %2312 }
 0x62a   : > { %v2315_v49 = vmax.f32 %v2310_v33, %v2313_v23 }
 0x62d   : > { %v2137_v17 = vpop.permute.xlu1 %2136 }
 0x62e   : > { %v2139_v58 = vmax.f32 %v2134_v3, %v2137_v17 }
 0x630   : > { %v2363_v62 = vld.sshfl [vmem:[#allocation1] sm:$0xff pattern:$0x75316420]  ;;  %2141 = vrot.lane.b32.xlu2 %v2139_v58, %s2839_s19 }
 0x631   : > { %2406 = vst [vmem:[#allocation1] ss:$2 sm:$0xff] %v2404_v32  ;;  %2317 = vrot.lane.b32.xlu0 %v2315_v49, %s2839_s19 }
 0x638   : > { %v2407_v22 = vld.sshfl [vmem:[#allocation1] sm:$0xff pattern:$0x75316420] }
 0x639   : > { %v2454_v9 = vpop.permute.xlu0 %2453  ;;  %2408 = vrot.lane.b32.xlu1 %v2407_v22, %s2842_s9 }
 0x63a   : > { %v2456_v42 = vmax.f32 %v2444_v61, %v2454_v9 }
 0x63c   : > { %2458 = vst [vmem:[#allocation1] ss:$2 sm:$0xff] %v2456_v42 }
 0x641   : > { %2364 = vrot.lane.b32.xlu1 %v2363_v62, %s2843_s16 }
 0x643   : > { %v2459_v45 = vld.sshfl [vmem:[#allocation1] sm:$0xff pattern:$0x75316420] }
 0x644   : > { %2460 = vrot.lane.b32.xlu2 %v2459_v45, %s2844_s17 }
 0x68a   : > { %v2142_v6 = vpop.permute.xlu2 %2141 }
 0x68b   : > { %v2144_v34 = vmax.f32 %v2139_v58, %v2142_v6 }
 0x68d   : > { %2590 = vmatmul.msk.f32.vlgmr.msra.gmra.mxu0 %vm502_vm2, %v2144_v34 }
 0x693   : > { %v2229_v37 = vpop.permute.xlu0 %2228 }
 0x694   : > { %2596 = vmatmul.msk.f32.vlgmr.msra.gmra.mxu2 %vm502_vm2, %v2229_v37 }
 0x69b   : > { %v2185_v46 = vpop.permute.xlu0 %2184  ;;  %v2281_v31 = vpop.permute.xlu1 %2280 }
 0x69c   : > { %2593 = vmatmul.msk.f32.vlgmr.msra.gmra.mxu1 %vm502_vm2, %v2185_v46  ;;  %2599 = vmatmul.msk.f32.vlgmr.msra.gmra.mxu3 %vm502_vm2, %v2281_v31 }
 0x69e   : > { %v2461_v16 = vpop.permute.xlu2 %2460 }
 0x6a3   : > { %v2318_v60 = vpop.permute.xlu0 %2317 }
 0x6a4   : > { %v2320_v25 = vmax.f32 %v2315_v49, %v2318_v60  ;;  %2611 = vmatmul.msk.f32.vlgmr.msrb.gmra.mxu3 %vm502_vm2, %v2461_v16 }
 0x6a6   : > { %2602 = vmatmul.msk.f32.vlgmr.msrb.gmra.mxu0 %vm502_vm2, %v2320_v25 }
 0x6ab   : > { %v2409_v30 = vpop.permute.xlu1 %2408 }
 0x6ac   : > { %2608 = vmatmul.msk.f32.vlgmr.msrb.gmra.mxu2 %vm502_vm2, %v2409_v30 }
 0x6b3   : > { %v2365_v52 = vpop.permute.xlu1 %2364 }
 0x6b4   : > { %2605 = vmatmul.msk.f32.vlgmr.msrb.gmra.mxu1 %vm502_vm2, %v2365_v52  ;;  %vm2308_vm2 = vcmask 257216  }
 0x70a   : > { %v2165_v48 = vpop.f32.mrf.mxu0 }
 0x70b   : > { %2169 = vst.msk [vmem:[%s4090_s21] sm:$0xf] %vm2168_vm15, %v2165_v48 }
 0x717   : > { %v2249_v0 = vpop.f32.mrf.mxu2 }
 0x718   : > { %2253 = vrot.lane.b32.xlu0 %v2249_v0, %s2824_s14  ;;  %s2850_s14 = smov 56  }
 0x719   : > { %v2205_v24 = vpop.f32.mrf.mxu1 }
 0x71f   : > { %v2301_v7 = vpop.f32.mrf.mxu3 }
 0x720   : > { %2305 = vrot.lane.b32.xlu1 %v2301_v7, %s2846_s22 }
 0x723   : > { %v2341_v35 = vpop.f32.mrf.mxu0 }
 0x724   : > { %2345 = vrot.lane.b32.xlu2 %v2341_v35, %s2844_s17 }
 0x727   : > { %v2481_v2 = vpop.f32.mrf.mxu3 }
 0x72c   : > { %2209 = vrot.lane.b32.xlu2 %v2205_v24, %s2847_s28 }
 0x72f   : > { %v2429_v12 = vpop.f32.mrf.mxu2 }
 0x730   : > { %2433 = vrot.lane.b32.xlu1 %v2429_v12, %s2848_s23 }
 0x731   : > { %v2385_v27 = vpop.f32.mrf.mxu1 }
 0x732   : > { %2389 = vrot.lane.b32.xlu0 %v2385_v27, %s2849_s24 }
 0x734   : > { %2485 = vrot.lane.b32.xlu2 %v2481_v2, %s2850_s14 }
 0x77e   : > { %v2346_v8 = vpop.permute.xlu2 %2345 }
 0x786   : > { %v2210_v50 = vpop.permute.xlu2 %2209 }
 0x787   : > { %2213 = vst.msk [vmem:[%s4090_s21] sm:$0xf] %vm2212_vm0, %v2210_v50 }
 0x78a   : > { %v2254_v15 = vpop.permute.xlu0 %2253 }
 0x78b   : > { %2257 = vst.msk [vmem:[%s4090_s21] sm:$0xf] %vm2256_vm1, %v2254_v15 }
 0x78e   : > { %v2486_v54 = vpop.permute.xlu2 %2485 }
 0x792   : > { %v2306_v26 = vpop.permute.xlu1 %2305 }
 0x793   : > { %2309 = vst.msk [vmem:[%s4090_s21] sm:$0xf] %vm2308_vm2, %v2306_v26 }
 0x794   : > { %2349 = vst.msk [vmem:[%s4090_s21] sm:$0xf] %vm2348_vm3, %v2346_v8 }
 0x7a2   : > { %v2434_v3 = vpop.permute.xlu1 %2433 }
 0x7a4   : > { %v2390_v43 = vpop.permute.xlu0 %2389 }
 0x7a5   : > { %2393 = vst.msk [vmem:[%s4090_s21] sm:$0xf] %vm2392_vm4, %v2390_v43 }
 0x7a6   : > { %2437 = vst.msk [vmem:[%s4090_s21] sm:$0xf] %vm2436_vm5, %v2434_v3 }
 0x7a7   : > { %2489 = vst.msk [vmem:[%s4090_s21] sm:$0xf] %vm2488_vm6, %v2486_v54 }
 0x7a8 PF: > { %s19_s27 = sadd.s32 1, %s2795_s27  }
 0x7a9   : > { %p16_p4 = scmp.ge.s32.totalorder %s19_s27, 4  }
 0x7ab   :  { %18 = sbr.rel (!%p16_p4) target bundleno = 1 (0x1), region = 90 }

</bundles_post_ra>
